<compile_context>
chip_gen: v6e
topology: v6e:2x2x1
jax: 0.10.0
libtpu: 0.0.40
codegen_flags: <defaults>
</compile_context>

<pallas_src>
import math

import jax
import jax.numpy as jnp
from jax import lax
from jax.experimental import pallas as pl
from jax.experimental.pallas import tpu as pltpu


def _round_up(x, m):
    return -(-x // m) * m


# ----------------------------- fused kernel ----------------------------------
def _make_fused_lstm_kernel(S, B, HP, layer_num):
    """B = padded batch (multiple of 8); HP = padded hidden (multiple of 128)."""
    HP3 = 3 * HP

    def kernel(*refs):
        # inputs: x2d, (w_ih, w_hh, b) x layer_num, fc_w, fc_b
        x_ref = refs[0]
        lrefs = refs[1:1 + 3 * layer_num]
        fc_w_ref = refs[1 + 3 * layer_num]
        fc_b_ref = refs[2 + 3 * layer_num]
        out_ref = refs[3 + 3 * layer_num]
        seq_buf = refs[4 + 3 * layer_num]    # (S*B, HP)   f32 layer output seq
        gx_buf = refs[5 + 3 * layer_num]     # (S*B, 4*HP) f32 hoisted gates_x

        h_last = None
        for l in range(layer_num):
            wih_ref = lrefs[3 * l + 0]       # bf16 (in_pad, 4*HP)
            whh_ref = lrefs[3 * l + 1]       # bf16 (HP, 4*HP)
            b_ref = lrefs[3 * l + 2]         # f32  (1, 4*HP)

            # ---- hoisted input projection: one big bf16 MXU matmul / layer ----
            inp2d = (x_ref[...] if l == 0
                     else seq_buf[...].astype(jnp.bfloat16))
            gx_buf[...] = (
                jnp.dot(inp2d, wih_ref[...], preferred_element_type=jnp.float32)
                + b_ref[...])

            whh = whh_ref[...]               # hoist weight load out of time loop
            store_seq = l < layer_num - 1    # last layer only needs final h

            def step(t, carry, whh=whh, store_seq=store_seq):
                h_prev, c_prev = carry       # f32 (B, HP)
                row = pl.multiple_of(t * B, 8)          # sublane-aligned slice
                gates = gx_buf[pl.ds(row, B), :] + jnp.dot(
                    h_prev.astype(jnp.bfloat16), whh,
                    preferred_element_type=jnp.float32)  # f32 (B, 4*HP)
                # gate layout (re-packed in wrapper): [ i | f | o | g ],
                # each block lane-aligned (HP = multiple of 128).
                # sigmoid(x) = 0.5*tanh(0.5*x) + 0.5  -> single EUP tanh stream
                sig = 0.5 * jnp.tanh(0.5 * gates[:, :HP3]) + 0.5
                i_g = sig[:, 0 * HP:1 * HP]
                f_g = sig[:, 1 * HP:2 * HP]
                o_g = sig[:, 2 * HP:3 * HP]
                g_g = jnp.tanh(gates[:, HP3:])
                c_new = f_g * c_prev + i_g * g_g
                h_new = o_g * jnp.tanh(c_new)
                if store_seq:
                    seq_buf[pl.ds(row, B), :] = h_new
                return h_new, c_new

            h0 = jnp.zeros((B, HP), jnp.float32)
            c0 = jnp.zeros((B, HP), jnp.float32)
            # Partial unroll: keeps LLO scheduling visibility without blowing
            # up instruction memory / vreg live ranges for long sequences.
            h_last, _ = lax.fori_loop(0, S, step, (h0, c0), unroll=min(S, 8))

        # ------------------------- final Linear --------------------------
        out_ref[...] = (
            jnp.dot(h_last.astype(jnp.bfloat16), fc_w_ref[...],
                    preferred_element_type=jnp.float32)
            + fc_b_ref[...]).astype(out_ref.dtype)

    return kernel


# --------------------------- one-time weight packing ---------------------------
def _reorder_pad_gates(a, H, H_pad, axis):
    """PyTorch (i, f, g, o) gate blocks -> (i, f, o, g), each zero-padded to H_pad."""
    i, f, g, o = jnp.split(a, 4, axis=axis)
    pad = [(0, 0)] * a.ndim
    pad[axis] = (0, H_pad - H)
    return jnp.concatenate([jnp.pad(b, pad) for b in (i, f, o, g)], axis=axis)


def pack_params(params):
    """Transpose + gate reorder + lane padding + bf16 cast, done ONCE per model."""
    layers = params["layers"]
    H = layers[0]["w_hh"].shape[1]
    H_pad = _round_up(H, 128)
    O = params["fc_w"].shape[0]

    packed = {"layers": []}
    for li, lp in enumerate(layers):
        in_dim = lp["w_ih"].shape[1]
        in_pad = _round_up(in_dim, 128) if li == 0 else H_pad
        wih = jnp.transpose(lp["w_ih"]).astype(jnp.float32)        # (in_dim, 4H)
        wih = _reorder_pad_gates(wih, H, H_pad, axis=1)
        wih = jnp.pad(wih, ((0, in_pad - in_dim), (0, 0))).astype(jnp.bfloat16)
        whh = jnp.transpose(lp["w_hh"]).astype(jnp.float32)        # (H, 4H)
        whh = _reorder_pad_gates(whh, H, H_pad, axis=1)
        whh = jnp.pad(whh, ((0, H_pad - H), (0, 0))).astype(jnp.bfloat16)
        bias = (lp["b_ih"] + lp["b_hh"]).astype(jnp.float32).reshape(1, 4 * H)
        bias = _reorder_pad_gates(bias, H, H_pad, axis=1)          # f32 (1, 4*H_pad)
        packed["layers"].append({"w_ih": wih, "w_hh": whh, "b": bias})

    fc_w = jnp.transpose(params["fc_w"]).astype(jnp.float32)       # (H, O)
    fc_w = jnp.pad(fc_w, ((0, H_pad - H), (0, 0))).astype(jnp.bfloat16)
    packed["fc_w"] = fc_w
    packed["fc_b"] = params["fc_b"].astype(jnp.float32).reshape(1, O)
    return packed


# ------------------------------- forward wrapper --------------------------------
def lstm_forward(packed, inputs):
    """inputs: (batch, seq, input_dim)  ->  (batch, output_dim)."""
    B, S, D_in = inputs.shape
    layers = packed["layers"]
    layer_num = len(layers)
    H_pad = layers[0]["w_hh"].shape[0]
    D_in_pad = layers[0]["w_ih"].shape[0]
    O = packed["fc_w"].shape[1]
    B_pad = max(8, _round_up(B, 8))

    # Time-major, batch & feature padded, flattened to (S*B_pad, D_in_pad) bf16
    # so the hoisted input projection is a single bf16 MXU matmul.
    x = jnp.transpose(inputs, (1, 0, 2)).astype(jnp.float32)       # (S, B, D_in)
    x = jnp.pad(x, ((0, 0), (0, B_pad - B), (0, D_in_pad - D_in)))
    x2d = x.reshape(S * B_pad, D_in_pad).astype(jnp.bfloat16)

    flat_inputs = [x2d]
    for lp in layers:
        flat_inputs += [lp["w_ih"], lp["w_hh"], lp["b"]]
    flat_inputs += [packed["fc_w"], packed["fc_b"]]

    # Full-array blocks, single grid step; everything fits in VMEM here.
    # TODO(synk): at grid=(1,) default double-buffering of these inputs wastes
    # VMEM; switch to pipeline_mode=pl.Buffered(1) / pl.ANY + manual DMA
    # streaming of per-layer weights once they grow beyond a few MiB.
    in_specs = [pl.BlockSpec(a.shape, lambda i: (0, 0)) for a in flat_inputs]

    scratch_shapes = [
        pltpu.VMEM((S * B_pad, H_pad), jnp.float32),       # layer output sequence
        pltpu.VMEM((S * B_pad, 4 * H_pad), jnp.float32),   # hoisted gates_x
    ]

    # Explicit VMEM budget: resident inputs (x2 for default double-buffering)
    # + scratch + headroom.  TODO(synk): cap at ~48 MiB and time-chunk the
    # scratch on v7x (64 MiB physical VMEM) when shapes grow.
    input_bytes = sum(a.size * a.dtype.itemsize for a in flat_inputs)
    scratch_bytes = S * B_pad * 5 * H_pad * 4
    vmem_limit = int(min(max(2 * input_bytes + scratch_bytes + (4 << 20),
                             32 << 20), 100 << 20))

    kernel = _make_fused_lstm_kernel(S, B_pad, H_pad, layer_num)

    out = pl.pallas_call(
        kernel,
        out_shape=jax.ShapeDtypeStruct((B_pad, O), jnp.float32),
        grid_spec=pltpu.PrefetchScalarGridSpec(
            num_scalar_prefetch=0,
            grid=(1,),
            in_specs=in_specs,
            out_specs=pl.BlockSpec((B_pad, O), lambda i: (0, 0)),
            scratch_shapes=scratch_shapes,
        ),
        compiler_params=pltpu.CompilerParams(
            dimension_semantics=("arbitrary",),
            vmem_limit_bytes=vmem_limit),
    )(*flat_inputs)
    return out[:B]


lstm_forward_jit = jax.jit(lstm_forward)


# ------------------------------- params / ref ----------------------------------
def init_lstm_params(key, input_dim, hidden_dim, output_dim, layer_num):
    """PyTorch-shaped params, uniform(+-1/sqrt(H)) init."""
    params = {"layers": []}
    bound = 1.0 / math.sqrt(hidden_dim)
    for layer in range(layer_num):
        in_dim = input_dim if layer == 0 else hidden_dim
        key, k1, k2, k3, k4 = jax.random.split(key, 5)
        params["layers"].append({
            "w_ih": jax.random.uniform(k1, (4 * hidden_dim, in_dim),
                                       jnp.float32, -bound, bound),
            "w_hh": jax.random.uniform(k2, (4 * hidden_dim, hidden_dim),
                                       jnp.float32, -bound, bound),
            "b_ih": jax.random.uniform(k3, (4 * hidden_dim,),
                                       jnp.float32, -bound, bound),
            "b_hh": jax.random.uniform(k4, (4 * hidden_dim,),
                                       jnp.float32, -bound, bound),
        })
    key, k1, k2 = jax.random.split(key, 3)
    params["fc_w"] = jax.random.uniform(k1, (output_dim, hidden_dim),
                                        jnp.float32, -bound, bound)
    params["fc_b"] = jax.random.uniform(k2, (output_dim,),
                                        jnp.float32, -bound, bound)
    return params


def lstm_forward_ref(params, inputs):
    """Pure-JAX f32 reference (PyTorch gate order i,f,g,o)."""
    hp = jax.lax.Precision.HIGHEST
    B, S, _ = inputs.shape
    hs = inputs
    for lp in params["layers"]:
        H = lp["w_hh"].shape[1]
        b = lp["b_ih"] + lp["b_hh"]
        h = jnp.zeros((B, H), jnp.float32)
        c = jnp.zeros((B, H), jnp.float32)
        outs = []
        for t in range(S):
            g = (jnp.dot(hs[:, t, :], lp["w_ih"].T, precision=hp)
                 + jnp.dot(h, lp["w_hh"].T, precision=hp) + b)
            i_g = jax.nn.sigmoid(g[:, 0 * H:1 * H])
            f_g = jax.nn.sigmoid(g[:, 1 * H:2 * H])
            g_g = jnp.tanh(g[:, 2 * H:3 * H])
            o_g = jax.nn.sigmoid(g[:, 3 * H:4 * H])
            c = f_g * c + i_g * g_g
            h = o_g * jnp.tanh(c)
            outs.append(h)
        hs = jnp.stack(outs, axis=1)
    return jnp.dot(hs[:, -1, :], params["fc_w"].T, precision=hp) + params["fc_b"]


if __name__ == "__main__":
    # Small shapes consistent with the module.
    batch, seq, input_dim = 2, 8, 4
    hidden_dim, output_dim, layer_num = 32, 8, 2

    key = jax.random.PRNGKey(0)
    key, pkey, xkey = jax.random.split(key, 3)
    params = init_lstm_params(pkey, input_dim, hidden_dim, output_dim, layer_num)
    x = jax.random.normal(xkey, (batch, seq, input_dim), jnp.float32)

    packed = pack_params(params)          # one-time pre-packing (not per call)
    out = lstm_forward_jit(packed, x)
    jax.block_until_ready(out)
    assert out.shape == (batch, output_dim), out.shape

    ref = lstm_forward_ref(params, x)
    # Slightly loosened tolerance: kernel uses bf16 MXU operands (f32 accum).
    assert jnp.allclose(out, ref, rtol=2e-2, atol=2e-2), (out, ref)

    print("KERNEL_OK")
</pallas_src>

<mosaic_0001>
module attributes {stable_mosaic.version = 11 : i64} {
  func.func @kernel(%arg0: i32, %arg1: memref<64x128xbf16, #tpu.memory_space<vmem>>, %arg2: memref<128x512xbf16, #tpu.memory_space<vmem>>, %arg3: memref<128x512xbf16, #tpu.memory_space<vmem>>, %arg4: memref<1x512xf32, #tpu.memory_space<vmem>>, %arg5: memref<128x512xbf16, #tpu.memory_space<vmem>>, %arg6: memref<128x512xbf16, #tpu.memory_space<vmem>>, %arg7: memref<1x512xf32, #tpu.memory_space<vmem>>, %arg8: memref<128x8xbf16, #tpu.memory_space<vmem>>, %arg9: memref<1x8xf32, #tpu.memory_space<vmem>>, %arg10: memref<8x8xf32, #tpu.memory_space<vmem>>, %arg11: memref<64x128xf32, #tpu.memory_space<vmem>>, %arg12: memref<64x512xf32, #tpu.memory_space<vmem>>) attributes {dimension_semantics = [#tpu.dimension_semantics<arbitrary>], iteration_bounds = array<i64: 1>, scalar_prefetch = 0 : i64, scratch_operands = 2 : i64, tpu.core_type = #tpu.core_type<tc>, window_params = [{pipeline_mode = #tpu.pipeline_mode<synchronous>, transform_indices = @transform_0, window_bounds = array<i64: 64, 128>}, {pipeline_mode = #tpu.pipeline_mode<synchronous>, transform_indices = @transform_1, window_bounds = array<i64: 128, 512>}, {pipeline_mode = #tpu.pipeline_mode<synchronous>, transform_indices = @transform_2, window_bounds = array<i64: 128, 512>}, {pipeline_mode = #tpu.pipeline_mode<synchronous>, transform_indices = @transform_3, window_bounds = array<i64: 1, 512>}, {pipeline_mode = #tpu.pipeline_mode<synchronous>, transform_indices = @transform_4, window_bounds = array<i64: 128, 512>}, {pipeline_mode = #tpu.pipeline_mode<synchronous>, transform_indices = @transform_5, window_bounds = array<i64: 128, 512>}, {pipeline_mode = #tpu.pipeline_mode<synchronous>, transform_indices = @transform_6, window_bounds = array<i64: 1, 512>}, {pipeline_mode = #tpu.pipeline_mode<synchronous>, transform_indices = @transform_7, window_bounds = array<i64: 128, 8>}, {pipeline_mode = #tpu.pipeline_mode<synchronous>, transform_indices = @transform_8, window_bounds = array<i64: 1, 8>}, {pipeline_mode = #tpu.pipeline_mode<synchronous>, transform_indices = @transform_9, window_bounds = array<i64: 8, 8>}]} {
    %c0 = arith.constant 0 : index
    %c0_0 = arith.constant 0 : index
    %0 = vector.load %arg1[%c0, %c0_0] : memref<64x128xbf16, #tpu.memory_space<vmem>>, vector<64x128xbf16>
    %c0_1 = arith.constant 0 : index
    %c0_2 = arith.constant 0 : index
    %1 = vector.load %arg2[%c0_1, %c0_2] : memref<128x512xbf16, #tpu.memory_space<vmem>>, vector<128x512xbf16>
    %cst = arith.constant dense<0.000000e+00> : vector<64x512xf32>
    %2 = tpu.matmul %0, %1, %cst {dimension_numbers = #tpu.dot_dimension_numbers<[1], [0], [0], [1], [0, 0, 1, 1], [], []>} : vector<64x128xbf16>, vector<128x512xbf16>, vector<64x512xf32> -> vector<64x512xf32>
    %c0_3 = arith.constant 0 : index
    %c0_4 = arith.constant 0 : index
    %3 = vector.load %arg4[%c0_3, %c0_4] : memref<1x512xf32, #tpu.memory_space<vmem>>, vector<1x512xf32>
    %4 = vector.broadcast %3 : vector<1x512xf32> to vector<64x512xf32>
    %5 = arith.addf %2, %4 : vector<64x512xf32>
    %c0_5 = arith.constant 0 : index
    %c0_6 = arith.constant 0 : index
    %6 = vector.load %arg12[%c0_5, %c0_6] : memref<64x512xf32, #tpu.memory_space<vmem>>, vector<64x512xf32>
    tpu.vector_store %arg12[%c0_5, %c0_6], %5 {strides = array<i32>} : memref<64x512xf32, #tpu.memory_space<vmem>>, vector<64x512xf32>,
    %c0_7 = arith.constant 0 : index
    %c0_8 = arith.constant 0 : index
    %7 = vector.load %arg3[%c0_7, %c0_8] : memref<128x512xbf16, #tpu.memory_space<vmem>>, vector<128x512xbf16>
    %cst_9 = arith.constant 0.000000e+00 : f32
    %8 = vector.broadcast %cst_9 : f32 to vector<8x128xf32>
    %cst_10 = arith.constant 0.000000e+00 : f32
    %9 = vector.broadcast %cst_10 : f32 to vector<8x128xf32>
    %c0_i32 = arith.constant 0 : i32
    %c8_i32 = arith.constant 8 : i32
    %10 = arith.muli %c0_i32, %c8_i32 : i32
    %11 = tpu.assume_multiple %10, 8 : i32
    %12 = arith.index_cast %11 : i32 to index
    %c0_11 = arith.constant 0 : index
    %13 = vector.load %arg12[%12, %c0_11] : memref<64x512xf32, #tpu.memory_space<vmem>>, vector<8x512xf32>
    %14 = arith.truncf %8 : vector<8x128xf32> to vector<8x128xbf16>
    %cst_12 = arith.constant dense<0.000000e+00> : vector<8x512xf32>
    %15 = tpu.matmul %14, %7, %cst_12 {dimension_numbers = #tpu.dot_dimension_numbers<[1], [0], [0], [1], [0, 0, 1, 1], [], []>} : vector<8x128xbf16>, vector<128x512xbf16>, vector<8x512xf32> -> vector<8x512xf32>
    %16 = arith.addf %13, %15 : vector<8x512xf32>
    %17 = vector.extract_strided_slice %16 {offsets = [0, 0], sizes = [8, 384], strides = [1, 1]} : vector<8x512xf32> to vector<8x384xf32>
    %cst_13 = arith.constant 5.000000e-01 : f32
    %18 = vector.broadcast %cst_13 : f32 to vector<8x384xf32>
    %19 = arith.mulf %18, %17 : vector<8x384xf32>
    %20 = math.tanh %19 : vector<8x384xf32>
    %cst_14 = arith.constant 5.000000e-01 : f32
    %21 = vector.broadcast %cst_14 : f32 to vector<8x384xf32>
    %22 = arith.mulf %21, %20 : vector<8x384xf32>
    %cst_15 = arith.constant 5.000000e-01 : f32
    %23 = vector.broadcast %cst_15 : f32 to vector<8x384xf32>
    %24 = arith.addf %22, %23 : vector<8x384xf32>
    %25 = vector.extract_strided_slice %24 {offsets = [0, 0], sizes = [8, 128], strides = [1, 1]} : vector<8x384xf32> to vector<8x128xf32>
    %26 = vector.extract_strided_slice %24 {offsets = [0, 128], sizes = [8, 128], strides = [1, 1]} : vector<8x384xf32> to vector<8x128xf32>
    %27 = vector.extract_strided_slice %24 {offsets = [0, 256], sizes = [8, 128], strides = [1, 1]} : vector<8x384xf32> to vector<8x128xf32>
    %28 = vector.extract_strided_slice %16 {offsets = [0, 384], sizes = [8, 128], strides = [1, 1]} : vector<8x512xf32> to vector<8x128xf32>
    %29 = math.tanh %28 : vector<8x128xf32>
    %30 = arith.mulf %26, %9 : vector<8x128xf32>
    %31 = arith.mulf %25, %29 : vector<8x128xf32>
    %32 = arith.addf %30, %31 : vector<8x128xf32>
    %33 = math.tanh %32 : vector<8x128xf32>
    %34 = arith.mulf %27, %33 : vector<8x128xf32>
    %35 = arith.index_cast %11 : i32 to index
    %c0_16 = arith.constant 0 : index
    %36 = vector.load %arg11[%35, %c0_16] : memref<64x128xf32, #tpu.memory_space<vmem>>, vector<8x128xf32>
    tpu.vector_store %arg11[%35, %c0_16], %34 {strides = array<i32>} : memref<64x128xf32, #tpu.memory_space<vmem>>, vector<8x128xf32>,
    %c1_i32 = arith.constant 1 : i32
    %c8_i32_17 = arith.constant 8 : i32
    %37 = arith.muli %c1_i32, %c8_i32_17 : i32
    %38 = tpu.assume_multiple %37, 8 : i32
    %39 = arith.index_cast %38 : i32 to index
    %c0_18 = arith.constant 0 : index
    %40 = vector.load %arg12[%39, %c0_18] : memref<64x512xf32, #tpu.memory_space<vmem>>, vector<8x512xf32>
    %41 = arith.truncf %34 : vector<8x128xf32> to vector<8x128xbf16>
    %cst_19 = arith.constant dense<0.000000e+00> : vector<8x512xf32>
    %42 = tpu.matmul %41, %7, %cst_19 {dimension_numbers = #tpu.dot_dimension_numbers<[1], [0], [0], [1], [0, 0, 1, 1], [], []>} : vector<8x128xbf16>, vector<128x512xbf16>, vector<8x512xf32> -> vector<8x512xf32>
    %43 = arith.addf %40, %42 : vector<8x512xf32>
    %44 = vector.extract_strided_slice %43 {offsets = [0, 0], sizes = [8, 384], strides = [1, 1]} : vector<8x512xf32> to vector<8x384xf32>
    %cst_20 = arith.constant 5.000000e-01 : f32
    %45 = vector.broadcast %cst_20 : f32 to vector<8x384xf32>
    %46 = arith.mulf %45, %44 : vector<8x384xf32>
    %47 = math.tanh %46 : vector<8x384xf32>
    %cst_21 = arith.constant 5.000000e-01 : f32
    %48 = vector.broadcast %cst_21 : f32 to vector<8x384xf32>
    %49 = arith.mulf %48, %47 : vector<8x384xf32>
    %cst_22 = arith.constant 5.000000e-01 : f32
    %50 = vector.broadcast %cst_22 : f32 to vector<8x384xf32>
    %51 = arith.addf %49, %50 : vector<8x384xf32>
    %52 = vector.extract_strided_slice %51 {offsets = [0, 0], sizes = [8, 128], strides = [1, 1]} : vector<8x384xf32> to vector<8x128xf32>
    %53 = vector.extract_strided_slice %51 {offsets = [0, 128], sizes = [8, 128], strides = [1, 1]} : vector<8x384xf32> to vector<8x128xf32>
    %54 = vector.extract_strided_slice %51 {offsets = [0, 256], sizes = [8, 128], strides = [1, 1]} : vector<8x384xf32> to vector<8x128xf32>
    %55 = vector.extract_strided_slice %43 {offsets = [0, 384], sizes = [8, 128], strides = [1, 1]} : vector<8x512xf32> to vector<8x128xf32>
    %56 = math.tanh %55 : vector<8x128xf32>
    %57 = arith.mulf %53, %32 : vector<8x128xf32>
    %58 = arith.mulf %52, %56 : vector<8x128xf32>
    %59 = arith.addf %57, %58 : vector<8x128xf32>
    %60 = math.tanh %59 : vector<8x128xf32>
    %61 = arith.mulf %54, %60 : vector<8x128xf32>
    %62 = arith.index_cast %38 : i32 to index
    %c0_23 = arith.constant 0 : index
    %63 = vector.load %arg11[%62, %c0_23] : memref<64x128xf32, #tpu.memory_space<vmem>>, vector<8x128xf32>
    tpu.vector_store %arg11[%62, %c0_23], %61 {strides = array<i32>} : memref<64x128xf32, #tpu.memory_space<vmem>>, vector<8x128xf32>,
    %c2_i32 = arith.constant 2 : i32
    %c8_i32_24 = arith.constant 8 : i32
    %64 = arith.muli %c2_i32, %c8_i32_24 : i32
    %65 = tpu.assume_multiple %64, 8 : i32
    %66 = arith.index_cast %65 : i32 to index
    %c0_25 = arith.constant 0 : index
    %67 = vector.load %arg12[%66, %c0_25] : memref<64x512xf32, #tpu.memory_space<vmem>>, vector<8x512xf32>
    %68 = arith.truncf %61 : vector<8x128xf32> to vector<8x128xbf16>
    %cst_26 = arith.constant dense<0.000000e+00> : vector<8x512xf32>
    %69 = tpu.matmul %68, %7, %cst_26 {dimension_numbers = #tpu.dot_dimension_numbers<[1], [0], [0], [1], [0, 0, 1, 1], [], []>} : vector<8x128xbf16>, vector<128x512xbf16>, vector<8x512xf32> -> vector<8x512xf32>
    %70 = arith.addf %67, %69 : vector<8x512xf32>
    %71 = vector.extract_strided_slice %70 {offsets = [0, 0], sizes = [8, 384], strides = [1, 1]} : vector<8x512xf32> to vector<8x384xf32>
    %cst_27 = arith.constant 5.000000e-01 : f32
    %72 = vector.broadcast %cst_27 : f32 to vector<8x384xf32>
    %73 = arith.mulf %72, %71 : vector<8x384xf32>
    %74 = math.tanh %73 : vector<8x384xf32>
    %cst_28 = arith.constant 5.000000e-01 : f32
    %75 = vector.broadcast %cst_28 : f32 to vector<8x384xf32>
    %76 = arith.mulf %75, %74 : vector<8x384xf32>
    %cst_29 = arith.constant 5.000000e-01 : f32
    %77 = vector.broadcast %cst_29 : f32 to vector<8x384xf32>
    %78 = arith.addf %76, %77 : vector<8x384xf32>
    %79 = vector.extract_strided_slice %78 {offsets = [0, 0], sizes = [8, 128], strides = [1, 1]} : vector<8x384xf32> to vector<8x128xf32>
    %80 = vector.extract_strided_slice %78 {offsets = [0, 128], sizes = [8, 128], strides = [1, 1]} : vector<8x384xf32> to vector<8x128xf32>
    %81 = vector.extract_strided_slice %78 {offsets = [0, 256], sizes = [8, 128], strides = [1, 1]} : vector<8x384xf32> to vector<8x128xf32>
    %82 = vector.extract_strided_slice %70 {offsets = [0, 384], sizes = [8, 128], strides = [1, 1]} : vector<8x512xf32> to vector<8x128xf32>
    %83 = math.tanh %82 : vector<8x128xf32>
    %84 = arith.mulf %80, %59 : vector<8x128xf32>
    %85 = arith.mulf %79, %83 : vector<8x128xf32>
    %86 = arith.addf %84, %85 : vector<8x128xf32>
    %87 = math.tanh %86 : vector<8x128xf32>
    %88 = arith.mulf %81, %87 : vector<8x128xf32>
    %89 = arith.index_cast %65 : i32 to index
    %c0_30 = arith.constant 0 : index
    %90 = vector.load %arg11[%89, %c0_30] : memref<64x128xf32, #tpu.memory_space<vmem>>, vector<8x128xf32>
    tpu.vector_store %arg11[%89, %c0_30], %88 {strides = array<i32>} : memref<64x128xf32, #tpu.memory_space<vmem>>, vector<8x128xf32>,
    %c3_i32 = arith.constant 3 : i32
    %c8_i32_31 = arith.constant 8 : i32
    %91 = arith.muli %c3_i32, %c8_i32_31 : i32
    %92 = tpu.assume_multiple %91, 8 : i32
    %93 = arith.index_cast %92 : i32 to index
    %c0_32 = arith.constant 0 : index
    %94 = vector.load %arg12[%93, %c0_32] : memref<64x512xf32, #tpu.memory_space<vmem>>, vector<8x512xf32>
    %95 = arith.truncf %88 : vector<8x128xf32> to vector<8x128xbf16>
    %cst_33 = arith.constant dense<0.000000e+00> : vector<8x512xf32>
    %96 = tpu.matmul %95, %7, %cst_33 {dimension_numbers = #tpu.dot_dimension_numbers<[1], [0], [0], [1], [0, 0, 1, 1], [], []>} : vector<8x128xbf16>, vector<128x512xbf16>, vector<8x512xf32> -> vector<8x512xf32>
    %97 = arith.addf %94, %96 : vector<8x512xf32>
    %98 = vector.extract_strided_slice %97 {offsets = [0, 0], sizes = [8, 384], strides = [1, 1]} : vector<8x512xf32> to vector<8x384xf32>
    %cst_34 = arith.constant 5.000000e-01 : f32
    %99 = vector.broadcast %cst_34 : f32 to vector<8x384xf32>
    %100 = arith.mulf %99, %98 : vector<8x384xf32>
    %101 = math.tanh %100 : vector<8x384xf32>
    %cst_35 = arith.constant 5.000000e-01 : f32
    %102 = vector.broadcast %cst_35 : f32 to vector<8x384xf32>
    %103 = arith.mulf %102, %101 : vector<8x384xf32>
    %cst_36 = arith.constant 5.000000e-01 : f32
    %104 = vector.broadcast %cst_36 : f32 to vector<8x384xf32>
    %105 = arith.addf %103, %104 : vector<8x384xf32>
    %106 = vector.extract_strided_slice %105 {offsets = [0, 0], sizes = [8, 128], strides = [1, 1]} : vector<8x384xf32> to vector<8x128xf32>
    %107 = vector.extract_strided_slice %105 {offsets = [0, 128], sizes = [8, 128], strides = [1, 1]} : vector<8x384xf32> to vector<8x128xf32>
    %108 = vector.extract_strided_slice %105 {offsets = [0, 256], sizes = [8, 128], strides = [1, 1]} : vector<8x384xf32> to vector<8x128xf32>
    %109 = vector.extract_strided_slice %97 {offsets = [0, 384], sizes = [8, 128], strides = [1, 1]} : vector<8x512xf32> to vector<8x128xf32>
    %110 = math.tanh %109 : vector<8x128xf32>
    %111 = arith.mulf %107, %86 : vector<8x128xf32>
    %112 = arith.mulf %106, %110 : vector<8x128xf32>
    %113 = arith.addf %111, %112 : vector<8x128xf32>
    %114 = math.tanh %113 : vector<8x128xf32>
    %115 = arith.mulf %108, %114 : vector<8x128xf32>
    %116 = arith.index_cast %92 : i32 to index
    %c0_37 = arith.constant 0 : index
    %117 = vector.load %arg11[%116, %c0_37] : memref<64x128xf32, #tpu.memory_space<vmem>>, vector<8x128xf32>
    tpu.vector_store %arg11[%116, %c0_37], %115 {strides = array<i32>} : memref<64x128xf32, #tpu.memory_space<vmem>>, vector<8x128xf32>,
    %c4_i32 = arith.constant 4 : i32
    %c8_i32_38 = arith.constant 8 : i32
    %118 = arith.muli %c4_i32, %c8_i32_38 : i32
    %119 = tpu.assume_multiple %118, 8 : i32
    %120 = arith.index_cast %119 : i32 to index
    %c0_39 = arith.constant 0 : index
    %121 = vector.load %arg12[%120, %c0_39] : memref<64x512xf32, #tpu.memory_space<vmem>>, vector<8x512xf32>
    %122 = arith.truncf %115 : vector<8x128xf32> to vector<8x128xbf16>
    %cst_40 = arith.constant dense<0.000000e+00> : vector<8x512xf32>
    %123 = tpu.matmul %122, %7, %cst_40 {dimension_numbers = #tpu.dot_dimension_numbers<[1], [0], [0], [1], [0, 0, 1, 1], [], []>} : vector<8x128xbf16>, vector<128x512xbf16>, vector<8x512xf32> -> vector<8x512xf32>
    %124 = arith.addf %121, %123 : vector<8x512xf32>
    %125 = vector.extract_strided_slice %124 {offsets = [0, 0], sizes = [8, 384], strides = [1, 1]} : vector<8x512xf32> to vector<8x384xf32>
    %cst_41 = arith.constant 5.000000e-01 : f32
    %126 = vector.broadcast %cst_41 : f32 to vector<8x384xf32>
    %127 = arith.mulf %126, %125 : vector<8x384xf32>
    %128 = math.tanh %127 : vector<8x384xf32>
    %cst_42 = arith.constant 5.000000e-01 : f32
    %129 = vector.broadcast %cst_42 : f32 to vector<8x384xf32>
    %130 = arith.mulf %129, %128 : vector<8x384xf32>
    %cst_43 = arith.constant 5.000000e-01 : f32
    %131 = vector.broadcast %cst_43 : f32 to vector<8x384xf32>
    %132 = arith.addf %130, %131 : vector<8x384xf32>
    %133 = vector.extract_strided_slice %132 {offsets = [0, 0], sizes = [8, 128], strides = [1, 1]} : vector<8x384xf32> to vector<8x128xf32>
    %134 = vector.extract_strided_slice %132 {offsets = [0, 128], sizes = [8, 128], strides = [1, 1]} : vector<8x384xf32> to vector<8x128xf32>
    %135 = vector.extract_strided_slice %132 {offsets = [0, 256], sizes = [8, 128], strides = [1, 1]} : vector<8x384xf32> to vector<8x128xf32>
    %136 = vector.extract_strided_slice %124 {offsets = [0, 384], sizes = [8, 128], strides = [1, 1]} : vector<8x512xf32> to vector<8x128xf32>
    %137 = math.tanh %136 : vector<8x128xf32>
    %138 = arith.mulf %134, %113 : vector<8x128xf32>
    %139 = arith.mulf %133, %137 : vector<8x128xf32>
    %140 = arith.addf %138, %139 : vector<8x128xf32>
    %141 = math.tanh %140 : vector<8x128xf32>
    %142 = arith.mulf %135, %141 : vector<8x128xf32>
    %143 = arith.index_cast %119 : i32 to index
    %c0_44 = arith.constant 0 : index
    %144 = vector.load %arg11[%143, %c0_44] : memref<64x128xf32, #tpu.memory_space<vmem>>, vector<8x128xf32>
    tpu.vector_store %arg11[%143, %c0_44], %142 {strides = array<i32>} : memref<64x128xf32, #tpu.memory_space<vmem>>, vector<8x128xf32>,
    %c5_i32 = arith.constant 5 : i32
    %c8_i32_45 = arith.constant 8 : i32
    %145 = arith.muli %c5_i32, %c8_i32_45 : i32
    %146 = tpu.assume_multiple %145, 8 : i32
    %147 = arith.index_cast %146 : i32 to index
    %c0_46 = arith.constant 0 : index
    %148 = vector.load %arg12[%147, %c0_46] : memref<64x512xf32, #tpu.memory_space<vmem>>, vector<8x512xf32>
    %149 = arith.truncf %142 : vector<8x128xf32> to vector<8x128xbf16>
    %cst_47 = arith.constant dense<0.000000e+00> : vector<8x512xf32>
    %150 = tpu.matmul %149, %7, %cst_47 {dimension_numbers = #tpu.dot_dimension_numbers<[1], [0], [0], [1], [0, 0, 1, 1], [], []>} : vector<8x128xbf16>, vector<128x512xbf16>, vector<8x512xf32> -> vector<8x512xf32>
    %151 = arith.addf %148, %150 : vector<8x512xf32>
    %152 = vector.extract_strided_slice %151 {offsets = [0, 0], sizes = [8, 384], strides = [1, 1]} : vector<8x512xf32> to vector<8x384xf32>
    %cst_48 = arith.constant 5.000000e-01 : f32
    %153 = vector.broadcast %cst_48 : f32 to vector<8x384xf32>
    %154 = arith.mulf %153, %152 : vector<8x384xf32>
    %155 = math.tanh %154 : vector<8x384xf32>
    %cst_49 = arith.constant 5.000000e-01 : f32
    %156 = vector.broadcast %cst_49 : f32 to vector<8x384xf32>
    %157 = arith.mulf %156, %155 : vector<8x384xf32>
    %cst_50 = arith.constant 5.000000e-01 : f32
    %158 = vector.broadcast %cst_50 : f32 to vector<8x384xf32>
    %159 = arith.addf %157, %158 : vector<8x384xf32>
    %160 = vector.extract_strided_slice %159 {offsets = [0, 0], sizes = [8, 128], strides = [1, 1]} : vector<8x384xf32> to vector<8x128xf32>
    %161 = vector.extract_strided_slice %159 {offsets = [0, 128], sizes = [8, 128], strides = [1, 1]} : vector<8x384xf32> to vector<8x128xf32>
    %162 = vector.extract_strided_slice %159 {offsets = [0, 256], sizes = [8, 128], strides = [1, 1]} : vector<8x384xf32> to vector<8x128xf32>
    %163 = vector.extract_strided_slice %151 {offsets = [0, 384], sizes = [8, 128], strides = [1, 1]} : vector<8x512xf32> to vector<8x128xf32>
    %164 = math.tanh %163 : vector<8x128xf32>
    %165 = arith.mulf %161, %140 : vector<8x128xf32>
    %166 = arith.mulf %160, %164 : vector<8x128xf32>
    %167 = arith.addf %165, %166 : vector<8x128xf32>
    %168 = math.tanh %167 : vector<8x128xf32>
    %169 = arith.mulf %162, %168 : vector<8x128xf32>
    %170 = arith.index_cast %146 : i32 to index
    %c0_51 = arith.constant 0 : index
    %171 = vector.load %arg11[%170, %c0_51] : memref<64x128xf32, #tpu.memory_space<vmem>>, vector<8x128xf32>
    tpu.vector_store %arg11[%170, %c0_51], %169 {strides = array<i32>} : memref<64x128xf32, #tpu.memory_space<vmem>>, vector<8x128xf32>,
    %c6_i32 = arith.constant 6 : i32
    %c8_i32_52 = arith.constant 8 : i32
    %172 = arith.muli %c6_i32, %c8_i32_52 : i32
    %173 = tpu.assume_multiple %172, 8 : i32
    %174 = arith.index_cast %173 : i32 to index
    %c0_53 = arith.constant 0 : index
    %175 = vector.load %arg12[%174, %c0_53] : memref<64x512xf32, #tpu.memory_space<vmem>>, vector<8x512xf32>
    %176 = arith.truncf %169 : vector<8x128xf32> to vector<8x128xbf16>
    %cst_54 = arith.constant dense<0.000000e+00> : vector<8x512xf32>
    %177 = tpu.matmul %176, %7, %cst_54 {dimension_numbers = #tpu.dot_dimension_numbers<[1], [0], [0], [1], [0, 0, 1, 1], [], []>} : vector<8x128xbf16>, vector<128x512xbf16>, vector<8x512xf32> -> vector<8x512xf32>
    %178 = arith.addf %175, %177 : vector<8x512xf32>
    %179 = vector.extract_strided_slice %178 {offsets = [0, 0], sizes = [8, 384], strides = [1, 1]} : vector<8x512xf32> to vector<8x384xf32>
    %cst_55 = arith.constant 5.000000e-01 : f32
    %180 = vector.broadcast %cst_55 : f32 to vector<8x384xf32>
    %181 = arith.mulf %180, %179 : vector<8x384xf32>
    %182 = math.tanh %181 : vector<8x384xf32>
    %cst_56 = arith.constant 5.000000e-01 : f32
    %183 = vector.broadcast %cst_56 : f32 to vector<8x384xf32>
    %184 = arith.mulf %183, %182 : vector<8x384xf32>
    %cst_57 = arith.constant 5.000000e-01 : f32
    %185 = vector.broadcast %cst_57 : f32 to vector<8x384xf32>
    %186 = arith.addf %184, %185 : vector<8x384xf32>
    %187 = vector.extract_strided_slice %186 {offsets = [0, 0], sizes = [8, 128], strides = [1, 1]} : vector<8x384xf32> to vector<8x128xf32>
    %188 = vector.extract_strided_slice %186 {offsets = [0, 128], sizes = [8, 128], strides = [1, 1]} : vector<8x384xf32> to vector<8x128xf32>
    %189 = vector.extract_strided_slice %186 {offsets = [0, 256], sizes = [8, 128], strides = [1, 1]} : vector<8x384xf32> to vector<8x128xf32>
    %190 = vector.extract_strided_slice %178 {offsets = [0, 384], sizes = [8, 128], strides = [1, 1]} : vector<8x512xf32> to vector<8x128xf32>
    %191 = math.tanh %190 : vector<8x128xf32>
    %192 = arith.mulf %188, %167 : vector<8x128xf32>
    %193 = arith.mulf %187, %191 : vector<8x128xf32>
    %194 = arith.addf %192, %193 : vector<8x128xf32>
    %195 = math.tanh %194 : vector<8x128xf32>
    %196 = arith.mulf %189, %195 : vector<8x128xf32>
    %197 = arith.index_cast %173 : i32 to index
    %c0_58 = arith.constant 0 : index
    %198 = vector.load %arg11[%197, %c0_58] : memref<64x128xf32, #tpu.memory_space<vmem>>, vector<8x128xf32>
    tpu.vector_store %arg11[%197, %c0_58], %196 {strides = array<i32>} : memref<64x128xf32, #tpu.memory_space<vmem>>, vector<8x128xf32>,
    %c7_i32 = arith.constant 7 : i32
    %c8_i32_59 = arith.constant 8 : i32
    %199 = arith.muli %c7_i32, %c8_i32_59 : i32
    %200 = tpu.assume_multiple %199, 8 : i32
    %201 = arith.index_cast %200 : i32 to index
    %c0_60 = arith.constant 0 : index
    %202 = vector.load %arg12[%201, %c0_60] : memref<64x512xf32, #tpu.memory_space<vmem>>, vector<8x512xf32>
    %203 = arith.truncf %196 : vector<8x128xf32> to vector<8x128xbf16>
    %cst_61 = arith.constant dense<0.000000e+00> : vector<8x512xf32>
    %204 = tpu.matmul %203, %7, %cst_61 {dimension_numbers = #tpu.dot_dimension_numbers<[1], [0], [0], [1], [0, 0, 1, 1], [], []>} : vector<8x128xbf16>, vector<128x512xbf16>, vector<8x512xf32> -> vector<8x512xf32>
    %205 = arith.addf %202, %204 : vector<8x512xf32>
    %206 = vector.extract_strided_slice %205 {offsets = [0, 0], sizes = [8, 384], strides = [1, 1]} : vector<8x512xf32> to vector<8x384xf32>
    %cst_62 = arith.constant 5.000000e-01 : f32
    %207 = vector.broadcast %cst_62 : f32 to vector<8x384xf32>
    %208 = arith.mulf %207, %206 : vector<8x384xf32>
    %209 = math.tanh %208 : vector<8x384xf32>
    %cst_63 = arith.constant 5.000000e-01 : f32
    %210 = vector.broadcast %cst_63 : f32 to vector<8x384xf32>
    %211 = arith.mulf %210, %209 : vector<8x384xf32>
    %cst_64 = arith.constant 5.000000e-01 : f32
    %212 = vector.broadcast %cst_64 : f32 to vector<8x384xf32>
    %213 = arith.addf %211, %212 : vector<8x384xf32>
    %214 = vector.extract_strided_slice %213 {offsets = [0, 0], sizes = [8, 128], strides = [1, 1]} : vector<8x384xf32> to vector<8x128xf32>
    %215 = vector.extract_strided_slice %213 {offsets = [0, 128], sizes = [8, 128], strides = [1, 1]} : vector<8x384xf32> to vector<8x128xf32>
    %216 = vector.extract_strided_slice %213 {offsets = [0, 256], sizes = [8, 128], strides = [1, 1]} : vector<8x384xf32> to vector<8x128xf32>
    %217 = vector.extract_strided_slice %205 {offsets = [0, 384], sizes = [8, 128], strides = [1, 1]} : vector<8x512xf32> to vector<8x128xf32>
    %218 = math.tanh %217 : vector<8x128xf32>
    %219 = arith.mulf %215, %194 : vector<8x128xf32>
    %220 = arith.mulf %214, %218 : vector<8x128xf32>
    %221 = arith.addf %219, %220 : vector<8x128xf32>
    %222 = math.tanh %221 : vector<8x128xf32>
    %223 = arith.mulf %216, %222 : vector<8x128xf32>
    %224 = arith.index_cast %200 : i32 to index
    %c0_65 = arith.constant 0 : index
    %225 = vector.load %arg11[%224, %c0_65] : memref<64x128xf32, #tpu.memory_space<vmem>>, vector<8x128xf32>
    tpu.vector_store %arg11[%224, %c0_65], %223 {strides = array<i32>} : memref<64x128xf32, #tpu.memory_space<vmem>>, vector<8x128xf32>,
    %c8_i32_66 = arith.constant 8 : i32
    %c0_67 = arith.constant 0 : index
    %c0_68 = arith.constant 0 : index
    %226 = vector.load %arg11[%c0_67, %c0_68] : memref<64x128xf32, #tpu.memory_space<vmem>>, vector<64x128xf32>
    %227 = arith.truncf %226 : vector<64x128xf32> to vector<64x128xbf16>
    %c0_69 = arith.constant 0 : index
    %c0_70 = arith.constant 0 : index
    %228 = vector.load %arg5[%c0_69, %c0_70] : memref<128x512xbf16, #tpu.memory_space<vmem>>, vector<128x512xbf16>
    %cst_71 = arith.constant dense<0.000000e+00> : vector<64x512xf32>
    %229 = tpu.matmul %227, %228, %cst_71 {dimension_numbers = #tpu.dot_dimension_numbers<[1], [0], [0], [1], [0, 0, 1, 1], [], []>} : vector<64x128xbf16>, vector<128x512xbf16>, vector<64x512xf32> -> vector<64x512xf32>
    %c0_72 = arith.constant 0 : index
    %c0_73 = arith.constant 0 : index
    %230 = vector.load %arg7[%c0_72, %c0_73] : memref<1x512xf32, #tpu.memory_space<vmem>>, vector<1x512xf32>
    %231 = vector.broadcast %230 : vector<1x512xf32> to vector<64x512xf32>
    %232 = arith.addf %229, %231 : vector<64x512xf32>
    %c0_74 = arith.constant 0 : index
    %c0_75 = arith.constant 0 : index
    %233 = vector.load %arg12[%c0_74, %c0_75] : memref<64x512xf32, #tpu.memory_space<vmem>>, vector<64x512xf32>
    tpu.vector_store %arg12[%c0_74, %c0_75], %232 {strides = array<i32>} : memref<64x512xf32, #tpu.memory_space<vmem>>, vector<64x512xf32>,
    %c0_76 = arith.constant 0 : index
    %c0_77 = arith.constant 0 : index
    %234 = vector.load %arg6[%c0_76, %c0_77] : memref<128x512xbf16, #tpu.memory_space<vmem>>, vector<128x512xbf16>
    %cst_78 = arith.constant 0.000000e+00 : f32
    %235 = vector.broadcast %cst_78 : f32 to vector<8x128xf32>
    %cst_79 = arith.constant 0.000000e+00 : f32
    %236 = vector.broadcast %cst_79 : f32 to vector<8x128xf32>
    %c0_i32_80 = arith.constant 0 : i32
    %c8_i32_81 = arith.constant 8 : i32
    %237 = arith.muli %c0_i32_80, %c8_i32_81 : i32
    %238 = tpu.assume_multiple %237, 8 : i32
    %239 = arith.index_cast %238 : i32 to index
    %c0_82 = arith.constant 0 : index
    %240 = vector.load %arg12[%239, %c0_82] : memref<64x512xf32, #tpu.memory_space<vmem>>, vector<8x512xf32>
    %241 = arith.truncf %235 : vector<8x128xf32> to vector<8x128xbf16>
    %cst_83 = arith.constant dense<0.000000e+00> : vector<8x512xf32>
    %242 = tpu.matmul %241, %234, %cst_83 {dimension_numbers = #tpu.dot_dimension_numbers<[1], [0], [0], [1], [0, 0, 1, 1], [], []>} : vector<8x128xbf16>, vector<128x512xbf16>, vector<8x512xf32> -> vector<8x512xf32>
    %243 = arith.addf %240, %242 : vector<8x512xf32>
    %244 = vector.extract_strided_slice %243 {offsets = [0, 0], sizes = [8, 384], strides = [1, 1]} : vector<8x512xf32> to vector<8x384xf32>
    %cst_84 = arith.constant 5.000000e-01 : f32
    %245 = vector.broadcast %cst_84 : f32 to vector<8x384xf32>
    %246 = arith.mulf %245, %244 : vector<8x384xf32>
    %247 = math.tanh %246 : vector<8x384xf32>
    %cst_85 = arith.constant 5.000000e-01 : f32
    %248 = vector.broadcast %cst_85 : f32 to vector<8x384xf32>
    %249 = arith.mulf %248, %247 : vector<8x384xf32>
    %cst_86 = arith.constant 5.000000e-01 : f32
    %250 = vector.broadcast %cst_86 : f32 to vector<8x384xf32>
    %251 = arith.addf %249, %250 : vector<8x384xf32>
    %252 = vector.extract_strided_slice %251 {offsets = [0, 0], sizes = [8, 128], strides = [1, 1]} : vector<8x384xf32> to vector<8x128xf32>
    %253 = vector.extract_strided_slice %251 {offsets = [0, 128], sizes = [8, 128], strides = [1, 1]} : vector<8x384xf32> to vector<8x128xf32>
    %254 = vector.extract_strided_slice %251 {offsets = [0, 256], sizes = [8, 128], strides = [1, 1]} : vector<8x384xf32> to vector<8x128xf32>
    %255 = vector.extract_strided_slice %243 {offsets = [0, 384], sizes = [8, 128], strides = [1, 1]} : vector<8x512xf32> to vector<8x128xf32>
    %256 = math.tanh %255 : vector<8x128xf32>
    %257 = arith.mulf %253, %236 : vector<8x128xf32>
    %258 = arith.mulf %252, %256 : vector<8x128xf32>
    %259 = arith.addf %257, %258 : vector<8x128xf32>
    %260 = math.tanh %259 : vector<8x128xf32>
    %261 = arith.mulf %254, %260 : vector<8x128xf32>
    %c1_i32_87 = arith.constant 1 : i32
    %c8_i32_88 = arith.constant 8 : i32
    %262 = arith.muli %c1_i32_87, %c8_i32_88 : i32
    %263 = tpu.assume_multiple %262, 8 : i32
    %264 = arith.index_cast %263 : i32 to index
    %c0_89 = arith.constant 0 : index
    %265 = vector.load %arg12[%264, %c0_89] : memref<64x512xf32, #tpu.memory_space<vmem>>, vector<8x512xf32>
    %266 = arith.truncf %261 : vector<8x128xf32> to vector<8x128xbf16>
    %cst_90 = arith.constant dense<0.000000e+00> : vector<8x512xf32>
    %267 = tpu.matmul %266, %234, %cst_90 {dimension_numbers = #tpu.dot_dimension_numbers<[1], [0], [0], [1], [0, 0, 1, 1], [], []>} : vector<8x128xbf16>, vector<128x512xbf16>, vector<8x512xf32> -> vector<8x512xf32>
    %268 = arith.addf %265, %267 : vector<8x512xf32>
    %269 = vector.extract_strided_slice %268 {offsets = [0, 0], sizes = [8, 384], strides = [1, 1]} : vector<8x512xf32> to vector<8x384xf32>
    %cst_91 = arith.constant 5.000000e-01 : f32
    %270 = vector.broadcast %cst_91 : f32 to vector<8x384xf32>
    %271 = arith.mulf %270, %269 : vector<8x384xf32>
    %272 = math.tanh %271 : vector<8x384xf32>
    %cst_92 = arith.constant 5.000000e-01 : f32
    %273 = vector.broadcast %cst_92 : f32 to vector<8x384xf32>
    %274 = arith.mulf %273, %272 : vector<8x384xf32>
    %cst_93 = arith.constant 5.000000e-01 : f32
    %275 = vector.broadcast %cst_93 : f32 to vector<8x384xf32>
    %276 = arith.addf %274, %275 : vector<8x384xf32>
    %277 = vector.extract_strided_slice %276 {offsets = [0, 0], sizes = [8, 128], strides = [1, 1]} : vector<8x384xf32> to vector<8x128xf32>
    %278 = vector.extract_strided_slice %276 {offsets = [0, 128], sizes = [8, 128], strides = [1, 1]} : vector<8x384xf32> to vector<8x128xf32>
    %279 = vector.extract_strided_slice %276 {offsets = [0, 256], sizes = [8, 128], strides = [1, 1]} : vector<8x384xf32> to vector<8x128xf32>
    %280 = vector.extract_strided_slice %268 {offsets = [0, 384], sizes = [8, 128], strides = [1, 1]} : vector<8x512xf32> to vector<8x128xf32>
    %281 = math.tanh %280 : vector<8x128xf32>
    %282 = arith.mulf %278, %259 : vector<8x128xf32>
    %283 = arith.mulf %277, %281 : vector<8x128xf32>
    %284 = arith.addf %282, %283 : vector<8x128xf32>
    %285 = math.tanh %284 : vector<8x128xf32>
    %286 = arith.mulf %279, %285 : vector<8x128xf32>
    %c2_i32_94 = arith.constant 2 : i32
    %c8_i32_95 = arith.constant 8 : i32
    %287 = arith.muli %c2_i32_94, %c8_i32_95 : i32
    %288 = tpu.assume_multiple %287, 8 : i32
    %289 = arith.index_cast %288 : i32 to index
    %c0_96 = arith.constant 0 : index
    %290 = vector.load %arg12[%289, %c0_96] : memref<64x512xf32, #tpu.memory_space<vmem>>, vector<8x512xf32>
    %291 = arith.truncf %286 : vector<8x128xf32> to vector<8x128xbf16>
    %cst_97 = arith.constant dense<0.000000e+00> : vector<8x512xf32>
    %292 = tpu.matmul %291, %234, %cst_97 {dimension_numbers = #tpu.dot_dimension_numbers<[1], [0], [0], [1], [0, 0, 1, 1], [], []>} : vector<8x128xbf16>, vector<128x512xbf16>, vector<8x512xf32> -> vector<8x512xf32>
    %293 = arith.addf %290, %292 : vector<8x512xf32>
    %294 = vector.extract_strided_slice %293 {offsets = [0, 0], sizes = [8, 384], strides = [1, 1]} : vector<8x512xf32> to vector<8x384xf32>
    %cst_98 = arith.constant 5.000000e-01 : f32
    %295 = vector.broadcast %cst_98 : f32 to vector<8x384xf32>
    %296 = arith.mulf %295, %294 : vector<8x384xf32>
    %297 = math.tanh %296 : vector<8x384xf32>
    %cst_99 = arith.constant 5.000000e-01 : f32
    %298 = vector.broadcast %cst_99 : f32 to vector<8x384xf32>
    %299 = arith.mulf %298, %297 : vector<8x384xf32>
    %cst_100 = arith.constant 5.000000e-01 : f32
    %300 = vector.broadcast %cst_100 : f32 to vector<8x384xf32>
    %301 = arith.addf %299, %300 : vector<8x384xf32>
    %302 = vector.extract_strided_slice %301 {offsets = [0, 0], sizes = [8, 128], strides = [1, 1]} : vector<8x384xf32> to vector<8x128xf32>
    %303 = vector.extract_strided_slice %301 {offsets = [0, 128], sizes = [8, 128], strides = [1, 1]} : vector<8x384xf32> to vector<8x128xf32>
    %304 = vector.extract_strided_slice %301 {offsets = [0, 256], sizes = [8, 128], strides = [1, 1]} : vector<8x384xf32> to vector<8x128xf32>
    %305 = vector.extract_strided_slice %293 {offsets = [0, 384], sizes = [8, 128], strides = [1, 1]} : vector<8x512xf32> to vector<8x128xf32>
    %306 = math.tanh %305 : vector<8x128xf32>
    %307 = arith.mulf %303, %284 : vector<8x128xf32>
    %308 = arith.mulf %302, %306 : vector<8x128xf32>
    %309 = arith.addf %307, %308 : vector<8x128xf32>
    %310 = math.tanh %309 : vector<8x128xf32>
    %311 = arith.mulf %304, %310 : vector<8x128xf32>
    %c3_i32_101 = arith.constant 3 : i32
    %c8_i32_102 = arith.constant 8 : i32
    %312 = arith.muli %c3_i32_101, %c8_i32_102 : i32
    %313 = tpu.assume_multiple %312, 8 : i32
    %314 = arith.index_cast %313 : i32 to index
    %c0_103 = arith.constant 0 : index
    %315 = vector.load %arg12[%314, %c0_103] : memref<64x512xf32, #tpu.memory_space<vmem>>, vector<8x512xf32>
    %316 = arith.truncf %311 : vector<8x128xf32> to vector<8x128xbf16>
    %cst_104 = arith.constant dense<0.000000e+00> : vector<8x512xf32>
    %317 = tpu.matmul %316, %234, %cst_104 {dimension_numbers = #tpu.dot_dimension_numbers<[1], [0], [0], [1], [0, 0, 1, 1], [], []>} : vector<8x128xbf16>, vector<128x512xbf16>, vector<8x512xf32> -> vector<8x512xf32>
    %318 = arith.addf %315, %317 : vector<8x512xf32>
    %319 = vector.extract_strided_slice %318 {offsets = [0, 0], sizes = [8, 384], strides = [1, 1]} : vector<8x512xf32> to vector<8x384xf32>
    %cst_105 = arith.constant 5.000000e-01 : f32
    %320 = vector.broadcast %cst_105 : f32 to vector<8x384xf32>
    %321 = arith.mulf %320, %319 : vector<8x384xf32>
    %322 = math.tanh %321 : vector<8x384xf32>
    %cst_106 = arith.constant 5.000000e-01 : f32
    %323 = vector.broadcast %cst_106 : f32 to vector<8x384xf32>
    %324 = arith.mulf %323, %322 : vector<8x384xf32>
    %cst_107 = arith.constant 5.000000e-01 : f32
    %325 = vector.broadcast %cst_107 : f32 to vector<8x384xf32>
    %326 = arith.addf %324, %325 : vector<8x384xf32>
    %327 = vector.extract_strided_slice %326 {offsets = [0, 0], sizes = [8, 128], strides = [1, 1]} : vector<8x384xf32> to vector<8x128xf32>
    %328 = vector.extract_strided_slice %326 {offsets = [0, 128], sizes = [8, 128], strides = [1, 1]} : vector<8x384xf32> to vector<8x128xf32>
    %329 = vector.extract_strided_slice %326 {offsets = [0, 256], sizes = [8, 128], strides = [1, 1]} : vector<8x384xf32> to vector<8x128xf32>
    %330 = vector.extract_strided_slice %318 {offsets = [0, 384], sizes = [8, 128], strides = [1, 1]} : vector<8x512xf32> to vector<8x128xf32>
    %331 = math.tanh %330 : vector<8x128xf32>
    %332 = arith.mulf %328, %309 : vector<8x128xf32>
    %333 = arith.mulf %327, %331 : vector<8x128xf32>
    %334 = arith.addf %332, %333 : vector<8x128xf32>
    %335 = math.tanh %334 : vector<8x128xf32>
    %336 = arith.mulf %329, %335 : vector<8x128xf32>
    %c4_i32_108 = arith.constant 4 : i32
    %c8_i32_109 = arith.constant 8 : i32
    %337 = arith.muli %c4_i32_108, %c8_i32_109 : i32
    %338 = tpu.assume_multiple %337, 8 : i32
    %339 = arith.index_cast %338 : i32 to index
    %c0_110 = arith.constant 0 : index
    %340 = vector.load %arg12[%339, %c0_110] : memref<64x512xf32, #tpu.memory_space<vmem>>, vector<8x512xf32>
    %341 = arith.truncf %336 : vector<8x128xf32> to vector<8x128xbf16>
    %cst_111 = arith.constant dense<0.000000e+00> : vector<8x512xf32>
    %342 = tpu.matmul %341, %234, %cst_111 {dimension_numbers = #tpu.dot_dimension_numbers<[1], [0], [0], [1], [0, 0, 1, 1], [], []>} : vector<8x128xbf16>, vector<128x512xbf16>, vector<8x512xf32> -> vector<8x512xf32>
    %343 = arith.addf %340, %342 : vector<8x512xf32>
    %344 = vector.extract_strided_slice %343 {offsets = [0, 0], sizes = [8, 384], strides = [1, 1]} : vector<8x512xf32> to vector<8x384xf32>
    %cst_112 = arith.constant 5.000000e-01 : f32
    %345 = vector.broadcast %cst_112 : f32 to vector<8x384xf32>
    %346 = arith.mulf %345, %344 : vector<8x384xf32>
    %347 = math.tanh %346 : vector<8x384xf32>
    %cst_113 = arith.constant 5.000000e-01 : f32
    %348 = vector.broadcast %cst_113 : f32 to vector<8x384xf32>
    %349 = arith.mulf %348, %347 : vector<8x384xf32>
    %cst_114 = arith.constant 5.000000e-01 : f32
    %350 = vector.broadcast %cst_114 : f32 to vector<8x384xf32>
    %351 = arith.addf %349, %350 : vector<8x384xf32>
    %352 = vector.extract_strided_slice %351 {offsets = [0, 0], sizes = [8, 128], strides = [1, 1]} : vector<8x384xf32> to vector<8x128xf32>
    %353 = vector.extract_strided_slice %351 {offsets = [0, 128], sizes = [8, 128], strides = [1, 1]} : vector<8x384xf32> to vector<8x128xf32>
    %354 = vector.extract_strided_slice %351 {offsets = [0, 256], sizes = [8, 128], strides = [1, 1]} : vector<8x384xf32> to vector<8x128xf32>
    %355 = vector.extract_strided_slice %343 {offsets = [0, 384], sizes = [8, 128], strides = [1, 1]} : vector<8x512xf32> to vector<8x128xf32>
    %356 = math.tanh %355 : vector<8x128xf32>
    %357 = arith.mulf %353, %334 : vector<8x128xf32>
    %358 = arith.mulf %352, %356 : vector<8x128xf32>
    %359 = arith.addf %357, %358 : vector<8x128xf32>
    %360 = math.tanh %359 : vector<8x128xf32>
    %361 = arith.mulf %354, %360 : vector<8x128xf32>
    %c5_i32_115 = arith.constant 5 : i32
    %c8_i32_116 = arith.constant 8 : i32
    %362 = arith.muli %c5_i32_115, %c8_i32_116 : i32
    %363 = tpu.assume_multiple %362, 8 : i32
    %364 = arith.index_cast %363 : i32 to index
    %c0_117 = arith.constant 0 : index
    %365 = vector.load %arg12[%364, %c0_117] : memref<64x512xf32, #tpu.memory_space<vmem>>, vector<8x512xf32>
    %366 = arith.truncf %361 : vector<8x128xf32> to vector<8x128xbf16>
    %cst_118 = arith.constant dense<0.000000e+00> : vector<8x512xf32>
    %367 = tpu.matmul %366, %234, %cst_118 {dimension_numbers = #tpu.dot_dimension_numbers<[1], [0], [0], [1], [0, 0, 1, 1], [], []>} : vector<8x128xbf16>, vector<128x512xbf16>, vector<8x512xf32> -> vector<8x512xf32>
    %368 = arith.addf %365, %367 : vector<8x512xf32>
    %369 = vector.extract_strided_slice %368 {offsets = [0, 0], sizes = [8, 384], strides = [1, 1]} : vector<8x512xf32> to vector<8x384xf32>
    %cst_119 = arith.constant 5.000000e-01 : f32
    %370 = vector.broadcast %cst_119 : f32 to vector<8x384xf32>
    %371 = arith.mulf %370, %369 : vector<8x384xf32>
    %372 = math.tanh %371 : vector<8x384xf32>
    %cst_120 = arith.constant 5.000000e-01 : f32
    %373 = vector.broadcast %cst_120 : f32 to vector<8x384xf32>
    %374 = arith.mulf %373, %372 : vector<8x384xf32>
    %cst_121 = arith.constant 5.000000e-01 : f32
    %375 = vector.broadcast %cst_121 : f32 to vector<8x384xf32>
    %376 = arith.addf %374, %375 : vector<8x384xf32>
    %377 = vector.extract_strided_slice %376 {offsets = [0, 0], sizes = [8, 128], strides = [1, 1]} : vector<8x384xf32> to vector<8x128xf32>
    %378 = vector.extract_strided_slice %376 {offsets = [0, 128], sizes = [8, 128], strides = [1, 1]} : vector<8x384xf32> to vector<8x128xf32>
    %379 = vector.extract_strided_slice %376 {offsets = [0, 256], sizes = [8, 128], strides = [1, 1]} : vector<8x384xf32> to vector<8x128xf32>
    %380 = vector.extract_strided_slice %368 {offsets = [0, 384], sizes = [8, 128], strides = [1, 1]} : vector<8x512xf32> to vector<8x128xf32>
    %381 = math.tanh %380 : vector<8x128xf32>
    %382 = arith.mulf %378, %359 : vector<8x128xf32>
    %383 = arith.mulf %377, %381 : vector<8x128xf32>
    %384 = arith.addf %382, %383 : vector<8x128xf32>
    %385 = math.tanh %384 : vector<8x128xf32>
    %386 = arith.mulf %379, %385 : vector<8x128xf32>
    %c6_i32_122 = arith.constant 6 : i32
    %c8_i32_123 = arith.constant 8 : i32
    %387 = arith.muli %c6_i32_122, %c8_i32_123 : i32
    %388 = tpu.assume_multiple %387, 8 : i32
    %389 = arith.index_cast %388 : i32 to index
    %c0_124 = arith.constant 0 : index
    %390 = vector.load %arg12[%389, %c0_124] : memref<64x512xf32, #tpu.memory_space<vmem>>, vector<8x512xf32>
    %391 = arith.truncf %386 : vector<8x128xf32> to vector<8x128xbf16>
    %cst_125 = arith.constant dense<0.000000e+00> : vector<8x512xf32>
    %392 = tpu.matmul %391, %234, %cst_125 {dimension_numbers = #tpu.dot_dimension_numbers<[1], [0], [0], [1], [0, 0, 1, 1], [], []>} : vector<8x128xbf16>, vector<128x512xbf16>, vector<8x512xf32> -> vector<8x512xf32>
    %393 = arith.addf %390, %392 : vector<8x512xf32>
    %394 = vector.extract_strided_slice %393 {offsets = [0, 0], sizes = [8, 384], strides = [1, 1]} : vector<8x512xf32> to vector<8x384xf32>
    %cst_126 = arith.constant 5.000000e-01 : f32
    %395 = vector.broadcast %cst_126 : f32 to vector<8x384xf32>
    %396 = arith.mulf %395, %394 : vector<8x384xf32>
    %397 = math.tanh %396 : vector<8x384xf32>
    %cst_127 = arith.constant 5.000000e-01 : f32
    %398 = vector.broadcast %cst_127 : f32 to vector<8x384xf32>
    %399 = arith.mulf %398, %397 : vector<8x384xf32>
    %cst_128 = arith.constant 5.000000e-01 : f32
    %400 = vector.broadcast %cst_128 : f32 to vector<8x384xf32>
    %401 = arith.addf %399, %400 : vector<8x384xf32>
    %402 = vector.extract_strided_slice %401 {offsets = [0, 0], sizes = [8, 128], strides = [1, 1]} : vector<8x384xf32> to vector<8x128xf32>
    %403 = vector.extract_strided_slice %401 {offsets = [0, 128], sizes = [8, 128], strides = [1, 1]} : vector<8x384xf32> to vector<8x128xf32>
    %404 = vector.extract_strided_slice %401 {offsets = [0, 256], sizes = [8, 128], strides = [1, 1]} : vector<8x384xf32> to vector<8x128xf32>
    %405 = vector.extract_strided_slice %393 {offsets = [0, 384], sizes = [8, 128], strides = [1, 1]} : vector<8x512xf32> to vector<8x128xf32>
    %406 = math.tanh %405 : vector<8x128xf32>
    %407 = arith.mulf %403, %384 : vector<8x128xf32>
    %408 = arith.mulf %402, %406 : vector<8x128xf32>
    %409 = arith.addf %407, %408 : vector<8x128xf32>
    %410 = math.tanh %409 : vector<8x128xf32>
    %411 = arith.mulf %404, %410 : vector<8x128xf32>
    %c7_i32_129 = arith.constant 7 : i32
    %c8_i32_130 = arith.constant 8 : i32
    %412 = arith.muli %c7_i32_129, %c8_i32_130 : i32
    %413 = tpu.assume_multiple %412, 8 : i32
    %414 = arith.index_cast %413 : i32 to index
    %c0_131 = arith.constant 0 : index
    %415 = vector.load %arg12[%414, %c0_131] : memref<64x512xf32, #tpu.memory_space<vmem>>, vector<8x512xf32>
    %416 = arith.truncf %411 : vector<8x128xf32> to vector<8x128xbf16>
    %cst_132 = arith.constant dense<0.000000e+00> : vector<8x512xf32>
    %417 = tpu.matmul %416, %234, %cst_132 {dimension_numbers = #tpu.dot_dimension_numbers<[1], [0], [0], [1], [0, 0, 1, 1], [], []>} : vector<8x128xbf16>, vector<128x512xbf16>, vector<8x512xf32> -> vector<8x512xf32>
    %418 = arith.addf %415, %417 : vector<8x512xf32>
    %419 = vector.extract_strided_slice %418 {offsets = [0, 0], sizes = [8, 384], strides = [1, 1]} : vector<8x512xf32> to vector<8x384xf32>
    %cst_133 = arith.constant 5.000000e-01 : f32
    %420 = vector.broadcast %cst_133 : f32 to vector<8x384xf32>
    %421 = arith.mulf %420, %419 : vector<8x384xf32>
    %422 = math.tanh %421 : vector<8x384xf32>
    %cst_134 = arith.constant 5.000000e-01 : f32
    %423 = vector.broadcast %cst_134 : f32 to vector<8x384xf32>
    %424 = arith.mulf %423, %422 : vector<8x384xf32>
    %cst_135 = arith.constant 5.000000e-01 : f32
    %425 = vector.broadcast %cst_135 : f32 to vector<8x384xf32>
    %426 = arith.addf %424, %425 : vector<8x384xf32>
    %427 = vector.extract_strided_slice %426 {offsets = [0, 0], sizes = [8, 128], strides = [1, 1]} : vector<8x384xf32> to vector<8x128xf32>
    %428 = vector.extract_strided_slice %426 {offsets = [0, 128], sizes = [8, 128], strides = [1, 1]} : vector<8x384xf32> to vector<8x128xf32>
    %429 = vector.extract_strided_slice %426 {offsets = [0, 256], sizes = [8, 128], strides = [1, 1]} : vector<8x384xf32> to vector<8x128xf32>
    %430 = vector.extract_strided_slice %418 {offsets = [0, 384], sizes = [8, 128], strides = [1, 1]} : vector<8x512xf32> to vector<8x128xf32>
    %431 = math.tanh %430 : vector<8x128xf32>
    %432 = arith.mulf %428, %409 : vector<8x128xf32>
    %433 = arith.mulf %427, %431 : vector<8x128xf32>
    %434 = arith.addf %432, %433 : vector<8x128xf32>
    %435 = math.tanh %434 : vector<8x128xf32>
    %436 = arith.mulf %429, %435 : vector<8x128xf32>
    %c8_i32_136 = arith.constant 8 : i32
    %437 = arith.truncf %436 : vector<8x128xf32> to vector<8x128xbf16>
    %c0_137 = arith.constant 0 : index
    %c0_138 = arith.constant 0 : index
    %438 = vector.load %arg8[%c0_137, %c0_138] : memref<128x8xbf16, #tpu.memory_space<vmem>>, vector<128x8xbf16>
    %cst_139 = arith.constant dense<0.000000e+00> : vector<8x8xf32>
    %439 = tpu.matmul %437, %438, %cst_139 {dimension_numbers = #tpu.dot_dimension_numbers<[1], [0], [0], [1], [0, 0, 1, 1], [], []>} : vector<8x128xbf16>, vector<128x8xbf16>, vector<8x8xf32> -> vector<8x8xf32>
    %c0_140 = arith.constant 0 : index
    %c0_141 = arith.constant 0 : index
    %440 = vector.load %arg9[%c0_140, %c0_141] : memref<1x8xf32, #tpu.memory_space<vmem>>, vector<1x8xf32>
    %441 = vector.broadcast %440 : vector<1x8xf32> to vector<8x8xf32>
    %442 = arith.addf %439, %441 : vector<8x8xf32>
    %c0_142 = arith.constant 0 : index
    %c0_143 = arith.constant 0 : index
    %443 = vector.load %arg10[%c0_142, %c0_143] : memref<8x8xf32, #tpu.memory_space<vmem>>, vector<8x8xf32>
    tpu.vector_store %arg10[%c0_142, %c0_143], %442 {strides = array<i32>} : memref<8x8xf32, #tpu.memory_space<vmem>>, vector<8x8xf32>,
    return
  }
  func.func @transform_0(%arg0: i32) -> (i32, i32) {
    %c0_i32 = arith.constant 0 : i32
    %c0_i32_0 = arith.constant 0 : i32
    %c0_i32_1 = arith.constant 0 : i32
    return %c0_i32, %c0_i32_0 : i32, i32
  }
  func.func @transform_1(%arg0: i32) -> (i32, i32) {
    %c0_i32 = arith.constant 0 : i32
    %c0_i32_0 = arith.constant 0 : i32
    %c0_i32_1 = arith.constant 0 : i32
    return %c0_i32, %c0_i32_0 : i32, i32
  }
  func.func @transform_2(%arg0: i32) -> (i32, i32) {
    %c0_i32 = arith.constant 0 : i32
    %c0_i32_0 = arith.constant 0 : i32
    %c0_i32_1 = arith.constant 0 : i32
    return %c0_i32, %c0_i32_0 : i32, i32
  }
  func.func @transform_3(%arg0: i32) -> (i32, i32) {
    %c0_i32 = arith.constant 0 : i32
    %c0_i32_0 = arith.constant 0 : i32
    %c0_i32_1 = arith.constant 0 : i32
    return %c0_i32, %c0_i32_0 : i32, i32
  }
  func.func @transform_4(%arg0: i32) -> (i32, i32) {
    %c0_i32 = arith.constant 0 : i32
    %c0_i32_0 = arith.constant 0 : i32
    %c0_i32_1 = arith.constant 0 : i32
    return %c0_i32, %c0_i32_0 : i32, i32
  }
  func.func @transform_5(%arg0: i32) -> (i32, i32) {
    %c0_i32 = arith.constant 0 : i32
    %c0_i32_0 = arith.constant 0 : i32
    %c0_i32_1 = arith.constant 0 : i32
    return %c0_i32, %c0_i32_0 : i32, i32
  }
  func.func @transform_6(%arg0: i32) -> (i32, i32) {
    %c0_i32 = arith.constant 0 : i32
    %c0_i32_0 = arith.constant 0 : i32
    %c0_i32_1 = arith.constant 0 : i32
    return %c0_i32, %c0_i32_0 : i32, i32
  }
  func.func @transform_7(%arg0: i32) -> (i32, i32) {
    %c0_i32 = arith.constant 0 : i32
    %c0_i32_0 = arith.constant 0 : i32
    %c0_i32_1 = arith.constant 0 : i32
    return %c0_i32, %c0_i32_0 : i32, i32
  }
  func.func @transform_8(%arg0: i32) -> (i32, i32) {
    %c0_i32 = arith.constant 0 : i32
    %c0_i32_0 = arith.constant 0 : i32
    %c0_i32_1 = arith.constant 0 : i32
    return %c0_i32, %c0_i32_0 : i32, i32
  }
  func.func @transform_9(%arg0: i32) -> (i32, i32) {
    %c0_i32 = arith.constant 0 : i32
    %c0_i32_0 = arith.constant 0 : i32
    %c0_i32_1 = arith.constant 0 : i32
    return %c0_i32, %c0_i32_0 : i32, i32
  }
}

</mosaic_0001>

<bundles_post_ra>
// kernel: lstm_forward.1
= control target key start
LH: loop header
LB: loop body
LE: loop exit
PB: predicated region body
PF: predicated region fallthrough
CT: control target
= control target key end

     0   :  { %14 = vsyncpa [#allocation5], 0  ;;  %s5152_s0 = inlined_call_operand.vmem [shape: bf16[64,128], index: 0, kind: input, shape index: {}]   ;;  %s5153_s1 = inlined_call_operand.hbm [shape: bf16[128,512], index: 1, kind: input, shape index: {}]   ;;  %s5154_s2 = inlined_call_operand.hbm [shape: bf16[128,512], index: 2, kind: input, shape index: {}]   ;;  %s5155_s3 = inlined_call_operand.vmem [shape: f32[1,512], index: 3, kind: input, shape index: {}]   ;;  %s5156_s4 = inlined_call_operand.hbm [shape: bf16[128,512], index: 4, kind: input, shape index: {}]   ;;  %s5157_s5 = inlined_call_operand.hbm [shape: bf16[128,512], index: 5, kind: input, shape index: {}]   ;;  %s5158_s6 = inlined_call_operand.vmem [shape: f32[1,512], index: 6, kind: input, shape index: {}]   ;;  %s5159_s7 = inlined_call_operand.vmem [shape: bf16[128,8], index: 7, kind: input, shape index: {}]   ;;  %s5160_s8 = inlined_call_operand.vmem [shape: f32[1,8], index: 8, kind: input, shape index: {}]   ;;  %s5161_s9 = inlined_call_operand.vmem [shape: f32[8,8], index: 9, kind: output, shape index: {}]  }
   0x1   :  { %15 = vsyncpa [#allocation7], 0 }
   0x2   :  { %16 = vsyncpa [#allocation10], 0  ;;  %s3902_s30 = smov [#allocation6]   ;;  %s3903_s11 = smov [#allocation4]  }
   0x3   :  { %s36_s10 = sshll.u32 %s3902_s30, 4  ;;  %s24_s12 = sshll.u32 %s3903_s11, 4  ;;  %s37_s10 = int_to_ptr.vmem [resolvable:$true] %s36_s10  ;;  %s25_s12 = int_to_ptr.vmem [resolvable:$true] %s24_s12 }
   0x4   :  { %s3824_s13 = scalar_lea.vmem %s37_s10, 4096  ;;  %p3829_p1 = scmp.lt.s32.totalorder %s37_s10, %s37_s10 }
   0x5   :  { %p3825_p0 = scmp.ne.s32.totalorder %s37_s10, %s3824_s13  ;;  %p3830_p2 = scmp.lt.s32.totalorder %s3824_s13, %s3824_s13 }
   0x7   :  { %p3831_p3 = por %p3830_p2, %p3829_p1 }
   0x9   :  { %p3832_p4 = pnand %p3831_p3, %p3825_p0 }
   0xb   :  { %3835 = shalt.err (!%p3832_p4)
}
   0xc   :  { %s3904_s14 = smov 256   ;;  %s3905_s15 = smov 16  }
   0xd   :  { %42 = dma.hbm_to_vmem [thread:$0]  %s5154_s2, 4096, %s37_s10, [#allocation7], %s3904_s14, %s3904_s14, %s3905_s15  }
   0xe   :  { %s3844_s18 = scalar_lea.vmem %s25_s12, 4096  ;;  %p3849_p6 = scmp.lt.s32.totalorder %s25_s12, %s25_s12 }
   0xf   :  { %p3845_p5 = scmp.ne.s32.totalorder %s25_s12, %s3844_s18  ;;  %p3850_p7 = scmp.lt.s32.totalorder %s3844_s18, %s3844_s18 }
  0x11   :  { %p3851_p8 = por %p3850_p7, %p3849_p6 }
  0x13   :  { %p3852_p9 = pnand %p3851_p8, %p3845_p5 }
  0x15   :  { %3855 = shalt.err (!%p3852_p9)
}
  0x16   :  { %30 = dma.hbm_to_vmem [thread:$0]  %s5153_s1, 4096, %s25_s12, [#allocation5], %s3904_s14, %s3904_s14, %s3905_s15  }
  0x17   :  { %s3906_s21 = smov [#allocation8]   ;;  %s3907_s23 = smov [#allocation9]  }
  0x18   :  { %s50_s22 = sshll.u32 %s3906_s21, 4  ;;  %s62_s24 = sshll.u32 %s3907_s23, 4  ;;  %s51_s22 = int_to_ptr.vmem [resolvable:$true] %s50_s22  ;;  %s63_s24 = int_to_ptr.vmem [resolvable:$true] %s62_s24 }
  0x19   :  { %s3864_s2 = scalar_lea.vmem %s51_s22, 4096  ;;  %p3869_p11 = scmp.lt.s32.totalorder %s51_s22, %s51_s22 }
  0x1a   :  { %p3865_p10 = scmp.ne.s32.totalorder %s51_s22, %s3864_s2  ;;  %p3870_p12 = scmp.lt.s32.totalorder %s3864_s2, %s3864_s2 }
  0x1c   :  { %p3871_p13 = por %p3870_p12, %p3869_p11 }
  0x1e   :  { %p3872_p0 = pnand %p3871_p13, %p3865_p10 }
  0x20   :  { %3875 = shalt.err (!%p3872_p0)
}
  0x21   :  { %56 = dma.hbm_to_vmem [thread:$0]  %s5156_s4, 4096, %s51_s22, [#allocation7], %s3904_s14, %s3904_s14, %s3905_s15  }
  0x22   :  { %s3884_s1 = scalar_lea.vmem %s63_s24, 4096  ;;  %p3889_p2 = scmp.lt.s32.totalorder %s63_s24, %s63_s24 }
  0x23   :  { %p3885_p1 = scmp.ne.s32.totalorder %s63_s24, %s3884_s1  ;;  %p3890_p3 = scmp.lt.s32.totalorder %s3884_s1, %s3884_s1 }
  0x25   :  { %p3891_p4 = por %p3890_p3, %p3889_p2 }
  0x27   :  { %p3892_p5 = pnand %p3891_p4, %p3885_p1 }
  0x29   :  { %3895 = shalt.err (!%p3892_p5)
}
  0x2a   :  { %68 = dma.hbm_to_vmem [thread:$0]  %s5157_s5, 4096, %s63_s24, [#allocation10], %s3904_s14, %s3904_s14, %s3905_s15  }
  0x2b   :  { %3896 = dma.done.wait [#allocation5], 4096  }
  0x2c   :  { %3897 = vsyncadd [#allocation5], 4294963200 }
  0x2d   :  { %3898 = dma.done.wait [#allocation7], 8192  }
  0x2e   :  { %3899 = vsyncadd [#allocation7], 4294959104 }
  0x2f   :  { %3900 = dma.done.wait [#allocation10], 4096  }
  0x30   :  { %3901 = vsyncadd [#allocation10], 4294963200  ;;  %v5166_v0 = vmov 0   ;;  %v3388_v1 = vld [vmem:[#allocation4 + $0xe4] ss:$16 sps:$4 sm:$0xff]   ;;  %v3449_v44 = vld [vmem:[%s5152_s0 + $0x8] sm:$0xff]  }
  0x31   :  { %366 = vmatprep.mubr.bf16.mxu0 %v5166_v0  ;;  %439 = vmatprep.mubr.bf16.mxu1 %v5166_v0  ;;  %v3390_v2 = vld [vmem:[#allocation4 + $0xec] ss:$16 sps:$4 sm:$0xff]   ;;  %v3392_v3 = vld [vmem:[#allocation4 + $0xe0] ss:$16 sps:$4 sm:$0xff]   ;;  %v3393_v4 = vld [vmem:[#allocation4 + $0xe8] ss:$16 sps:$4 sm:$0xff]  }
  0x32   :  { %334 = vmatprep.subr.bf16.mxu0 %v3388_v1  ;;  %407 = vmatprep.subr.bf16.mxu1 %v3390_v2  ;;  %v3394_v5 = vld [vmem:[#allocation4 + $0xc4] ss:$16 sps:$4 sm:$0xff]   ;;  %v3396_v6 = vld [vmem:[#allocation4 + $0xcc] ss:$16 sps:$4 sm:$0xff]   ;;  %v3398_v7 = vld [vmem:[#allocation4 + $0xc0] ss:$16 sps:$4 sm:$0xff]  }
  0x33   :  { %335 = vmatpush1.bf16.msra.mxu0 %v3392_v3  ;;  %408 = vmatpush1.bf16.msra.mxu1 %v3393_v4  ;;  %v3399_v8 = vld [vmem:[#allocation4 + $0xc8] ss:$16 sps:$4 sm:$0xff]   ;;  %v3400_v9 = vld [vmem:[#allocation4 + $0xa4] ss:$16 sps:$4 sm:$0xff]   ;;  %v3402_v10 = vld [vmem:[#allocation4 + $0xac] ss:$16 sps:$4 sm:$0xff]  }
  0x34   :  { %336 = vmatprep.subr.bf16.mxu0 %v3394_v5  ;;  %409 = vmatprep.subr.bf16.mxu1 %v3396_v6  ;;  %v3404_v11 = vld [vmem:[#allocation4 + $0xa0] ss:$16 sps:$4 sm:$0xff]   ;;  %v3405_v12 = vld [vmem:[#allocation4 + $0xa8] ss:$16 sps:$4 sm:$0xff]   ;;  %v3406_v13 = vld [vmem:[#allocation4 + $0x84] ss:$16 sps:$4 sm:$0xff]   ;;  %v130_v6 = vlaneseq }
  0x35   :  { %v3408_v14 = vld [vmem:[#allocation4 + $0x8c] ss:$16 sps:$4 sm:$0xff]   ;;  %v3410_v15 = vld [vmem:[#allocation4 + $0x80] ss:$16 sps:$4 sm:$0xff]   ;;  %v3411_v16 = vld [vmem:[#allocation4 + $0x88] ss:$16 sps:$4 sm:$0xff]  }
  0x36   :  { %v3412_v17 = vld [vmem:[#allocation4 + $0x64] ss:$16 sps:$4 sm:$0xff]   ;;  %v3414_v18 = vld [vmem:[#allocation4 + $0x6c] ss:$16 sps:$4 sm:$0xff]   ;;  %v3416_v19 = vld [vmem:[#allocation4 + $0x60] ss:$16 sps:$4 sm:$0xff]  }
  0x37   :  { %337 = vmatpush1.bf16.msra.mxu0 %v3398_v7  ;;  %410 = vmatpush1.bf16.msra.mxu1 %v3399_v8  ;;  %v3417_v20 = vld [vmem:[#allocation4 + $0x68] ss:$16 sps:$4 sm:$0xff]   ;;  %v3418_v21 = vld [vmem:[#allocation4 + $0x44] ss:$16 sps:$4 sm:$0xff]   ;;  %v3420_v22 = vld [vmem:[#allocation4 + $0x4c] ss:$16 sps:$4 sm:$0xff]  }
  0x38   :  { %338 = vmatprep.subr.bf16.mxu0 %v3400_v9  ;;  %411 = vmatprep.subr.bf16.mxu1 %v3402_v10  ;;  %v3422_v23 = vld [vmem:[#allocation4 + $0x40] ss:$16 sps:$4 sm:$0xff]   ;;  %v3423_v24 = vld [vmem:[#allocation4 + $0x48] ss:$16 sps:$4 sm:$0xff]   ;;  %v3424_v25 = vld [vmem:[#allocation4 + $0x24] ss:$16 sps:$4 sm:$0xff]  }
  0x39   :  { %v3426_v26 = vld [vmem:[#allocation4 + $0x2c] ss:$16 sps:$4 sm:$0xff]   ;;  %v3428_v27 = vld [vmem:[#allocation4 + $0x20] ss:$16 sps:$4 sm:$0xff]   ;;  %v3429_v28 = vld [vmem:[#allocation4 + $0x28] ss:$16 sps:$4 sm:$0xff]  }
  0x3a   :  { %v3430_v29 = vld [vmem:[#allocation4 + $0x4] ss:$16 sps:$4 sm:$0xff]   ;;  %v3432_v30 = vld [vmem:[#allocation4 + $0xc] ss:$16 sps:$4 sm:$0xff]   ;;  %v3434_v31 = vld [vmem:[#allocation4] ss:$16 sps:$4 sm:$0xff]  }
  0x3b   :  { %339 = vmatpush1.bf16.msra.mxu0 %v3404_v11  ;;  %412 = vmatpush1.bf16.msra.mxu1 %v3405_v12  ;;  %v3435_v32 = vld [vmem:[#allocation4 + $0x8] ss:$16 sps:$4 sm:$0xff]   ;;  %v3987_v33 = vld [vmem:[#allocation6 + $0xe4] ss:$16 sps:$4 sm:$0xff]   ;;  %v3989_v34 = vld [vmem:[#allocation6 + $0xec] ss:$16 sps:$4 sm:$0xff]  }
  0x3c   :  { %340 = vmatprep.subr.bf16.mxu0 %v3406_v13  ;;  %413 = vmatprep.subr.bf16.mxu1 %v3408_v14  ;;  %v3436_v35 = vld [vmem:[%s5152_s0] sm:$0xff]   ;;  %v3996_v37 = vld [vmem:[#allocation6 + $0xe8] ss:$16 sps:$4 sm:$0xff]   ;;  %v4002_v39 = vld [vmem:[#allocation6 + $0xcc] ss:$16 sps:$4 sm:$0xff]   ;;  %v4141_v7 = vshrl.u32 %v130_v6, 7 }
  0x3d   :  { %v3994_v36 = vld [vmem:[#allocation6 + $0xe0] ss:$16 sps:$4 sm:$0xff]   ;;  %v4000_v38 = vld [vmem:[#allocation6 + $0xc4] ss:$16 sps:$4 sm:$0xff]   ;;  %v4008_v41 = vld [vmem:[#allocation6 + $0xc8] ss:$16 sps:$4 sm:$0xff]  }
  0x3e   :  { %v4004_v40 = vld [vmem:[#allocation6 + $0xc0] ss:$16 sps:$4 sm:$0xff]   ;;  %v4012_v42 = vld [vmem:[#allocation6 + $0xa4] ss:$16 sps:$4 sm:$0xff]   ;;  %v4014_v43 = vld [vmem:[#allocation6 + $0xac] ss:$16 sps:$4 sm:$0xff]  }
  0x3f   :  { %341 = vmatpush1.bf16.msra.mxu0 %v3410_v15  ;;  %414 = vmatpush1.bf16.msra.mxu1 %v3411_v16  ;;  %v4021_v45 = vld [vmem:[#allocation6 + $0xa0] ss:$16 sps:$4 sm:$0xff]   ;;  %v4023_v46 = vld [vmem:[#allocation6 + $0xa8] ss:$16 sps:$4 sm:$0xff]   ;;  %v4027_v47 = vld [vmem:[#allocation6 + $0x84] ss:$16 sps:$4 sm:$0xff]  }
  0x40   :  { %342 = vmatprep.subr.bf16.mxu0 %v3412_v17  ;;  %415 = vmatprep.subr.bf16.mxu1 %v3414_v18  ;;  %v4031_v48 = vld [vmem:[#allocation6 + $0x8c] ss:$16 sps:$4 sm:$0xff]   ;;  %v4033_v49 = vld [vmem:[#allocation6 + $0x80] ss:$16 sps:$4 sm:$0xff]   ;;  %v4035_v50 = vld [vmem:[#allocation6 + $0x88] ss:$16 sps:$4 sm:$0xff]  }
  0x41   :  { %v4039_v51 = vld [vmem:[#allocation6 + $0x64] ss:$16 sps:$4 sm:$0xff]   ;;  %v4043_v52 = vld [vmem:[#allocation6 + $0x6c] ss:$16 sps:$4 sm:$0xff]   ;;  %v4050_v54 = vld [vmem:[#allocation6 + $0x60] ss:$16 sps:$4 sm:$0xff]  }
  0x42   :  { %v3462_v53 = vld [vmem:[%s5152_s0 + $0x10] sm:$0xff]   ;;  %v4052_v55 = vld [vmem:[#allocation6 + $0x68] ss:$16 sps:$4 sm:$0xff]   ;;  %v4056_v57 = vld [vmem:[#allocation6 + $0x4c] ss:$16 sps:$4 sm:$0xff]   ;;  %5170 = vst [vmem:[#allocation14_spill] sm:$0xff] %v4141_v7 }
  0x43   :  { %343 = vmatpush1.bf16.msra.mxu0 %v3416_v19  ;;  %416 = vmatpush1.bf16.msra.mxu1 %v3417_v20  ;;  %v4054_v56 = vld [vmem:[#allocation6 + $0x44] ss:$16 sps:$4 sm:$0xff]   ;;  %v4062_v58 = vld [vmem:[#allocation6 + $0x40] ss:$16 sps:$4 sm:$0xff]   ;;  %v4064_v59 = vld [vmem:[#allocation6 + $0x48] ss:$16 sps:$4 sm:$0xff]  }
  0x44   :  { %344 = vmatprep.subr.bf16.mxu0 %v3418_v21  ;;  %417 = vmatprep.subr.bf16.mxu1 %v3420_v22  ;;  %v4066_v60 = vld [vmem:[#allocation6 + $0x24] ss:$16 sps:$4 sm:$0xff]   ;;  %v4068_v61 = vld [vmem:[#allocation6 + $0x2c] ss:$16 sps:$4 sm:$0xff]   ;;  %v4079_v63 = vld [vmem:[#allocation6 + $0x20] ss:$16 sps:$4 sm:$0xff]  }
  0x45   :  { %v3475_v62 = vld [vmem:[%s5152_s0 + $0x18] sm:$0xff]   ;;  %v4083_v2 = vld [vmem:[#allocation6 + $0x4] ss:$16 sps:$4 sm:$0xff]   ;;  %v4091_v4 = vld [vmem:[#allocation6] ss:$16 sps:$4 sm:$0xff]   ;;  %v5162_v8 = vsub.s32 2, %v4141_v7 }
  0x46   :  { %v4081_v1 = vld [vmem:[#allocation6 + $0x28] ss:$16 sps:$4 sm:$0xff]   ;;  %v4085_v3 = vld [vmem:[#allocation6 + $0xc] ss:$16 sps:$4 sm:$0xff]   ;;  %v5165_v9 = vsub.s32 0, %v4141_v7  ;;  %v5163_v10 = vsub.s32 3, %v4141_v7 }
  0x47   :  { %345 = vmatpush1.bf16.msra.mxu0 %v3422_v23  ;;  %418 = vmatpush1.bf16.msra.mxu1 %v3423_v24  ;;  %v4093_v5 = vld [vmem:[#allocation6 + $0x8] ss:$16 sps:$4 sm:$0xff]   ;;  %v128_v11 = vld [vmem:[%s5155_s3] sm:$0xf]  ;;  %v5164_v15 = vsub.s32 1, %v4141_v7  ;;  %vm3910_vm0 = vmmov 0  }
  0x48   :  { %346 = vmatprep.subr.bf16.mxu0 %v3424_v25  ;;  %419 = vmatprep.subr.bf16.mxu1 %v3426_v26  ;;  %v4155_v14 = vrot.slane %v128_v11, %v5162_v8  ;;  %v133_v18 = vrot.slane %v128_v11, %v5165_v9  ;;  %v4166_v19 = vrot.slane %v128_v11, %v5163_v10  ;;  %vm3193_vm1 = vcmask 64512  }
  0x49   :  { %v137_v22 = vrot.slane %v128_v11, %v5164_v15 }
  0x4b   :  { %347 = vmatpush1.bf16.msra.mxu0 %v3428_v27  ;;  %420 = vmatpush1.bf16.msra.mxu1 %v3429_v28 }
  0x4c   :  { %348 = vmatprep.subr.bf16.mxu0 %v3430_v29  ;;  %421 = vmatprep.subr.bf16.mxu1 %v3432_v30 }
  0x4f   :  { %349 = vmatpush1.bf16.msra.mxu0 %v3434_v31  ;;  %422 = vmatpush1.bf16.msra.mxu1 %v3435_v32 }
  0x50   :  { %711 = vmatprep.subr.bf16.mxu0 %v3987_v33  ;;  %752 = vmatprep.subr.bf16.mxu1 %v3989_v34 }
  0x52   :  { %367 = vmatmul.mubr.bf16.vlgmr.msra.gmra.mxu0 %v3436_v35  ;;  %440 = vmatmul.mubr.bf16.vlgmr.msra.gmra.mxu1 %v3436_v35 }
  0x53   :  { %712 = vmatpush1.bf16.msra.mxu0 %v3994_v36  ;;  %753 = vmatpush1.bf16.msra.mxu1 %v3996_v37 }
  0x54   :  { %713 = vmatprep.subr.bf16.mxu0 %v4000_v38  ;;  %754 = vmatprep.subr.bf16.mxu1 %v4002_v39 }
  0x55   :  { %376 = vmatprep.mubr.bf16.mxu0 %v5166_v0  ;;  %449 = vmatprep.mubr.bf16.mxu1 %v5166_v0 }
  0x57   :  { %714 = vmatpush1.bf16.msra.mxu0 %v4004_v40  ;;  %755 = vmatpush1.bf16.msra.mxu1 %v4008_v41 }
  0x58   :  { %715 = vmatprep.subr.bf16.mxu0 %v4012_v42  ;;  %756 = vmatprep.subr.bf16.mxu1 %v4014_v43 }
  0x5a   :  { %377 = vmatmul.mubr.bf16.gmra.mxu0 %v3449_v44  ;;  %450 = vmatmul.mubr.bf16.gmra.mxu1 %v3449_v44 }
  0x5b   :  { %716 = vmatpush1.bf16.msra.mxu0 %v4021_v45  ;;  %757 = vmatpush1.bf16.msra.mxu1 %v4023_v46 }
  0x5c   :  { %717 = vmatprep.subr.bf16.mxu0 %v4027_v47  ;;  %758 = vmatprep.subr.bf16.mxu1 %v4031_v48 }
  0x5d   :  { %386 = vmatprep.mubr.bf16.mxu0 %v5166_v0  ;;  %459 = vmatprep.mubr.bf16.mxu1 %v5166_v0 }
  0x5f   :  { %718 = vmatpush1.bf16.msra.mxu0 %v4033_v49  ;;  %759 = vmatpush1.bf16.msra.mxu1 %v4035_v50 }
  0x60   :  { %719 = vmatprep.subr.bf16.mxu0 %v4039_v51  ;;  %760 = vmatprep.subr.bf16.mxu1 %v4043_v52 }
  0x62   :  { %387 = vmatmul.mubr.bf16.gmra.mxu0 %v3462_v53  ;;  %460 = vmatmul.mubr.bf16.gmra.mxu1 %v3462_v53 }
  0x63   :  { %720 = vmatpush1.bf16.msra.mxu0 %v4050_v54  ;;  %761 = vmatpush1.bf16.msra.mxu1 %v4052_v55 }
  0x64   :  { %721 = vmatprep.subr.bf16.mxu0 %v4054_v56  ;;  %762 = vmatprep.subr.bf16.mxu1 %v4056_v57 }
  0x65   :  { %396 = vmatprep.mubr.bf16.mxu0 %v5166_v0  ;;  %469 = vmatprep.mubr.bf16.mxu1 %v5166_v0 }
  0x67   :  { %722 = vmatpush1.bf16.msra.mxu0 %v4062_v58  ;;  %763 = vmatpush1.bf16.msra.mxu1 %v4064_v59 }
  0x68   :  { %723 = vmatprep.subr.bf16.mxu0 %v4066_v60  ;;  %764 = vmatprep.subr.bf16.mxu1 %v4068_v61 }
  0x6a   :  { %397 = vmatmul.mubr.bf16.gmra.mxu0 %v3475_v62  ;;  %470 = vmatmul.mubr.bf16.gmra.mxu1 %v3475_v62 }
  0x6b   :  { %724 = vmatpush1.bf16.msra.mxu0 %v4079_v63  ;;  %765 = vmatpush1.bf16.msra.mxu1 %v4081_v1 }
  0x6c   :  { %725 = vmatprep.subr.bf16.mxu0 %v4083_v2  ;;  %766 = vmatprep.subr.bf16.mxu1 %v4085_v3 }
  0x6d   :  { %743 = vmatprep.mubr.bf16.mxu0 %v5166_v0  ;;  %784 = vmatprep.mubr.bf16.mxu1 %v5166_v0 }
  0x6f   :  { %726 = vmatpush1.bf16.msra.mxu0 %v4091_v4  ;;  %767 = vmatpush1.bf16.msra.mxu1 %v4093_v5 }
  0x70   :  { %824 = vmatprep.subr.bf16.mxu0 %v3987_v33  ;;  %865 = vmatprep.subr.bf16.mxu1 %v3989_v34 }
  0x72   :  { %744 = vmatmul.mubr.bf16.vlgmr.msra.gmra.mxu0 %v5166_v0  ;;  %785 = vmatmul.mubr.bf16.vlgmr.msra.gmra.mxu1 %v5166_v0 }
  0x73   :  { %825 = vmatpush1.bf16.msra.mxu0 %v3994_v36  ;;  %866 = vmatpush1.bf16.msra.mxu1 %v3996_v37 }
  0x74   :  { %826 = vmatprep.subr.bf16.mxu0 %v4000_v38  ;;  %867 = vmatprep.subr.bf16.mxu1 %v4002_v39 }
  0x75   :  { %856 = vmatprep.mubr.bf16.mxu0 %v5166_v0  ;;  %897 = vmatprep.mubr.bf16.mxu1 %v5166_v0 }
  0x77   :  { %827 = vmatpush1.bf16.msra.mxu0 %v4004_v40  ;;  %868 = vmatpush1.bf16.msra.mxu1 %v4008_v41 }
  0x78   :  { %828 = vmatprep.subr.bf16.mxu0 %v4012_v42  ;;  %869 = vmatprep.subr.bf16.mxu1 %v4014_v43 }
  0x7b   :  { %829 = vmatpush1.bf16.msra.mxu0 %v4021_v45  ;;  %870 = vmatpush1.bf16.msra.mxu1 %v4023_v46 }
  0x7c   :  { %830 = vmatprep.subr.bf16.mxu0 %v4027_v47  ;;  %871 = vmatprep.subr.bf16.mxu1 %v4031_v48 }
  0x7f   :  { %831 = vmatpush1.bf16.msra.mxu0 %v4033_v49  ;;  %872 = vmatpush1.bf16.msra.mxu1 %v4035_v50 }
  0x80   :  { %832 = vmatprep.subr.bf16.mxu0 %v4039_v51  ;;  %873 = vmatprep.subr.bf16.mxu1 %v4043_v52 }
  0x83   :  { %833 = vmatpush1.bf16.msra.mxu0 %v4050_v54  ;;  %874 = vmatpush1.bf16.msra.mxu1 %v4052_v55 }
  0x84   :  { %834 = vmatprep.subr.bf16.mxu0 %v4054_v56  ;;  %875 = vmatprep.subr.bf16.mxu1 %v4056_v57 }
  0x87   :  { %835 = vmatpush1.bf16.msra.mxu0 %v4062_v58  ;;  %876 = vmatpush1.bf16.msra.mxu1 %v4064_v59 }
  0x88   :  { %836 = vmatprep.subr.bf16.mxu0 %v4066_v60  ;;  %877 = vmatprep.subr.bf16.mxu1 %v4068_v61 }
  0x8b   :  { %837 = vmatpush1.bf16.msra.mxu0 %v4079_v63  ;;  %878 = vmatpush1.bf16.msra.mxu1 %v4081_v1 }
  0x8c   :  { %838 = vmatprep.subr.bf16.mxu0 %v4083_v2  ;;  %879 = vmatprep.subr.bf16.mxu1 %v4085_v3 }
  0x8f   :  { %839 = vmatpush1.bf16.msra.mxu0 %v4091_v4  ;;  %880 = vmatpush1.bf16.msra.mxu1 %v4093_v5 }
  0x90   :  { %938 = vmatprep.subr.bf16.mxu0 %v3987_v33  ;;  %979 = vmatprep.subr.bf16.mxu1 %v3989_v34 }
 0x112   :  { %v4149_v12 = vpop.f32.mrf.mxu0  ;;  %v4151_v13 = vpop.f32.mrf.mxu1 }
 0x114   :  { %v4158_v16 = vpop.f32.mrf.mxu0  ;;  %v4160_v17 = vpop.f32.mrf.mxu1 }
 0x116   :  { %v372_v20 = vpop.f32.mrf.mxu0  ;;  %v445_v21 = vpop.f32.mrf.mxu1 }
 0x117   :  { %v4170_v23 = vadd.f32 %v372_v20, %v133_v18  ;;  %v4173_v24 = vadd.f32 %v445_v21, %v4155_v14 }
 0x118   :  { %v374_v25 = vpop.f32.mrf.mxu0  ;;  %v447_v26 = vpop.f32.mrf.mxu1 }
 0x119   :  { %v4175_v27 = vadd.f32 %v374_v25, %v137_v22  ;;  %v4178_v28 = vadd.f32 %v447_v26, %v4166_v19 }
 0x11a   :  { %v378_v29 = vpop.f32.mrf.mxu0  ;;  %v451_v30 = vpop.f32.mrf.mxu1 }
 0x11b   :  { %v4180_v31 = vadd.f32 %v378_v29, %v133_v18  ;;  %v4183_v32 = vadd.f32 %v451_v30, %v4155_v14 }
 0x11c   :  { %v380_v35 = vpop.f32.mrf.mxu0  ;;  %v453_v44 = vpop.f32.mrf.mxu1 }
 0x11d   :  { %v4185_v53 = vadd.f32 %v380_v35, %v137_v22  ;;  %v4188_v62 = vadd.f32 %v453_v44, %v4166_v19 }
 0x11e   :  { %v382_v6 = vpop.f32.mrf.mxu0  ;;  %v455_v11 = vpop.f32.mrf.mxu1 }
 0x11f   :  { %v4190_v20 = vadd.f32 %v382_v6, %v133_v18  ;;  %v4193_v21 = vadd.f32 %v455_v11, %v4155_v14 }
 0x120   :  { %v384_v25 = vpop.f32.mrf.mxu0  ;;  %v457_v26 = vpop.f32.mrf.mxu1 }
 0x121   :  { %5171 = vst [vmem:[#allocation15_spill] sm:$0xff] %v4190_v20  ;;  %5172 = vst [vmem:[#allocation16_spill] sm:$0xff] %v4193_v21  ;;  %v4195_v29 = vadd.f32 %v384_v25, %v137_v22  ;;  %v4198_v30 = vadd.f32 %v457_v26, %v4166_v19  ;;  %v444_v20 = vadd.f32 %v4160_v17, %v4166_v19 }
 0x122   :  { %v388_v8 = vpop.f32.mrf.mxu0  ;;  %v461_v35 = vpop.f32.mrf.mxu1 }
 0x123   :  { %5173 = vst [vmem:[#allocation17_spill] sm:$0xff] %v4195_v29  ;;  %5174 = vst [vmem:[#allocation18_spill] sm:$0xff] %v4198_v30  ;;  %v4200_v10 = vadd.f32 %v388_v8, %v133_v18  ;;  %v4203_v44 = vadd.f32 %v461_v35, %v4155_v14 }
 0x124   :  { %v390_v15 = vpop.f32.mrf.mxu0  ;;  %v463_v6 = vpop.f32.mrf.mxu1 }
 0x125   :  { %5175 = vst [vmem:[#allocation19_spill] sm:$0xff] %v4200_v10  ;;  %5176 = vst [vmem:[#allocation20_spill] sm:$0xff] %v4203_v44  ;;  %v4205_v9 = vadd.f32 %v390_v15, %v137_v22  ;;  %v4208_v11 = vadd.f32 %v463_v6, %v4166_v19 }
 0x126   :  { %v392_v0 = vpop.f32.mrf.mxu0  ;;  %v465_v25 = vpop.f32.mrf.mxu1 }
 0x127   :  { %5177 = vst [vmem:[#allocation21_spill] sm:$0xff] %v4205_v9  ;;  %5178 = vst [vmem:[#allocation22_spill] sm:$0xff] %v4208_v11  ;;  %v4210_v7 = vadd.f32 %v392_v0, %v133_v18  ;;  %v4213_v26 = vadd.f32 %v465_v25, %v4155_v14 }
 0x128   :  { %v394_v21 = vpop.f32.mrf.mxu0  ;;  %v467_v8 = vpop.f32.mrf.mxu1 }
 0x129   :  { %5179 = vst [vmem:[#allocation23_spill] sm:$0xff] %v4210_v7  ;;  %5180 = vst [vmem:[#allocation24_spill] sm:$0xff] %v4213_v26  ;;  %v4215_v10 = vadd.f32 %v394_v21, %v137_v22  ;;  %v4218_v35 = vadd.f32 %v467_v8, %v4166_v19 }
 0x12a   :  { %v398_v44 = vpop.f32.mrf.mxu0  ;;  %v471_v15 = vpop.f32.mrf.mxu1 }
 0x12b   :  { %5181 = vst [vmem:[#allocation25_spill] sm:$0xff] %v4215_v10  ;;  %5182 = vst [vmem:[#allocation26_spill] sm:$0xff] %v4218_v35  ;;  %v4220_v9 = vadd.f32 %v398_v44, %v133_v18  ;;  %v4223_v6 = vadd.f32 %v471_v15, %v4155_v14 }
 0x12c   :  { %v400_v11 = vpop.f32.mrf.mxu0  ;;  %v473_v0 = vpop.f32.mrf.mxu1 }
 0x12d   :  { %5183 = vst [vmem:[#allocation27_spill] sm:$0xff] %v4220_v9  ;;  %5184 = vst [vmem:[#allocation28_spill] sm:$0xff] %v4223_v6  ;;  %v4225_v7 = vadd.f32 %v400_v11, %v137_v22  ;;  %v4228_v25 = vadd.f32 %v473_v0, %v4166_v19  ;;  %v369_v9 = vadd.f32 %v4149_v12, %v133_v18 }
 0x12e   :  { %v402_v26 = vpop.f32.mrf.mxu0  ;;  %v475_v21 = vpop.f32.mrf.mxu1  ;;  %v371_v0 = vadd.f32 %v4158_v16, %v137_v22 }
 0x12f   :  { %5185 = vst [vmem:[#allocation29_spill] sm:$0xff] %v4225_v7  ;;  %5186 = vst [vmem:[#allocation30_spill] sm:$0xff] %v4228_v25  ;;  %v4230_v10 = vadd.f32 %v402_v26, %v133_v18  ;;  %v4233_v8 = vadd.f32 %v475_v21, %v4155_v14 }
 0x130   :  { %v404_v35 = vpop.f32.mrf.mxu0  ;;  %v477_v44 = vpop.f32.mrf.mxu1 }
 0x131   :  { %5187 = vst [vmem:[#allocation31_spill] sm:$0xff] %v4230_v10  ;;  %5188 = vst [vmem:[#allocation32_spill] sm:$0xff] %v4233_v8  ;;  %v4236_v15 = vadd.f32 %v404_v35, %v137_v22  ;;  %v4239_v6 = vadd.f32 %v477_v44, %v4166_v19 }
 0x132   :  { %v745_v11 = vpop.f32.mrf.mxu0  ;;  %v786_v7 = vpop.f32.mrf.mxu1 }
 0x133   :  { %5189 = vst [vmem:[#allocation33_spill] sm:$0xff] %v4239_v6  ;;  %v793_v25 = vadd.f32 %v745_v11, %v369_v9  ;;  %v442_v6 = vadd.f32 %v4151_v13, %v4155_v14 }
 0x134   :  { %v747_v30 = vpop.f32.mrf.mxu0  ;;  %v788_v26 = vpop.f32.mrf.mxu1 }
 0x135   :  { %v797_v10 = vmul.f32 0.5, %v793_v25  ;;  %v794_v29 = vadd.f32 %v747_v30, %v371_v0  ;;  %v796_v44 = vadd.f32 %v788_v26, %v444_v20  ;;  %v795_v9 = vadd.f32 %v786_v7, %v442_v6 }
 0x136   :  { %v749_v21 = vpop.f32.mrf.mxu0  ;;  %v790_v8 = vpop.f32.mrf.mxu1 }
 0x137   :  { %3592 = vtanh.f32 %v797_v10  ;;  %v798_v12 = vmul.f32 0.5, %v794_v29  ;;  %v799_v16 = vmul.f32 0.5, %v795_v9  ;;  %v5190_v21 = vmov 0  }
 0x138   :  { %v750_v18 = vpop.f32.mrf.mxu0  ;;  %v791_v35 = vpop.f32.mrf.mxu1 }
 0x139   :  { %3594 = vtanh.f32 %v798_v12 }
 0x13a   :  { %3596 = vtanh.f32 %v796_v44 }
 0x13b   :  { %3598 = vtanh.f32 %v799_v16 }
 0x144   :  { %v3593_v22 = vpop.eup %3592 }
 0x145   :  { %v803_v25 = vmul.f32 0.5, %v3593_v22 }
 0x146   :  { %v3595_v30 = vpop.eup %3594 }
 0x147   :  { %v806_v11 = vadd.f32 0.5, %v803_v25  ;;  %v804_v8 = vmul.f32 0.5, %v3595_v30  ;;  %v3597_v17 = vpop.eup %3596 }
 0x148   :  { %v3599_v20 = vpop.eup %3598 }
 0x149   :  { %v807_v0 = vadd.f32 0.5, %v804_v8  ;;  %v811_v19 = vmul.f32 %v3597_v17, %v806_v11  ;;  %v805_v26 = vmul.f32 0.5, %v3599_v20 }
 0x14b   :  { %v810_v10 = vmul.f32 0.0, %v807_v0  ;;  %v808_v13 = vadd.f32 0.5, %v805_v26 }
 0x14d   :  { %v4246_v29 = vadd.f32 %v811_v19, %v810_v10 }
 0x14f   :  { %3600 = vtanh.f32 %v4246_v29 }
 0x15c   :  { %v3601_v14 = vpop.eup %3600 }
 0x15d   :  { %v4249_v7 = vmul.f32 %v3601_v14, %v808_v13 }
 0x15f   :  { %v823_v6 = vpack.c.bf16 %v4249_v7, %v4249_v7 }
 0x161   :  { %857 = vmatmul.mubr.bf16.vlgmr.msra.gmra.mxu0 %v823_v6  ;;  %898 = vmatmul.mubr.bf16.vlgmr.msra.gmra.mxu1 %v823_v6 }
 0x162   :  { %939 = vmatpush1.bf16.msra.mxu0 %v3994_v36  ;;  %980 = vmatpush1.bf16.msra.mxu1 %v3996_v37 }
 0x163   :  { %940 = vmatprep.subr.bf16.mxu0 %v4000_v38  ;;  %981 = vmatprep.subr.bf16.mxu1 %v4002_v39 }
 0x164   :  { %970 = vmatprep.mubr.bf16.mxu0 %v5190_v21  ;;  %1011 = vmatprep.mubr.bf16.mxu1 %v5190_v21 }
 0x166   :  { %941 = vmatpush1.bf16.msra.mxu0 %v4004_v40  ;;  %982 = vmatpush1.bf16.msra.mxu1 %v4008_v41 }
 0x167   :  { %942 = vmatprep.subr.bf16.mxu0 %v4012_v42  ;;  %983 = vmatprep.subr.bf16.mxu1 %v4014_v43 }
 0x16a   :  { %943 = vmatpush1.bf16.msra.mxu0 %v4021_v45  ;;  %984 = vmatpush1.bf16.msra.mxu1 %v4023_v46 }
 0x16b   :  { %944 = vmatprep.subr.bf16.mxu0 %v4027_v47  ;;  %985 = vmatprep.subr.bf16.mxu1 %v4031_v48 }
 0x16e   :  { %945 = vmatpush1.bf16.msra.mxu0 %v4033_v49  ;;  %986 = vmatpush1.bf16.msra.mxu1 %v4035_v50 }
 0x16f   :  { %946 = vmatprep.subr.bf16.mxu0 %v4039_v51  ;;  %987 = vmatprep.subr.bf16.mxu1 %v4043_v52 }
 0x172   :  { %947 = vmatpush1.bf16.msra.mxu0 %v4050_v54  ;;  %988 = vmatpush1.bf16.msra.mxu1 %v4052_v55 }
 0x173   :  { %948 = vmatprep.subr.bf16.mxu0 %v4054_v56  ;;  %989 = vmatprep.subr.bf16.mxu1 %v4056_v57 }
 0x176   :  { %949 = vmatpush1.bf16.msra.mxu0 %v4062_v58  ;;  %990 = vmatpush1.bf16.msra.mxu1 %v4064_v59 }
 0x177   :  { %950 = vmatprep.subr.bf16.mxu0 %v4066_v60  ;;  %991 = vmatprep.subr.bf16.mxu1 %v4068_v61 }
 0x17a   :  { %951 = vmatpush1.bf16.msra.mxu0 %v4079_v63  ;;  %992 = vmatpush1.bf16.msra.mxu1 %v4081_v1 }
 0x17b   :  { %952 = vmatprep.subr.bf16.mxu0 %v4083_v2  ;;  %993 = vmatprep.subr.bf16.mxu1 %v4085_v3 }
 0x17e   :  { %953 = vmatpush1.bf16.msra.mxu0 %v4091_v4  ;;  %994 = vmatpush1.bf16.msra.mxu1 %v4093_v5 }
 0x17f   :  { %1052 = vmatprep.subr.bf16.mxu0 %v3987_v33  ;;  %1093 = vmatprep.subr.bf16.mxu1 %v3989_v34 }
 0x221   :  { %v858_v12 = vpop.f32.mrf.mxu0  ;;  %v899_v18 = vpop.f32.mrf.mxu1 }
 0x222   :  { %v906_v35 = vadd.f32 %v858_v12, %v4170_v23  ;;  %v908_v10 = vadd.f32 %v899_v18, %v4173_v24 }
 0x223   :  { %v860_v44 = vpop.f32.mrf.mxu0  ;;  %v901_v9 = vpop.f32.mrf.mxu1 }
 0x224   :  { %v910_v16 = vmul.f32 0.5, %v906_v35  ;;  %v907_v22 = vadd.f32 %v860_v44, %v4175_v27  ;;  %v909_v8 = vadd.f32 %v901_v9, %v4178_v28  ;;  %v912_v19 = vmul.f32 0.5, %v908_v10 }
 0x225   :  { %v862_v25 = vpop.f32.mrf.mxu0  ;;  %v903_v30 = vpop.f32.mrf.mxu1 }
 0x226   :  { %3602 = vtanh.f32 %v910_v16  ;;  %v911_v11 = vmul.f32 0.5, %v907_v22 }
 0x227   :  { %v863_v0 = vpop.f32.mrf.mxu0  ;;  %v904_v17 = vpop.f32.mrf.mxu1 }
 0x228   :  { %3604 = vtanh.f32 %v911_v11 }
 0x229   :  { %3606 = vtanh.f32 %v909_v8 }
 0x22a   :  { %3608 = vtanh.f32 %v912_v19 }
 0x233   :  { %v3603_v20 = vpop.eup %3602 }
 0x234   :  { %v916_v23 = vmul.f32 0.5, %v3603_v20 }
 0x235   :  { %v3605_v26 = vpop.eup %3604 }
 0x236   :  { %v919_v13 = vadd.f32 0.5, %v916_v23  ;;  %v917_v14 = vmul.f32 0.5, %v3605_v26  ;;  %v3607_v27 = vpop.eup %3606 }
 0x237   :  { %v3609_v28 = vpop.eup %3608 }
 0x238   :  { %v920_v6 = vadd.f32 0.5, %v917_v14  ;;  %v924_v12 = vmul.f32 %v3607_v27, %v919_v13  ;;  %v918_v9 = vmul.f32 0.5, %v3609_v28 }
 0x23a   :  { %v923_v35 = vmul.f32 %v920_v6, %v4246_v29  ;;  %v921_v16 = vadd.f32 0.5, %v918_v9 }
 0x23c   :  { %v4292_v44 = vadd.f32 %v924_v12, %v923_v35 }
 0x23e   :  { %3610 = vtanh.f32 %v4292_v44 }
 0x24b   :  { %v3611_v24 = vpop.eup %3610 }
 0x24c   :  { %v4295_v18 = vmul.f32 %v3611_v24, %v921_v16 }
 0x24e   :  { %v937_v22 = vpack.c.bf16 %v4295_v18, %v4295_v18 }
 0x250   :  { %971 = vmatmul.mubr.bf16.vlgmr.msra.gmra.mxu0 %v937_v22  ;;  %1012 = vmatmul.mubr.bf16.vlgmr.msra.gmra.mxu1 %v937_v22 }
 0x251   :  { %1053 = vmatpush1.bf16.msra.mxu0 %v3994_v36  ;;  %1094 = vmatpush1.bf16.msra.mxu1 %v3996_v37 }
 0x252   :  { %1054 = vmatprep.subr.bf16.mxu0 %v4000_v38  ;;  %1095 = vmatprep.subr.bf16.mxu1 %v4002_v39 }
 0x253   :  { %1084 = vmatprep.mubr.bf16.mxu0 %v5190_v21  ;;  %1125 = vmatprep.mubr.bf16.mxu1 %v5190_v21 }
 0x255   :  { %1055 = vmatpush1.bf16.msra.mxu0 %v4004_v40  ;;  %1096 = vmatpush1.bf16.msra.mxu1 %v4008_v41 }
 0x256   :  { %1056 = vmatprep.subr.bf16.mxu0 %v4012_v42  ;;  %1097 = vmatprep.subr.bf16.mxu1 %v4014_v43 }
 0x259   :  { %1057 = vmatpush1.bf16.msra.mxu0 %v4021_v45  ;;  %1098 = vmatpush1.bf16.msra.mxu1 %v4023_v46 }
 0x25a   :  { %1058 = vmatprep.subr.bf16.mxu0 %v4027_v47  ;;  %1099 = vmatprep.subr.bf16.mxu1 %v4031_v48 }
 0x25d   :  { %1059 = vmatpush1.bf16.msra.mxu0 %v4033_v49  ;;  %1100 = vmatpush1.bf16.msra.mxu1 %v4035_v50 }
 0x25e   :  { %1060 = vmatprep.subr.bf16.mxu0 %v4039_v51  ;;  %1101 = vmatprep.subr.bf16.mxu1 %v4043_v52 }
 0x261   :  { %1061 = vmatpush1.bf16.msra.mxu0 %v4050_v54  ;;  %1102 = vmatpush1.bf16.msra.mxu1 %v4052_v55 }
 0x262   :  { %1062 = vmatprep.subr.bf16.mxu0 %v4054_v56  ;;  %1103 = vmatprep.subr.bf16.mxu1 %v4056_v57 }
 0x265   :  { %1063 = vmatpush1.bf16.msra.mxu0 %v4062_v58  ;;  %1104 = vmatpush1.bf16.msra.mxu1 %v4064_v59 }
 0x266   :  { %1064 = vmatprep.subr.bf16.mxu0 %v4066_v60  ;;  %1105 = vmatprep.subr.bf16.mxu1 %v4068_v61 }
 0x269   :  { %1065 = vmatpush1.bf16.msra.mxu0 %v4079_v63  ;;  %1106 = vmatpush1.bf16.msra.mxu1 %v4081_v1 }
 0x26a   :  { %1066 = vmatprep.subr.bf16.mxu0 %v4083_v2  ;;  %1107 = vmatprep.subr.bf16.mxu1 %v4085_v3 }
 0x26d   :  { %1067 = vmatpush1.bf16.msra.mxu0 %v4091_v4  ;;  %1108 = vmatpush1.bf16.msra.mxu1 %v4093_v5 }
 0x26e   :  { %1166 = vmatprep.subr.bf16.mxu0 %v3987_v33  ;;  %1207 = vmatprep.subr.bf16.mxu1 %v3989_v34 }
 0x310   :  { %v972_v29 = vpop.f32.mrf.mxu0  ;;  %v1013_v25 = vpop.f32.mrf.mxu1 }
 0x311   :  { %v1020_v30 = vadd.f32 %v972_v29, %v4180_v31  ;;  %v1022_v33 = vadd.f32 %v1013_v25, %v4183_v32 }
 0x312   :  { %v974_v11 = vpop.f32.mrf.mxu0  ;;  %v1015_v8 = vpop.f32.mrf.mxu1 }
 0x313   :  { %v1024_v0 = vmul.f32 0.5, %v1020_v30  ;;  %v1021_v17 = vadd.f32 %v974_v11, %v4185_v53  ;;  %v1023_v23 = vadd.f32 %v1015_v8, %v4188_v62  ;;  %v1026_v34 = vmul.f32 0.5, %v1022_v33  ;;  %v5194_v8 = vld [vmem:[#allocation16_spill] sm:$0xff] }
 0x314   :  { %v976_v10 = vpop.f32.mrf.mxu0  ;;  %v1017_v19 = vpop.f32.mrf.mxu1 }
 0x315   :  { %3612 = vtanh.f32 %v1024_v0  ;;  %v1025_v20 = vmul.f32 0.5, %v1021_v17 }
 0x316   :  { %v977_v26 = vpop.f32.mrf.mxu0  ;;  %v1018_v13 = vpop.f32.mrf.mxu1 }
 0x317   :  { %3614 = vtanh.f32 %v1025_v20 }
 0x318   :  { %3616 = vtanh.f32 %v1023_v23 }
 0x319   :  { %3618 = vtanh.f32 %v1026_v34 }
 0x322   :  { %v3613_v14 = vpop.eup %3612 }
 0x323   :  { %v1030_v31 = vmul.f32 0.5, %v3613_v14 }
 0x324   :  { %v3615_v27 = vpop.eup %3614 }
 0x325   :  { %v1033_v6 = vadd.f32 0.5, %v1030_v31  ;;  %v1031_v12 = vmul.f32 0.5, %v3615_v27  ;;  %v3617_v53 = vpop.eup %3616 }
 0x326   :  { %v3619_v62 = vpop.eup %3618 }
 0x327   :  { %v1034_v35 = vadd.f32 0.5, %v1031_v12  ;;  %v1038_v28 = vmul.f32 %v3617_v53, %v1033_v6  ;;  %v1032_v24 = vmul.f32 0.5, %v3619_v62  ;;  %v4401_v62 = vld [vmem:[#allocation6 + $0xc4] ss:$16 sps:$4 sm:$0xff]  }
 0x329   :  { %v1037_v9 = vmul.f32 %v1034_v35, %v4292_v44  ;;  %v1035_v22 = vadd.f32 0.5, %v1032_v24  ;;  %v4404_v24 = vld [vmem:[#allocation6 + $0xcc] ss:$16 sps:$4 sm:$0xff]  }
 0x32b   :  { %v4338_v16 = vadd.f32 %v1038_v28, %v1037_v9  ;;  %v4395_v9 = vld [vmem:[#allocation6 + $0xe0] ss:$16 sps:$4 sm:$0xff]  }
 0x32d   :  { %3620 = vtanh.f32 %v4338_v16 }
 0x33a   :  { %v3621_v32 = vpop.eup %3620 }
 0x33b   :  { %v4341_v29 = vmul.f32 %v3621_v32, %v1035_v22  ;;  %v4409_v22 = vld [vmem:[#allocation6 + $0xc0] ss:$16 sps:$4 sm:$0xff]   ;;  %v4412_v32 = vld [vmem:[#allocation6 + $0xc8] ss:$16 sps:$4 sm:$0xff]  }
 0x33d   :  { %v1051_v25 = vpack.c.bf16 %v4341_v29, %v4341_v29 }
 0x33f   :  { %1085 = vmatmul.mubr.bf16.vlgmr.msra.gmra.mxu0 %v1051_v25  ;;  %1126 = vmatmul.mubr.bf16.vlgmr.msra.gmra.mxu1 %v1051_v25  ;;  %v4415_v25 = vld [vmem:[#allocation6 + $0xa4] ss:$16 sps:$4 sm:$0xff]  }
 0x340   :  { %1167 = vmatpush1.bf16.msra.mxu0 %v3994_v36  ;;  %1208 = vmatpush1.bf16.msra.mxu1 %v3996_v37  ;;  %v4377_v36 = vld [vmem:[#allocation6 + $0xe4] ss:$16 sps:$4 sm:$0xff]   ;;  %v4380_v37 = vld [vmem:[#allocation6 + $0xec] ss:$16 sps:$4 sm:$0xff]  }
 0x341   :  { %1168 = vmatprep.subr.bf16.mxu0 %v4000_v38  ;;  %1209 = vmatprep.subr.bf16.mxu1 %v4002_v39 }
 0x342   :  { %1198 = vmatprep.mubr.bf16.mxu0 %v5190_v21  ;;  %1239 = vmatprep.mubr.bf16.mxu1 %v5190_v21 }
 0x344   :  { %1169 = vmatpush1.bf16.msra.mxu0 %v4004_v40  ;;  %1210 = vmatpush1.bf16.msra.mxu1 %v4008_v41  ;;  %v5191_v40 = vld [vmem:[#allocation15_spill] sm:$0xff] }
 0x345   :  { %1170 = vmatprep.subr.bf16.mxu0 %v4012_v42  ;;  %1211 = vmatprep.subr.bf16.mxu1 %v4014_v43 }
 0x348   :  { %1171 = vmatpush1.bf16.msra.mxu0 %v4021_v45  ;;  %1212 = vmatpush1.bf16.msra.mxu1 %v4023_v46  ;;  %v5192_v46 = vld [vmem:[#allocation17_spill] sm:$0xff] }
 0x349   :  { %1172 = vmatprep.subr.bf16.mxu0 %v4027_v47  ;;  %1213 = vmatprep.subr.bf16.mxu1 %v4031_v48 }
 0x34c   :  { %1173 = vmatpush1.bf16.msra.mxu0 %v4033_v49  ;;  %1214 = vmatpush1.bf16.msra.mxu1 %v4035_v50 }
 0x34d   :  { %1174 = vmatprep.subr.bf16.mxu0 %v4039_v51  ;;  %1215 = vmatprep.subr.bf16.mxu1 %v4043_v52  ;;  %v5193_v51 = vld [vmem:[#allocation18_spill] sm:$0xff] }
 0x350   :  { %1175 = vmatpush1.bf16.msra.mxu0 %v4050_v54  ;;  %1216 = vmatpush1.bf16.msra.mxu1 %v4052_v55 }
 0x351   :  { %1176 = vmatprep.subr.bf16.mxu0 %v4054_v56  ;;  %1217 = vmatprep.subr.bf16.mxu1 %v4056_v57 }
 0x354   :  { %1177 = vmatpush1.bf16.msra.mxu0 %v4062_v58  ;;  %1218 = vmatpush1.bf16.msra.mxu1 %v4064_v59 }
 0x355   :  { %1178 = vmatprep.subr.bf16.mxu0 %v4066_v60  ;;  %1219 = vmatprep.subr.bf16.mxu1 %v4068_v61 }
 0x358   :  { %1179 = vmatpush1.bf16.msra.mxu0 %v4079_v63  ;;  %1220 = vmatpush1.bf16.msra.mxu1 %v4081_v1 }
 0x359   :  { %1180 = vmatprep.subr.bf16.mxu0 %v4083_v2  ;;  %1221 = vmatprep.subr.bf16.mxu1 %v4085_v3 }
 0x35c   :  { %1181 = vmatpush1.bf16.msra.mxu0 %v4091_v4  ;;  %1222 = vmatpush1.bf16.msra.mxu1 %v4093_v5 }
 0x35d   :  { %1280 = vmatprep.subr.bf16.mxu0 %v4377_v36  ;;  %1321 = vmatprep.subr.bf16.mxu1 %v4380_v37 }
 0x3ff   :  { %v1086_v38 = vpop.f32.mrf.mxu0  ;;  %v1127_v39 = vpop.f32.mrf.mxu1 }
 0x400   :  { %v1134_v41 = vadd.f32 %v1086_v38, %v5191_v40  ;;  %v1136_v0 = vadd.f32 %v1127_v39, %v5194_v8  ;;  %v4418_v38 = vld [vmem:[#allocation6 + $0xac] ss:$16 sps:$4 sm:$0xff]   ;;  %v4421_v39 = vld [vmem:[#allocation6 + $0xa0] ss:$16 sps:$4 sm:$0xff]   ;;  %v4424_v40 = vld [vmem:[#allocation6 + $0xa8] ss:$16 sps:$4 sm:$0xff]  }
 0x401   :  { %v1088_v42 = vpop.f32.mrf.mxu0  ;;  %v1129_v43 = vpop.f32.mrf.mxu1 }
 0x402   :  { %v1138_v45 = vmul.f32 0.5, %v1134_v41  ;;  %v1135_v47 = vadd.f32 %v1088_v42, %v5192_v46  ;;  %v1137_v44 = vadd.f32 %v1129_v43, %v5193_v51  ;;  %v1140_v17 = vmul.f32 0.5, %v1136_v0  ;;  %v4427_v41 = vld [vmem:[#allocation6 + $0x84] ss:$16 sps:$4 sm:$0xff]   ;;  %v4430_v42 = vld [vmem:[#allocation6 + $0x8c] ss:$16 sps:$4 sm:$0xff]  }
 0x403   :  { %v1090_v48 = vpop.f32.mrf.mxu0  ;;  %v1131_v49 = vpop.f32.mrf.mxu1  ;;  %v4433_v43 = vld [vmem:[#allocation6 + $0x80] ss:$16 sps:$4 sm:$0xff]   ;;  %v4439_v46 = vld [vmem:[#allocation6 + $0x64] ss:$16 sps:$4 sm:$0xff]  }
 0x404   :  { %3622 = vtanh.f32 %v1138_v45  ;;  %v1139_v50 = vmul.f32 0.5, %v1135_v47  ;;  %v4436_v45 = vld [vmem:[#allocation6 + $0x88] ss:$16 sps:$4 sm:$0xff]   ;;  %v5198_v48 = vld [vmem:[#allocation20_spill] sm:$0xff] }
 0x405   :  { %v1091_v30 = vpop.f32.mrf.mxu0  ;;  %v1132_v11 = vpop.f32.mrf.mxu1 }
 0x406   :  { %3624 = vtanh.f32 %v1139_v50 }
 0x407   :  { %3626 = vtanh.f32 %v1137_v44 }
 0x408   :  { %3628 = vtanh.f32 %v1140_v17 }
 0x411   :  { %v3623_v10 = vpop.eup %3622 }
 0x412   :  { %v1144_v19 = vmul.f32 0.5, %v3623_v10 }
 0x413   :  { %v3625_v20 = vpop.eup %3624 }
 0x414   :  { %v1147_v23 = vadd.f32 0.5, %v1144_v19  ;;  %v1145_v26 = vmul.f32 0.5, %v3625_v20  ;;  %v3627_v13 = vpop.eup %3626 }
 0x415   :  { %v3629_v27 = vpop.eup %3628 }
 0x416   :  { %v1148_v33 = vadd.f32 0.5, %v1145_v26  ;;  %v1152_v34 = vmul.f32 %v3627_v13, %v1147_v23  ;;  %v1146_v6 = vmul.f32 0.5, %v3629_v27  ;;  %v4491_v27 = vld [vmem:[#allocation6 + $0x60] ss:$16 sps:$4 sm:$0xff]  }
 0x418   :  { %v1151_v14 = vmul.f32 %v1148_v33, %v4338_v16  ;;  %v1149_v12 = vadd.f32 0.5, %v1146_v6  ;;  %v4398_v16 = vld [vmem:[#allocation6 + $0xe8] ss:$16 sps:$4 sm:$0xff]  }
 0x419   :  { %v4494_v6 = vld [vmem:[#allocation6 + $0x68] ss:$16 sps:$4 sm:$0xff]  }
 0x41a   :  { %v4388_v31 = vadd.f32 %v1152_v34, %v1151_v14 }
 0x41c   :  { %3630 = vtanh.f32 %v4388_v31 }
 0x429   :  { %v3631_v53 = vpop.eup %3630 }
 0x42a   :  { %v4391_v35 = vmul.f32 %v3631_v53, %v1149_v12  ;;  %v4497_v12 = vld [vmem:[#allocation6 + $0x44] ss:$16 sps:$4 sm:$0xff]   ;;  %v4500_v53 = vld [vmem:[#allocation6 + $0x4c] ss:$16 sps:$4 sm:$0xff]  }
 0x42c   :  { %v1165_v28 = vpack.c.bf16 %v4391_v35, %v4391_v35 }
 0x42e   :  { %1199 = vmatmul.mubr.bf16.vlgmr.msra.gmra.mxu0 %v1165_v28  ;;  %1240 = vmatmul.mubr.bf16.vlgmr.msra.gmra.mxu1 %v1165_v28  ;;  %v4503_v28 = vld [vmem:[#allocation6 + $0x40] ss:$16 sps:$4 sm:$0xff]  }
 0x42f   :  { %1281 = vmatpush1.bf16.msra.mxu0 %v4395_v9  ;;  %1322 = vmatpush1.bf16.msra.mxu1 %v4398_v16 }
 0x430   :  { %1282 = vmatprep.subr.bf16.mxu0 %v4401_v62  ;;  %1323 = vmatprep.subr.bf16.mxu1 %v4404_v24 }
 0x431   :  { %1312 = vmatprep.mubr.bf16.mxu0 %v5190_v21  ;;  %1353 = vmatprep.mubr.bf16.mxu1 %v5190_v21 }
 0x433   :  { %1283 = vmatpush1.bf16.msra.mxu0 %v4409_v22  ;;  %1324 = vmatpush1.bf16.msra.mxu1 %v4412_v32 }
 0x434   :  { %1284 = vmatprep.subr.bf16.mxu0 %v4415_v25  ;;  %1325 = vmatprep.subr.bf16.mxu1 %v4418_v38 }
 0x437   :  { %1285 = vmatpush1.bf16.msra.mxu0 %v4421_v39  ;;  %1326 = vmatpush1.bf16.msra.mxu1 %v4424_v40 }
 0x438   :  { %1286 = vmatprep.subr.bf16.mxu0 %v4427_v41  ;;  %1327 = vmatprep.subr.bf16.mxu1 %v4430_v42 }
 0x43b   :  { %1287 = vmatpush1.bf16.msra.mxu0 %v4433_v43  ;;  %1328 = vmatpush1.bf16.msra.mxu1 %v4436_v45 }
 0x43c   :  { %1288 = vmatprep.subr.bf16.mxu0 %v4439_v46  ;;  %1329 = vmatprep.subr.bf16.mxu1 %v4043_v52 }
 0x43f   :  { %1289 = vmatpush1.bf16.msra.mxu0 %v4050_v54  ;;  %1330 = vmatpush1.bf16.msra.mxu1 %v4052_v55  ;;  %v5195_v55 = vld [vmem:[#allocation19_spill] sm:$0xff] }
 0x440   :  { %1290 = vmatprep.subr.bf16.mxu0 %v4054_v56  ;;  %1331 = vmatprep.subr.bf16.mxu1 %v4056_v57 }
 0x443   :  { %1291 = vmatpush1.bf16.msra.mxu0 %v4062_v58  ;;  %1332 = vmatpush1.bf16.msra.mxu1 %v4064_v59 }
 0x444   :  { %1292 = vmatprep.subr.bf16.mxu0 %v4066_v60  ;;  %1333 = vmatprep.subr.bf16.mxu1 %v4068_v61  ;;  %v5196_v60 = vld [vmem:[#allocation21_spill] sm:$0xff] }
 0x447   :  { %1293 = vmatpush1.bf16.msra.mxu0 %v4079_v63  ;;  %1334 = vmatpush1.bf16.msra.mxu1 %v4081_v1 }
 0x448   :  { %1294 = vmatprep.subr.bf16.mxu0 %v4083_v2  ;;  %1335 = vmatprep.subr.bf16.mxu1 %v4085_v3  ;;  %v5197_v3 = vld [vmem:[#allocation22_spill] sm:$0xff] }
 0x44b   :  { %1295 = vmatpush1.bf16.msra.mxu0 %v4091_v4  ;;  %1336 = vmatpush1.bf16.msra.mxu1 %v4093_v5 }
 0x44c   :  { %1394 = vmatprep.subr.bf16.mxu0 %v4377_v36  ;;  %1435 = vmatprep.subr.bf16.mxu1 %v4380_v37 }
 0x4ee   :  { %v1200_v52 = vpop.f32.mrf.mxu0  ;;  %v1241_v54 = vpop.f32.mrf.mxu1 }
 0x4ef   :  { %v1248_v56 = vadd.f32 %v1200_v52, %v5195_v55  ;;  %v1250_v49 = vadd.f32 %v1241_v54, %v5198_v48  ;;  %v4506_v52 = vld [vmem:[#allocation6 + $0x48] ss:$16 sps:$4 sm:$0xff]   ;;  %v4509_v54 = vld [vmem:[#allocation6 + $0x24] ss:$16 sps:$4 sm:$0xff]   ;;  %v4512_v55 = vld [vmem:[#allocation6 + $0x2c] ss:$16 sps:$4 sm:$0xff]  }
 0x4f0   :  { %v1202_v57 = vpop.f32.mrf.mxu0  ;;  %v1243_v58 = vpop.f32.mrf.mxu1  ;;  %v5200_v48 = vld [vmem:[#allocation25_spill] sm:$0xff] }
 0x4f1   :  { %v1252_v59 = vmul.f32 0.5, %v1248_v56  ;;  %v1249_v61 = vadd.f32 %v1202_v57, %v5196_v60  ;;  %v1251_v4 = vadd.f32 %v1243_v58, %v5197_v3  ;;  %v1254_v50 = vmul.f32 0.5, %v1250_v49  ;;  %v4515_v56 = vld [vmem:[#allocation6 + $0x20] ss:$16 sps:$4 sm:$0xff]   ;;  %v4518_v57 = vld [vmem:[#allocation6 + $0x28] ss:$16 sps:$4 sm:$0xff]  }
 0x4f2   :  { %v1204_v63 = vpop.f32.mrf.mxu0  ;;  %v1245_v1 = vpop.f32.mrf.mxu1  ;;  %v4521_v58 = vld [vmem:[#allocation6 + $0x4] ss:$16 sps:$4 sm:$0xff]   ;;  %v4527_v60 = vld [vmem:[#allocation6] ss:$16 sps:$4 sm:$0xff]  }
 0x4f3   :  { %3632 = vtanh.f32 %v1252_v59  ;;  %v1253_v2 = vmul.f32 0.5, %v1249_v61  ;;  %v4524_v59 = vld [vmem:[#allocation6 + $0xc] ss:$16 sps:$4 sm:$0xff]   ;;  %v4530_v61 = vld [vmem:[#allocation6 + $0x8] ss:$16 sps:$4 sm:$0xff]  }
 0x4f4   :  { %v1205_v5 = vpop.f32.mrf.mxu0  ;;  %v1246_v47 = vpop.f32.mrf.mxu1 }
 0x4f5   :  { %3634 = vtanh.f32 %v1253_v2  ;;  %v5199_v2 = vld [vmem:[#allocation23_spill] sm:$0xff] }
 0x4f6   :  { %3636 = vtanh.f32 %v1251_v4 }
 0x4f7   :  { %3638 = vtanh.f32 %v1254_v50 }
 0x500   :  { %v3633_v51 = vpop.eup %3632 }
 0x501   :  { %v1258_v44 = vmul.f32 0.5, %v3633_v51 }
 0x502   :  { %v3635_v30 = vpop.eup %3634 }
 0x503   :  { %v1261_v11 = vadd.f32 0.5, %v1258_v44  ;;  %v1259_v8 = vmul.f32 0.5, %v3635_v30  ;;  %v3637_v0 = vpop.eup %3636  ;;  %v5201_v30 = vld [vmem:[#allocation26_spill] sm:$0xff] }
 0x504   :  { %v3639_v23 = vpop.eup %3638 }
 0x505   :  { %v1262_v17 = vadd.f32 0.5, %v1259_v8  ;;  %v1266_v10 = vmul.f32 %v3637_v0, %v1261_v11  ;;  %v1260_v26 = vmul.f32 0.5, %v3639_v23 }
 0x507   :  { %v1265_v19 = vmul.f32 %v1262_v17, %v4388_v31  ;;  %v1263_v13 = vadd.f32 0.5, %v1260_v26  ;;  %v4488_v31 = vld [vmem:[#allocation6 + $0x6c] ss:$16 sps:$4 sm:$0xff]  }
 0x509   :  { %v4464_v20 = vadd.f32 %v1266_v10, %v1265_v19 }
 0x50b   :  { %3640 = vtanh.f32 %v4464_v20 }
 0x518   :  { %v3641_v33 = vpop.eup %3640 }
 0x519   :  { %v4467_v34 = vmul.f32 %v3641_v33, %v1263_v13 }
 0x51b   :  { %v1279_v14 = vpack.c.bf16 %v4467_v34, %v4467_v34 }
 0x51d   :  { %1313 = vmatmul.mubr.bf16.vlgmr.msra.gmra.mxu0 %v1279_v14  ;;  %1354 = vmatmul.mubr.bf16.vlgmr.msra.gmra.mxu1 %v1279_v14 }
 0x51e   :  { %1395 = vmatpush1.bf16.msra.mxu0 %v4395_v9  ;;  %1436 = vmatpush1.bf16.msra.mxu1 %v4398_v16 }
 0x51f   :  { %1396 = vmatprep.subr.bf16.mxu0 %v4401_v62  ;;  %1437 = vmatprep.subr.bf16.mxu1 %v4404_v24 }
 0x520   :  { %1426 = vmatprep.mubr.bf16.mxu0 %v5190_v21  ;;  %1467 = vmatprep.mubr.bf16.mxu1 %v5190_v21 }
 0x522   :  { %1397 = vmatpush1.bf16.msra.mxu0 %v4409_v22  ;;  %1438 = vmatpush1.bf16.msra.mxu1 %v4412_v32 }
 0x523   :  { %1398 = vmatprep.subr.bf16.mxu0 %v4415_v25  ;;  %1439 = vmatprep.subr.bf16.mxu1 %v4418_v38 }
 0x526   :  { %1399 = vmatpush1.bf16.msra.mxu0 %v4421_v39  ;;  %1440 = vmatpush1.bf16.msra.mxu1 %v4424_v40 }
 0x527   :  { %1400 = vmatprep.subr.bf16.mxu0 %v4427_v41  ;;  %1441 = vmatprep.subr.bf16.mxu1 %v4430_v42 }
 0x52a   :  { %1401 = vmatpush1.bf16.msra.mxu0 %v4433_v43  ;;  %1442 = vmatpush1.bf16.msra.mxu1 %v4436_v45 }
 0x52b   :  { %1402 = vmatprep.subr.bf16.mxu0 %v4439_v46  ;;  %1443 = vmatprep.subr.bf16.mxu1 %v4488_v31 }
 0x52e   :  { %1403 = vmatpush1.bf16.msra.mxu0 %v4491_v27  ;;  %1444 = vmatpush1.bf16.msra.mxu1 %v4494_v6 }
 0x52f   :  { %1404 = vmatprep.subr.bf16.mxu0 %v4497_v12  ;;  %1445 = vmatprep.subr.bf16.mxu1 %v4500_v53 }
 0x532   :  { %1405 = vmatpush1.bf16.msra.mxu0 %v4503_v28  ;;  %1446 = vmatpush1.bf16.msra.mxu1 %v4506_v52 }
 0x533   :  { %1406 = vmatprep.subr.bf16.mxu0 %v4509_v54  ;;  %1447 = vmatprep.subr.bf16.mxu1 %v4512_v55 }
 0x536   :  { %1407 = vmatpush1.bf16.msra.mxu0 %v4515_v56  ;;  %1448 = vmatpush1.bf16.msra.mxu1 %v4518_v57 }
 0x537   :  { %1408 = vmatprep.subr.bf16.mxu0 %v4521_v58  ;;  %1449 = vmatprep.subr.bf16.mxu1 %v4524_v59 }
 0x53a   :  { %1409 = vmatpush1.bf16.msra.mxu0 %v4527_v60  ;;  %1450 = vmatpush1.bf16.msra.mxu1 %v4530_v61 }
 0x53b   :  { %1508 = vmatprep.subr.bf16.mxu0 %v4377_v36  ;;  %1549 = vmatprep.subr.bf16.mxu1 %v4380_v37  ;;  %v5202_v36 = vld [vmem:[#allocation24_spill] sm:$0xff] }
 0x5dd   :  { %v1314_v63 = vpop.f32.mrf.mxu0  ;;  %v1355_v1 = vpop.f32.mrf.mxu1 }
 0x5de   :  { %v1362_v3 = vadd.f32 %v1314_v63, %v5199_v2  ;;  %v1364_v37 = vadd.f32 %v1355_v1, %v5202_v36 }
 0x5df   :  { %v1316_v4 = vpop.f32.mrf.mxu0  ;;  %v1357_v5 = vpop.f32.mrf.mxu1 }
 0x5e0   :  { %v1366_v47 = vmul.f32 0.5, %v1362_v3  ;;  %v1363_v49 = vadd.f32 %v1316_v4, %v5200_v48  ;;  %v1365_v11 = vadd.f32 %v1357_v5, %v5201_v30  ;;  %v1368_v17 = vmul.f32 0.5, %v1364_v37  ;;  %v3496_v37 = vld [vmem:[#allocation8 + $0xc4] ss:$16 sps:$4 sm:$0xff]  }
 0x5e1   :  { %v1318_v50 = vpop.f32.mrf.mxu0  ;;  %v1359_v51 = vpop.f32.mrf.mxu1 }
 0x5e2   :  { %3642 = vtanh.f32 %v1366_v47  ;;  %v1367_v44 = vmul.f32 0.5, %v1363_v49 }
 0x5e3   :  { %v1319_v8 = vpop.f32.mrf.mxu0  ;;  %v1360_v0 = vpop.f32.mrf.mxu1 }
 0x5e4   :  { %3644 = vtanh.f32 %v1367_v44  ;;  %v3488_v8 = vld [vmem:[#allocation8 + $0xe0] ss:$16 sps:$4 sm:$0xff]   ;;  %v3491_v0 = vld [vmem:[#allocation8 + $0xe8] ss:$16 sps:$4 sm:$0xff]  }
 0x5e5   :  { %3646 = vtanh.f32 %v1365_v11 }
 0x5e6   :  { %3648 = vtanh.f32 %v1368_v17  ;;  %v3499_v17 = vld [vmem:[#allocation8 + $0xcc] ss:$16 sps:$4 sm:$0xff]  }
 0x5ef   :  { %v3643_v10 = vpop.eup %3642 }
 0x5f0   :  { %v1372_v19 = vmul.f32 0.5, %v3643_v10  ;;  %v3494_v10 = vld [vmem:[#allocation8 + $0xc0] ss:$16 sps:$4 sm:$0xff]  }
 0x5f1   :  { %v3645_v23 = vpop.eup %3644 }
 0x5f2   :  { %v1375_v26 = vadd.f32 0.5, %v1372_v19  ;;  %v1373_v13 = vmul.f32 0.5, %v3645_v23  ;;  %v3647_v33 = vpop.eup %3646  ;;  %v3497_v19 = vld [vmem:[#allocation8 + $0xc8] ss:$16 sps:$4 sm:$0xff]   ;;  %v3502_v23 = vld [vmem:[#allocation8 + $0xa4] ss:$16 sps:$4 sm:$0xff]  }
 0x5f3   :  { %v3649_v4 = vpop.eup %3648 }
 0x5f4   :  { %v1376_v14 = vadd.f32 0.5, %v1373_v13  ;;  %v1380_v63 = vmul.f32 %v3647_v33, %v1375_v26  ;;  %v1374_v5 = vmul.f32 0.5, %v3649_v4  ;;  %v3505_v26 = vld [vmem:[#allocation8 + $0xac] ss:$16 sps:$4 sm:$0xff]   ;;  %v3500_v13 = vld [vmem:[#allocation8 + $0xa0] ss:$16 sps:$4 sm:$0xff]  }
 0x5f5   :  { %v3503_v33 = vld [vmem:[#allocation8 + $0xa8] ss:$16 sps:$4 sm:$0xff]   ;;  %v3514_v4 = vld [vmem:[#allocation8 + $0x64] ss:$16 sps:$4 sm:$0xff]  }
 0x5f6   :  { %v1379_v2 = vmul.f32 %v1376_v14, %v4464_v20  ;;  %v1377_v47 = vadd.f32 0.5, %v1374_v5  ;;  %v3508_v14 = vld [vmem:[#allocation8 + $0x84] ss:$16 sps:$4 sm:$0xff]   ;;  %v3517_v5 = vld [vmem:[#allocation8 + $0x6c] ss:$16 sps:$4 sm:$0xff]  }
 0x5f8   :  { %v4540_v3 = vadd.f32 %v1380_v63, %v1379_v2  ;;  %v3511_v63 = vld [vmem:[#allocation8 + $0x8c] ss:$16 sps:$4 sm:$0xff]   ;;  %v3506_v2 = vld [vmem:[#allocation8 + $0x80] ss:$16 sps:$4 sm:$0xff]  }
 0x5fa   :  { %3650 = vtanh.f32 %v4540_v3 }
 0x607   :  { %v3651_v1 = vpop.eup %3650 }
 0x608   :  { %v4543_v48 = vmul.f32 %v3651_v1, %v1377_v47  ;;  %v3512_v47 = vld [vmem:[#allocation8 + $0x60] ss:$16 sps:$4 sm:$0xff]   ;;  %v3515_v1 = vld [vmem:[#allocation8 + $0x68] ss:$16 sps:$4 sm:$0xff]  }
 0x60a   :  { %v1393_v49 = vpack.c.bf16 %v4543_v48, %v4543_v48 }
 0x60c   :  { %1427 = vmatmul.mubr.bf16.vlgmr.msra.gmra.mxu0 %v1393_v49  ;;  %1468 = vmatmul.mubr.bf16.vlgmr.msra.gmra.mxu1 %v1393_v49  ;;  %v3520_v49 = vld [vmem:[#allocation8 + $0x44] ss:$16 sps:$4 sm:$0xff]  }
 0x60d   :  { %1509 = vmatpush1.bf16.msra.mxu0 %v4395_v9  ;;  %1550 = vmatpush1.bf16.msra.mxu1 %v4398_v16  ;;  %v3490_v9 = vld [vmem:[#allocation8 + $0xe4] ss:$16 sps:$4 sm:$0xff]   ;;  %v3493_v16 = vld [vmem:[#allocation8 + $0xec] ss:$16 sps:$4 sm:$0xff]  }
 0x60e   :  { %1510 = vmatprep.subr.bf16.mxu0 %v4401_v62  ;;  %1551 = vmatprep.subr.bf16.mxu1 %v4404_v24 }
 0x60f   :  { %1540 = vmatprep.mubr.bf16.mxu0 %v5190_v21  ;;  %1581 = vmatprep.mubr.bf16.mxu1 %v5190_v21 }
 0x611   :  { %1511 = vmatpush1.bf16.msra.mxu0 %v4409_v22  ;;  %1552 = vmatpush1.bf16.msra.mxu1 %v4412_v32  ;;  %v5203_v22 = vld [vmem:[#allocation27_spill] sm:$0xff] }
 0x612   :  { %1512 = vmatprep.subr.bf16.mxu0 %v4415_v25  ;;  %1553 = vmatprep.subr.bf16.mxu1 %v4418_v38 }
 0x615   :  { %1513 = vmatpush1.bf16.msra.mxu0 %v4421_v39  ;;  %1554 = vmatpush1.bf16.msra.mxu1 %v4424_v40  ;;  %v5204_v40 = vld [vmem:[#allocation29_spill] sm:$0xff] }
 0x616   :  { %1514 = vmatprep.subr.bf16.mxu0 %v4427_v41  ;;  %1555 = vmatprep.subr.bf16.mxu1 %v4430_v42 }
 0x619   :  { %1515 = vmatpush1.bf16.msra.mxu0 %v4433_v43  ;;  %1556 = vmatpush1.bf16.msra.mxu1 %v4436_v45 }
 0x61a   :  { %1516 = vmatprep.subr.bf16.mxu0 %v4439_v46  ;;  %1557 = vmatprep.subr.bf16.mxu1 %v4488_v31  ;;  %v5205_v46 = vld [vmem:[#allocation30_spill] sm:$0xff] }
 0x61d   :  { %1517 = vmatpush1.bf16.msra.mxu0 %v4491_v27  ;;  %1558 = vmatpush1.bf16.msra.mxu1 %v4494_v6  ;;  %v5206_v6 = vld [vmem:[#allocation28_spill] sm:$0xff] }
 0x61e   :  { %1518 = vmatprep.subr.bf16.mxu0 %v4497_v12  ;;  %1559 = vmatprep.subr.bf16.mxu1 %v4500_v53 }
 0x621   :  { %1519 = vmatpush1.bf16.msra.mxu0 %v4503_v28  ;;  %1560 = vmatpush1.bf16.msra.mxu1 %v4506_v52 }
 0x622   :  { %1520 = vmatprep.subr.bf16.mxu0 %v4509_v54  ;;  %1561 = vmatprep.subr.bf16.mxu1 %v4512_v55 }
 0x625   :  { %1521 = vmatpush1.bf16.msra.mxu0 %v4515_v56  ;;  %1562 = vmatpush1.bf16.msra.mxu1 %v4518_v57 }
 0x626   :  { %1522 = vmatprep.subr.bf16.mxu0 %v4521_v58  ;;  %1563 = vmatprep.subr.bf16.mxu1 %v4524_v59 }
 0x629   :  { %1523 = vmatpush1.bf16.msra.mxu0 %v4527_v60  ;;  %1564 = vmatpush1.bf16.msra.mxu1 %v4530_v61 }
 0x62a   :  { %1840 = vmatprep.subr.bf16.mxu0 %v3490_v9  ;;  %1913 = vmatprep.subr.bf16.mxu1 %v3493_v16  ;;  %v3523_v9 = vld [vmem:[#allocation8 + $0x4c] ss:$16 sps:$4 sm:$0xff]   ;;  %v3518_v16 = vld [vmem:[#allocation8 + $0x40] ss:$16 sps:$4 sm:$0xff]  }
 0x6cc   :  { %v1428_v62 = vpop.f32.mrf.mxu0  ;;  %v1469_v24 = vpop.f32.mrf.mxu1 }
 0x6cd   :  { %v1476_v32 = vadd.f32 %v1428_v62, %v5203_v22  ;;  %v1478_v12 = vadd.f32 %v1469_v24, %v5206_v6  ;;  %v3521_v62 = vld [vmem:[#allocation8 + $0x48] ss:$16 sps:$4 sm:$0xff]   ;;  %v3526_v24 = vld [vmem:[#allocation8 + $0x24] ss:$16 sps:$4 sm:$0xff]   ;;  %v3529_v22 = vld [vmem:[#allocation8 + $0x2c] ss:$16 sps:$4 sm:$0xff]  }
 0x6ce   :  { %v1430_v25 = vpop.f32.mrf.mxu0  ;;  %v1471_v38 = vpop.f32.mrf.mxu1  ;;  %v4633_v6 = vld [vmem:[#allocation9 + $0xa0] ss:$16 sps:$4 sm:$0xff]  }
 0x6cf   :  { %v1480_v39 = vmul.f32 0.5, %v1476_v32  ;;  %v1477_v41 = vadd.f32 %v1430_v25, %v5204_v40  ;;  %v1479_v20 = vadd.f32 %v1471_v38, %v5205_v46  ;;  %v1482_v53 = vmul.f32 0.5, %v1478_v12  ;;  %v3524_v32 = vld [vmem:[#allocation8 + $0x20] ss:$16 sps:$4 sm:$0xff]   ;;  %v3527_v25 = vld [vmem:[#allocation8 + $0x28] ss:$16 sps:$4 sm:$0xff]  }
 0x6d0   :  { %v1432_v42 = vpop.f32.mrf.mxu0  ;;  %v1473_v43 = vpop.f32.mrf.mxu1  ;;  %v3532_v38 = vld [vmem:[#allocation8 + $0x4] ss:$16 sps:$4 sm:$0xff]   ;;  %v3530_v40 = vld [vmem:[#allocation8] ss:$16 sps:$4 sm:$0xff]   ;;  %v4635_v12 = vld [vmem:[#allocation9 + $0xa8] ss:$16 sps:$4 sm:$0xff]  }
 0x6d1   :  { %3652 = vtanh.f32 %v1480_v39  ;;  %v1481_v45 = vmul.f32 0.5, %v1477_v41  ;;  %v3535_v39 = vld [vmem:[#allocation8 + $0xc] ss:$16 sps:$4 sm:$0xff]   ;;  %v3533_v41 = vld [vmem:[#allocation8 + $0x8] ss:$16 sps:$4 sm:$0xff]   ;;  %v1622_v42 = vpack.c.bf16 %v4295_v18, %v4249_v7  ;;  %v1623_v43 = vpack.c.bf16 %v4391_v35, %v4341_v29 }
 0x6d2   :  { %v1433_v31 = vpop.f32.mrf.mxu0  ;;  %v1474_v27 = vpop.f32.mrf.mxu1  ;;  %v4605_v7 = vld [vmem:[#allocation9 + $0xe4] ss:$16 sps:$4 sm:$0xff]   ;;  %v4607_v18 = vld [vmem:[#allocation9 + $0xec] ss:$16 sps:$4 sm:$0xff]   ;;  %v4609_v29 = vld [vmem:[#allocation9 + $0xe0] ss:$16 sps:$4 sm:$0xff]  }
 0x6d3   :  { %3654 = vtanh.f32 %v1481_v45  ;;  %v1624_v45 = vpack.c.bf16 %v4543_v48, %v4467_v34  ;;  %v4611_v35 = vld [vmem:[#allocation9 + $0xe8] ss:$16 sps:$4 sm:$0xff]   ;;  %v4617_v34 = vld [vmem:[#allocation9 + $0xc4] ss:$16 sps:$4 sm:$0xff]   ;;  %v4619_v48 = vld [vmem:[#allocation9 + $0xcc] ss:$16 sps:$4 sm:$0xff]  }
 0x6d4   :  { %3656 = vtanh.f32 %v1479_v20  ;;  %v4621_v46 = vld [vmem:[#allocation9 + $0xc0] ss:$16 sps:$4 sm:$0xff]   ;;  %v4623_v20 = vld [vmem:[#allocation9 + $0xc8] ss:$16 sps:$4 sm:$0xff]   ;;  %v4629_v31 = vld [vmem:[#allocation9 + $0xa4] ss:$16 sps:$4 sm:$0xff]  }
 0x6d5   :  { %3658 = vtanh.f32 %v1482_v53  ;;  %v4631_v27 = vld [vmem:[#allocation9 + $0xac] ss:$16 sps:$4 sm:$0xff]   ;;  %v4641_v53 = vld [vmem:[#allocation9 + $0x84] ss:$16 sps:$4 sm:$0xff]  }
 0x6de   :  { %v3653_v28 = vpop.eup %3652 }
 0x6df   :  { %v1486_v52 = vmul.f32 0.5, %v3653_v28  ;;  %v4643_v28 = vld [vmem:[#allocation9 + $0x8c] ss:$16 sps:$4 sm:$0xff]  }
 0x6e0   :  { %v3655_v54 = vpop.eup %3654 }
 0x6e1   :  { %v1489_v55 = vadd.f32 0.5, %v1486_v52  ;;  %v1487_v56 = vmul.f32 0.5, %v3655_v54  ;;  %v3657_v57 = vpop.eup %3656  ;;  %v4645_v52 = vld [vmem:[#allocation9 + $0x80] ss:$16 sps:$4 sm:$0xff]   ;;  %v4647_v54 = vld [vmem:[#allocation9 + $0x88] ss:$16 sps:$4 sm:$0xff]  }
 0x6e2   :  { %v3659_v50 = vpop.eup %3658 }
 0x6e3   :  { %v1490_v58 = vadd.f32 0.5, %v1487_v56  ;;  %v1494_v59 = vmul.f32 %v3657_v57, %v1489_v55  ;;  %v1488_v51 = vmul.f32 0.5, %v3659_v50  ;;  %v4653_v55 = vld [vmem:[#allocation9 + $0x64] ss:$16 sps:$4 sm:$0xff]   ;;  %v4655_v56 = vld [vmem:[#allocation9 + $0x6c] ss:$16 sps:$4 sm:$0xff]  }
 0x6e4   :  { %v4657_v57 = vld [vmem:[#allocation9 + $0x60] ss:$16 sps:$4 sm:$0xff]  }
 0x6e5   :  { %v1493_v60 = vmul.f32 %v1490_v58, %v4540_v3  ;;  %v1491_v44 = vadd.f32 0.5, %v1488_v51  ;;  %v3509_v3 = vld [vmem:[#allocation8 + $0x88] ss:$16 sps:$4 sm:$0xff]   ;;  %v4669_v50 = vld [vmem:[#allocation9 + $0x40] ss:$16 sps:$4 sm:$0xff]  }
 0x6e6   :  { %v4659_v58 = vld [vmem:[#allocation9 + $0x68] ss:$16 sps:$4 sm:$0xff]  }
 0x6e7   :  { %v4584_v61 = vadd.f32 %v1494_v59, %v1493_v60  ;;  %v4665_v59 = vld [vmem:[#allocation9 + $0x44] ss:$16 sps:$4 sm:$0xff]   ;;  %v4667_v60 = vld [vmem:[#allocation9 + $0x4c] ss:$16 sps:$4 sm:$0xff]   ;;  %v4671_v51 = vld [vmem:[#allocation9 + $0x48] ss:$16 sps:$4 sm:$0xff]  }
 0x6e9   :  { %3660 = vtanh.f32 %v4584_v61 }
 0x6f6   :  { %v3661_v30 = vpop.eup %3660 }
 0x6f7   :  { %v4587_v11 = vmul.f32 %v3661_v30, %v1491_v44  ;;  %v4677_v44 = vld [vmem:[#allocation9 + $0x24] ss:$16 sps:$4 sm:$0xff]   ;;  %v4679_v30 = vld [vmem:[#allocation9 + $0x2c] ss:$16 sps:$4 sm:$0xff]  }
 0x6f9   :  { %v1507_v36 = vpack.c.bf16 %v4587_v11, %v4587_v11 }
 0x6fb   :  { %1541 = vmatmul.mubr.bf16.vlgmr.msra.gmra.mxu0 %v1507_v36  ;;  %1582 = vmatmul.mubr.bf16.vlgmr.msra.gmra.mxu1 %v1507_v36  ;;  %v4689_v36 = vld [vmem:[#allocation9 + $0x4] ss:$16 sps:$4 sm:$0xff]  }
 0x6fc   :  { %1841 = vmatpush1.bf16.msra.mxu0 %v3488_v8  ;;  %1914 = vmatpush1.bf16.msra.mxu1 %v3491_v0  ;;  %v4681_v8 = vld [vmem:[#allocation9 + $0x20] ss:$16 sps:$4 sm:$0xff]   ;;  %v4683_v0 = vld [vmem:[#allocation9 + $0x28] ss:$16 sps:$4 sm:$0xff]  }
 0x6fd   :  { %1842 = vmatprep.subr.bf16.mxu0 %v3496_v37  ;;  %1915 = vmatprep.subr.bf16.mxu1 %v3499_v17  ;;  %v4691_v37 = vld [vmem:[#allocation9 + $0xc] ss:$16 sps:$4 sm:$0xff]   ;;  %v4693_v17 = vld [vmem:[#allocation9] ss:$16 sps:$4 sm:$0xff]  }
 0x6fe   :  { %1872 = vmatprep.mubr.bf16.mxu0 %v5190_v21  ;;  %1945 = vmatprep.mubr.bf16.mxu1 %v5190_v21 }
 0x700   :  { %1843 = vmatpush1.bf16.msra.mxu0 %v3494_v10  ;;  %1916 = vmatpush1.bf16.msra.mxu1 %v3497_v19  ;;  %v4695_v10 = vld [vmem:[#allocation9 + $0x8] ss:$16 sps:$4 sm:$0xff]  }
 0x701   :  { %1844 = vmatprep.subr.bf16.mxu0 %v3502_v23  ;;  %1917 = vmatprep.subr.bf16.mxu1 %v3505_v26  ;;  %v5207_v26 = vld [vmem:[#allocation31_spill] sm:$0xff] }
 0x704   :  { %1845 = vmatpush1.bf16.msra.mxu0 %v3500_v13  ;;  %1918 = vmatpush1.bf16.msra.mxu1 %v3503_v33 }
 0x705   :  { %1846 = vmatprep.subr.bf16.mxu0 %v3508_v14  ;;  %1919 = vmatprep.subr.bf16.mxu1 %v3511_v63 }
 0x708   :  { %1847 = vmatpush1.bf16.msra.mxu0 %v3506_v2  ;;  %1920 = vmatpush1.bf16.msra.mxu1 %v3509_v3 }
 0x709   :  { %1848 = vmatprep.subr.bf16.mxu0 %v3514_v4  ;;  %1921 = vmatprep.subr.bf16.mxu1 %v3517_v5 }
 0x70c   :  { %1849 = vmatpush1.bf16.msra.mxu0 %v3512_v47  ;;  %1922 = vmatpush1.bf16.msra.mxu1 %v3515_v1  ;;  %v5208_v47 = vld [vmem:[#allocation33_spill] sm:$0xff] }
 0x70d   :  { %1850 = vmatprep.subr.bf16.mxu0 %v3520_v49  ;;  %1923 = vmatprep.subr.bf16.mxu1 %v3523_v9 }
 0x710   :  { %1851 = vmatpush1.bf16.msra.mxu0 %v3518_v16  ;;  %1924 = vmatpush1.bf16.msra.mxu1 %v3521_v62  ;;  %v5209_v16 = vld [vmem:[#allocation32_spill] sm:$0xff] }
 0x711   :  { %1852 = vmatprep.subr.bf16.mxu0 %v3526_v24  ;;  %1925 = vmatprep.subr.bf16.mxu1 %v3529_v22 }
 0x714   :  { %1853 = vmatpush1.bf16.msra.mxu0 %v3524_v32  ;;  %1926 = vmatpush1.bf16.msra.mxu1 %v3527_v25 }
 0x715   :  { %1854 = vmatprep.subr.bf16.mxu0 %v3532_v38  ;;  %1927 = vmatprep.subr.bf16.mxu1 %v3535_v39 }
 0x718   :  { %1855 = vmatpush1.bf16.msra.mxu0 %v3530_v40  ;;  %1928 = vmatpush1.bf16.msra.mxu1 %v3533_v41 }
 0x719   :  { %2214 = vmatprep.subr.bf16.mxu0 %v4605_v7  ;;  %2255 = vmatprep.subr.bf16.mxu1 %v4607_v18 }
 0x71b   :  { %1873 = vmatmul.mubr.bf16.vlgmr.msra.gmra.mxu0 %v1622_v42  ;;  %1946 = vmatmul.mubr.bf16.vlgmr.msra.gmra.mxu1 %v1622_v42 }
 0x71c   :  { %1882 = vmatprep.mubr.bf16.mxu0 %v5190_v21  ;;  %1955 = vmatprep.mubr.bf16.mxu1 %v5190_v21 }
 0x71d   :  { %2215 = vmatpush1.bf16.msra.mxu0 %v4609_v29  ;;  %2256 = vmatpush1.bf16.msra.mxu1 %v4611_v35 }
 0x71e   :  { %2216 = vmatprep.subr.bf16.mxu0 %v4617_v34  ;;  %2257 = vmatprep.subr.bf16.mxu1 %v4619_v48 }
 0x721   :  { %2217 = vmatpush1.bf16.msra.mxu0 %v4621_v46  ;;  %2258 = vmatpush1.bf16.msra.mxu1 %v4623_v20 }
 0x722   :  { %2218 = vmatprep.subr.bf16.mxu0 %v4629_v31  ;;  %2259 = vmatprep.subr.bf16.mxu1 %v4631_v27 }
 0x723   :  { %1883 = vmatmul.mubr.bf16.gmra.mxu0 %v1623_v43  ;;  %1956 = vmatmul.mubr.bf16.gmra.mxu1 %v1623_v43 }
 0x724   :  { %1892 = vmatprep.mubr.bf16.mxu0 %v5190_v21  ;;  %1965 = vmatprep.mubr.bf16.mxu1 %v5190_v21 }
 0x725   :  { %2219 = vmatpush1.bf16.msra.mxu0 %v4633_v6  ;;  %2260 = vmatpush1.bf16.msra.mxu1 %v4635_v12 }
 0x726   :  { %2220 = vmatprep.subr.bf16.mxu0 %v4641_v53  ;;  %2261 = vmatprep.subr.bf16.mxu1 %v4643_v28 }
 0x729   :  { %2221 = vmatpush1.bf16.msra.mxu0 %v4645_v52  ;;  %2262 = vmatpush1.bf16.msra.mxu1 %v4647_v54 }
 0x72a   :  { %2222 = vmatprep.subr.bf16.mxu0 %v4653_v55  ;;  %2263 = vmatprep.subr.bf16.mxu1 %v4655_v56 }
 0x72b   :  { %1893 = vmatmul.mubr.bf16.gmra.mxu0 %v1624_v45  ;;  %1966 = vmatmul.mubr.bf16.gmra.mxu1 %v1624_v45 }
 0x72c   :  { %1902 = vmatprep.mubr.bf16.mxu0 %v5190_v21  ;;  %1975 = vmatprep.mubr.bf16.mxu1 %v5190_v21 }
 0x72d   :  { %2223 = vmatpush1.bf16.msra.mxu0 %v4657_v57  ;;  %2264 = vmatpush1.bf16.msra.mxu1 %v4659_v58 }
 0x72e   :  { %2224 = vmatprep.subr.bf16.mxu0 %v4665_v59  ;;  %2265 = vmatprep.subr.bf16.mxu1 %v4667_v60 }
 0x731   :  { %2225 = vmatpush1.bf16.msra.mxu0 %v4669_v50  ;;  %2266 = vmatpush1.bf16.msra.mxu1 %v4671_v51 }
 0x732   :  { %2226 = vmatprep.subr.bf16.mxu0 %v4677_v44  ;;  %2267 = vmatprep.subr.bf16.mxu1 %v4679_v30 }
 0x735   :  { %2227 = vmatpush1.bf16.msra.mxu0 %v4681_v8  ;;  %2268 = vmatpush1.bf16.msra.mxu1 %v4683_v0 }
 0x736   :  { %2228 = vmatprep.subr.bf16.mxu0 %v4689_v36  ;;  %2269 = vmatprep.subr.bf16.mxu1 %v4691_v37 }
 0x739   :  { %2229 = vmatpush1.bf16.msra.mxu0 %v4693_v17  ;;  %2270 = vmatpush1.bf16.msra.mxu1 %v4695_v10 }
 0x73a   :  { %2323 = vmatprep.subr.bf16.mxu0 %v4605_v7  ;;  %2364 = vmatprep.subr.bf16.mxu1 %v4607_v18 }
 0x7bb   :  { %v1542_v19 = vpop.f32.mrf.mxu0  ;;  %v1583_v23 = vpop.f32.mrf.mxu1 }
 0x7bc   :  { %v1590_v13 = vadd.f32 %v1542_v19, %v5207_v26  ;;  %v1592_v62 = vadd.f32 %v1583_v23, %v5209_v16 }
 0x7bd   :  { %v1544_v33 = vpop.f32.mrf.mxu0  ;;  %v1585_v14 = vpop.f32.mrf.mxu1 }
 0x7be   :  { %v1594_v63 = vmul.f32 0.5, %v1590_v13  ;;  %v1591_v2 = vadd.f32 %v1544_v33, %v4236_v15  ;;  %v1593_v1 = vadd.f32 %v1585_v14, %v5208_v47  ;;  %v1596_v24 = vmul.f32 0.5, %v1592_v62 }
 0x7bf   :  { %v1546_v3 = vpop.f32.mrf.mxu0  ;;  %v1587_v4 = vpop.f32.mrf.mxu1 }
 0x7c0   :  { %3662 = vtanh.f32 %v1594_v63  ;;  %v1595_v5 = vmul.f32 0.5, %v1591_v2 }
 0x7c1   :  { %v1547_v49 = vpop.f32.mrf.mxu0  ;;  %v1588_v9 = vpop.f32.mrf.mxu1 }
 0x7c2   :  { %3664 = vtanh.f32 %v1595_v5 }
 0x7c3   :  { %3666 = vtanh.f32 %v1593_v1 }
 0x7c4   :  { %3668 = vtanh.f32 %v1596_v24 }
 0x7cd   :  { %v3663_v22 = vpop.eup %3662 }
 0x7ce   :  { %v1600_v32 = vmul.f32 0.5, %v3663_v22 }
 0x7cf   :  { %v3665_v25 = vpop.eup %3664 }
 0x7d0   :  { %v1603_v38 = vadd.f32 0.5, %v1600_v32  ;;  %v1601_v39 = vmul.f32 0.5, %v3665_v25  ;;  %v3667_v15 = vpop.eup %3666 }
 0x7d1   :  { %v3669_v45 = vpop.eup %3668 }
 0x7d2   :  { %v1604_v40 = vadd.f32 0.5, %v1601_v39  ;;  %v1608_v41 = vmul.f32 %v3667_v15, %v1603_v38  ;;  %v1602_v19 = vmul.f32 0.5, %v3669_v45 }
 0x7d4   :  { %v1607_v42 = vmul.f32 %v1604_v40, %v4584_v61  ;;  %v1605_v26 = vadd.f32 0.5, %v1602_v19 }
 0x7d6   :  { %v1609_v43 = vadd.f32 %v1608_v41, %v1607_v42 }
 0x7d8   :  { %3670 = vtanh.f32 %v1609_v43  ;;  %v1658_v43 = vld [vmem:[%s5158_s6] sm:$0xf] }
 0x7db   :  { %v1874_v61 = vpop.f32.mrf.mxu0 }
 0x7dd   :  { %v1876_v14 = vpop.f32.mrf.mxu0 }
 0x7df   :  { %v4747_v2 = vpop.f32.mrf.mxu0 }
 0x7e1   :  { %v4751_v4 = vpop.f32.mrf.mxu0 }
 0x7e3   :  { %v4755_v47 = vpop.f32.mrf.mxu0 }
 0x7e5   :  { %v3671_v13 = vpop.eup %3670  ;;  %v4759_v49 = vpop.f32.mrf.mxu0 }
 0x7e6   :  { %v1611_v33 = vmul.f32 %v3671_v13, %v1605_v26 }
 0x7e7   :  { %v4763_v16 = vpop.f32.mrf.mxu0 }
 0x7e8   :  { %v1625_v23 = vpack.c.bf16 %v1611_v33, %v4587_v11  ;;  %v1947_v11 = vpop.f32.mrf.mxu1  ;;  %5212 = vst [vmem:[#allocation18_spill] sm:$0xff] %v4763_v16  ;;  %v5228_v33 = vld [vmem:[#allocation14_spill] sm:$0xff] }
 0x7e9   :  { %v4767_v24 = vpop.f32.mrf.mxu0 }
 0x7ea   :  { %1903 = vmatmul.mubr.bf16.gmra.mxu0 %v1625_v23  ;;  %1976 = vmatmul.mubr.bf16.gmra.mxu1 %v1625_v23  ;;  %v1949_v63 = vpop.f32.mrf.mxu1  ;;  %5214 = vst [vmem:[#allocation19_spill] sm:$0xff] %v4767_v24  ;;  %v5229_v23 = vsub.s32 0, %v5228_v33 }
 0x7eb   :  { %2246 = vmatprep.mubr.bf16.mxu0 %v5190_v21  ;;  %2287 = vmatprep.mubr.bf16.mxu1 %v5190_v21  ;;  %v4771_v32 = vpop.f32.mrf.mxu0 }
 0x7ec   :  { %v4749_v3 = vpop.f32.mrf.mxu1  ;;  %5216 = vst [vmem:[#allocation22_spill] sm:$0xff] %v4771_v32 }
 0x7ed   :  { %v4775_v38 = vpop.f32.mrf.mxu0 }
 0x7ee   :  { %v4753_v5 = vpop.f32.mrf.mxu1  ;;  %5218 = vst [vmem:[#allocation23_spill] sm:$0xff] %v4775_v38 }
 0x7ef   :  { %v4779_v15 = vpop.f32.mrf.mxu0 }
 0x7f0   :  { %v4757_v1 = vpop.f32.mrf.mxu1  ;;  %5220 = vst [vmem:[#allocation26_spill] sm:$0xff] %v4779_v15  ;;  %v4800_v15 = vrot.slane %v1658_v43, %v5229_v23  ;;  %v5235_v23 = vsub.s32 3, %v5228_v33 }
 0x7f1   :  { %5210 = vst [vmem:[#allocation15_spill] sm:$0xff] %v4757_v1  ;;  %v4783_v41 = vpop.f32.mrf.mxu0 }
 0x7f2   :  { %2247 = vmatmul.mubr.bf16.vlgmr.msra.gmra.mxu0 %v5190_v21  ;;  %2288 = vmatmul.mubr.bf16.vlgmr.msra.gmra.mxu1 %v5190_v21  ;;  %v4761_v9 = vpop.f32.mrf.mxu1  ;;  %5222 = vst [vmem:[#allocation27_spill] sm:$0xff] %v4783_v41  ;;  %v4818_v32 = vrot.slane %v1658_v43, %v5235_v23 }
 0x7f3   :  { %2324 = vmatpush1.bf16.msra.mxu0 %v4609_v29  ;;  %2365 = vmatpush1.bf16.msra.mxu1 %v4611_v35  ;;  %5211 = vst [vmem:[#allocation17_spill] sm:$0xff] %v4761_v9  ;;  %v5236_v9 = vsub.s32 2, %v5228_v33 }
 0x7f4   :  { %2325 = vmatprep.subr.bf16.mxu0 %v4617_v34  ;;  %2366 = vmatprep.subr.bf16.mxu1 %v4619_v48  ;;  %v4765_v62 = vpop.f32.mrf.mxu1 }
 0x7f5   :  { %2355 = vmatprep.mubr.bf16.mxu0 %v5190_v21  ;;  %2396 = vmatprep.mubr.bf16.mxu1 %v5190_v21  ;;  %5213 = vst [vmem:[#allocation16_spill] sm:$0xff] %v4765_v62 }
 0x7f6   :  { %v4769_v22 = vpop.f32.mrf.mxu1 }
 0x7f7   :  { %2326 = vmatpush1.bf16.msra.mxu0 %v4621_v46  ;;  %2367 = vmatpush1.bf16.msra.mxu1 %v4623_v20  ;;  %5215 = vst [vmem:[#allocation21_spill] sm:$0xff] %v4769_v22 }
 0x7f8   :  { %2327 = vmatprep.subr.bf16.mxu0 %v4629_v31  ;;  %2368 = vmatprep.subr.bf16.mxu1 %v4631_v27  ;;  %v4773_v25 = vpop.f32.mrf.mxu1 }
 0x7f9   :  { %5217 = vst [vmem:[#allocation20_spill] sm:$0xff] %v4773_v25 }
 0x7fa   :  { %v4777_v39 = vpop.f32.mrf.mxu1 }
 0x7fb   :  { %2328 = vmatpush1.bf16.msra.mxu0 %v4633_v6  ;;  %2369 = vmatpush1.bf16.msra.mxu1 %v4635_v12  ;;  %5219 = vst [vmem:[#allocation25_spill] sm:$0xff] %v4777_v39 }
 0x7fc   :  { %2329 = vmatprep.subr.bf16.mxu0 %v4641_v53  ;;  %2370 = vmatprep.subr.bf16.mxu1 %v4643_v28  ;;  %v4781_v40 = vpop.f32.mrf.mxu1 }
 0x7fd   :  { %5221 = vst [vmem:[#allocation24_spill] sm:$0xff] %v4781_v40 }
 0x7fe   :  { %v4785_v42 = vpop.f32.mrf.mxu1 }
 0x7ff   :  { %2330 = vmatpush1.bf16.msra.mxu0 %v4645_v52  ;;  %2371 = vmatpush1.bf16.msra.mxu1 %v4647_v54  ;;  %5223 = vst [vmem:[#allocation29_spill] sm:$0xff] %v4785_v42  ;;  %v5232_v42 = vsub.s32 1, %v5228_v33 }
 0x800   :  { %2331 = vmatprep.subr.bf16.mxu0 %v4653_v55  ;;  %2372 = vmatprep.subr.bf16.mxu1 %v4655_v56 }
 0x801   :  { %v4808_v25 = vrot.slane %v1658_v43, %v5232_v42 }
 0x803   :  { %2332 = vmatpush1.bf16.msra.mxu0 %v4657_v57  ;;  %2373 = vmatpush1.bf16.msra.mxu1 %v4659_v58  ;;  %v1877_v38 = vadd.f32 %v1876_v14, %v4808_v25  ;;  %v4823_v14 = vrot.slane %v1658_v43, %v5236_v9 }
 0x804   :  { %2333 = vmatprep.subr.bf16.mxu0 %v4665_v59  ;;  %2374 = vmatprep.subr.bf16.mxu1 %v4667_v60 }
 0x807   :  { %2334 = vmatpush1.bf16.msra.mxu0 %v4669_v50  ;;  %2375 = vmatpush1.bf16.msra.mxu1 %v4671_v51 }
 0x808   :  { %2335 = vmatprep.subr.bf16.mxu0 %v4677_v44  ;;  %2376 = vmatprep.subr.bf16.mxu1 %v4679_v30 }
 0x80b   :  { %2336 = vmatpush1.bf16.msra.mxu0 %v4681_v8  ;;  %2377 = vmatpush1.bf16.msra.mxu1 %v4683_v0 }
 0x80c   :  { %2337 = vmatprep.subr.bf16.mxu0 %v4689_v36  ;;  %2378 = vmatprep.subr.bf16.mxu1 %v4691_v37 }
 0x80f   :  { %2338 = vmatpush1.bf16.msra.mxu0 %v4693_v17  ;;  %2379 = vmatpush1.bf16.msra.mxu1 %v4695_v10 }
 0x810   :  { %2432 = vmatprep.subr.bf16.mxu0 %v4605_v7  ;;  %2473 = vmatprep.subr.bf16.mxu1 %v4607_v18 }
 0x8aa   :  { %v4790_v45 = vpop.f32.mrf.mxu0  ;;  %v4792_v19 = vpop.f32.mrf.mxu1 }
 0x8ab   :  { %5224 = vst [vmem:[#allocation30_spill] sm:$0xff] %v4790_v45  ;;  %5225 = vst [vmem:[#allocation28_spill] sm:$0xff] %v4792_v19  ;;  %v1875_v19 = vadd.f32 %v1874_v61, %v4800_v15 }
 0x8ac   :  { %v4794_v26 = vpop.f32.mrf.mxu0  ;;  %v4796_v13 = vpop.f32.mrf.mxu1 }
 0x8ad   :  { %5226 = vst [vmem:[#allocation31_spill] sm:$0xff] %v4794_v26  ;;  %5227 = vst [vmem:[#allocation33_spill] sm:$0xff] %v4796_v13 }
 0x8ae   :  { %v4802_v40 = vpop.f32.mrf.mxu0  ;;  %v4804_v41 = vpop.f32.mrf.mxu1 }
 0x8af   :  { %5230 = vst [vmem:[#allocation32_spill] sm:$0xff] %v4802_v40  ;;  %5231 = vst [vmem:[#allocation14_spill] sm:$0xff] %v4804_v41 }
 0x8b0   :  { %v4810_v39 = vpop.f32.mrf.mxu0  ;;  %v4812_v45 = vpop.f32.mrf.mxu1 }
 0x8b1   :  { %5233 = vst [vmem:[#allocation34_spill] sm:$0xff] %v4810_v39  ;;  %5234 = vst [vmem:[#allocation35_spill] sm:$0xff] %v4812_v45  ;;  %v1950_v39 = vadd.f32 %v1949_v63, %v4818_v32 }
 0x8b2   :  { %v2248_v26 = vpop.f32.mrf.mxu0  ;;  %v2289_v13 = vpop.f32.mrf.mxu1 }
 0x8b3   :  { %v2296_v40 = vadd.f32 %v2248_v26, %v1875_v19  ;;  %v1948_v19 = vadd.f32 %v1947_v11, %v4823_v14 }
 0x8b4   :  { %v2250_v41 = vpop.f32.mrf.mxu0  ;;  %v2291_v62 = vpop.f32.mrf.mxu1 }
 0x8b5   :  { %v2300_v22 = vmul.f32 0.5, %v2296_v40  ;;  %v2297_v42 = vadd.f32 %v2250_v41, %v1877_v38  ;;  %v2299_v23 = vadd.f32 %v2291_v62, %v1950_v39  ;;  %v2298_v26 = vadd.f32 %v2289_v13, %v1948_v19 }
 0x8b6   :  { %v2252_v24 = vpop.f32.mrf.mxu0  ;;  %v2293_v16 = vpop.f32.mrf.mxu1  ;;  %v1879_v13 = vadd.f32 %v4747_v2, %v4800_v15 }
 0x8b7   :  { %3672 = vtanh.f32 %v2300_v22  ;;  %v2301_v45 = vmul.f32 0.5, %v2297_v42  ;;  %v2302_v40 = vmul.f32 0.5, %v2298_v26  ;;  %v1881_v26 = vadd.f32 %v4751_v4, %v4808_v25 }
 0x8b8   :  { %v2253_v61 = vpop.f32.mrf.mxu0  ;;  %v2294_v1 = vpop.f32.mrf.mxu1  ;;  %v1952_v4 = vadd.f32 %v4749_v3, %v4823_v14 }
 0x8b9   :  { %3674 = vtanh.f32 %v2301_v45 }
 0x8ba   :  { %3676 = vtanh.f32 %v2299_v23 }
 0x8bb   :  { %3678 = vtanh.f32 %v2302_v40 }
 0x8c4   :  { %v3673_v38 = vpop.eup %3672 }
 0x8c5   :  { %v2306_v24 = vmul.f32 0.5, %v3673_v38 }
 0x8c6   :  { %v3675_v16 = vpop.eup %3674 }
 0x8c7   :  { %v2309_v41 = vadd.f32 0.5, %v2306_v24  ;;  %v2307_v63 = vmul.f32 0.5, %v3675_v16  ;;  %v3677_v42 = vpop.eup %3676  ;;  %v1954_v16 = vadd.f32 %v4753_v5, %v4818_v32 }
 0x8c8   :  { %v3679_v9 = vpop.eup %3678 }
 0x8c9   :  { %v2310_v22 = vadd.f32 0.5, %v2307_v63  ;;  %v2314_v61 = vmul.f32 %v3677_v42, %v2309_v41  ;;  %v2308_v62 = vmul.f32 0.5, %v3679_v9 }
 0x8cb   :  { %v2313_v1 = vmul.f32 0.0, %v2310_v22  ;;  %v2311_v11 = vadd.f32 0.5, %v2308_v62 }
 0x8cd   :  { %v4826_v33 = vadd.f32 %v2314_v61, %v2313_v1 }
 0x8cf   :  { %3680 = vtanh.f32 %v4826_v33 }
 0x8dc   :  { %v3681_v39 = vpop.eup %3680 }
 0x8dd   :  { %v2317_v43 = vmul.f32 %v3681_v39, %v2311_v11 }
 0x8df   :  { %v2322_v45 = vpack.c.bf16 %v2317_v43, %v2317_v43 }
 0x8e1   :  { %2356 = vmatmul.mubr.bf16.vlgmr.msra.gmra.mxu0 %v2322_v45  ;;  %2397 = vmatmul.mubr.bf16.vlgmr.msra.gmra.mxu1 %v2322_v45 }
 0x8e2   :  { %2433 = vmatpush1.bf16.msra.mxu0 %v4609_v29  ;;  %2474 = vmatpush1.bf16.msra.mxu1 %v4611_v35 }
 0x8e3   :  { %2434 = vmatprep.subr.bf16.mxu0 %v4617_v34  ;;  %2475 = vmatprep.subr.bf16.mxu1 %v4619_v48 }
 0x8e4   :  { %2464 = vmatprep.mubr.bf16.mxu0 %v5190_v21  ;;  %2505 = vmatprep.mubr.bf16.mxu1 %v5190_v21 }
 0x8e6   :  { %2435 = vmatpush1.bf16.msra.mxu0 %v4621_v46  ;;  %2476 = vmatpush1.bf16.msra.mxu1 %v4623_v20 }
 0x8e7   :  { %2436 = vmatprep.subr.bf16.mxu0 %v4629_v31  ;;  %2477 = vmatprep.subr.bf16.mxu1 %v4631_v27 }
 0x8ea   :  { %2437 = vmatpush1.bf16.msra.mxu0 %v4633_v6  ;;  %2478 = vmatpush1.bf16.msra.mxu1 %v4635_v12 }
 0x8eb   :  { %2438 = vmatprep.subr.bf16.mxu0 %v4641_v53  ;;  %2479 = vmatprep.subr.bf16.mxu1 %v4643_v28 }
 0x8ee   :  { %2439 = vmatpush1.bf16.msra.mxu0 %v4645_v52  ;;  %2480 = vmatpush1.bf16.msra.mxu1 %v4647_v54 }
 0x8ef   :  { %2440 = vmatprep.subr.bf16.mxu0 %v4653_v55  ;;  %2481 = vmatprep.subr.bf16.mxu1 %v4655_v56 }
 0x8f2   :  { %2441 = vmatpush1.bf16.msra.mxu0 %v4657_v57  ;;  %2482 = vmatpush1.bf16.msra.mxu1 %v4659_v58 }
 0x8f3   :  { %2442 = vmatprep.subr.bf16.mxu0 %v4665_v59  ;;  %2483 = vmatprep.subr.bf16.mxu1 %v4667_v60 }
 0x8f6   :  { %2443 = vmatpush1.bf16.msra.mxu0 %v4669_v50  ;;  %2484 = vmatpush1.bf16.msra.mxu1 %v4671_v51 }
 0x8f7   :  { %2444 = vmatprep.subr.bf16.mxu0 %v4677_v44  ;;  %2485 = vmatprep.subr.bf16.mxu1 %v4679_v30 }
 0x8fa   :  { %2445 = vmatpush1.bf16.msra.mxu0 %v4681_v8  ;;  %2486 = vmatpush1.bf16.msra.mxu1 %v4683_v0 }
 0x8fb   :  { %2446 = vmatprep.subr.bf16.mxu0 %v4689_v36  ;;  %2487 = vmatprep.subr.bf16.mxu1 %v4691_v37 }
 0x8fe   :  { %2447 = vmatpush1.bf16.msra.mxu0 %v4693_v17  ;;  %2488 = vmatpush1.bf16.msra.mxu1 %v4695_v10 }
 0x8ff   :  { %2541 = vmatprep.subr.bf16.mxu0 %v4605_v7  ;;  %2582 = vmatprep.subr.bf16.mxu1 %v4607_v18 }
 0x9a1   :  { %v2357_v23 = vpop.f32.mrf.mxu0  ;;  %v2398_v19 = vpop.f32.mrf.mxu1 }
 0x9a2   :  { %v2405_v40 = vadd.f32 %v2357_v23, %v1879_v13  ;;  %v2407_v62 = vadd.f32 %v2398_v19, %v1952_v4 }
 0x9a3   :  { %v2359_v38 = vpop.f32.mrf.mxu0  ;;  %v2400_v24 = vpop.f32.mrf.mxu1 }
 0x9a4   :  { %v2409_v41 = vmul.f32 0.5, %v2405_v40  ;;  %v2406_v63 = vadd.f32 %v2359_v38, %v1881_v26  ;;  %v2408_v61 = vadd.f32 %v2400_v24, %v1954_v16  ;;  %v2411_v11 = vmul.f32 0.5, %v2407_v62  ;;  %v5237_v62 = vld [vmem:[#allocation17_spill] sm:$0xff] }
 0x9a5   :  { %v2361_v22 = vpop.f32.mrf.mxu0  ;;  %v2402_v42 = vpop.f32.mrf.mxu1 }
 0x9a6   :  { %3682 = vtanh.f32 %v2409_v41  ;;  %v2410_v1 = vmul.f32 0.5, %v2406_v63 }
 0x9a7   :  { %v2362_v9 = vpop.f32.mrf.mxu0  ;;  %v2403_v2 = vpop.f32.mrf.mxu1 }
 0x9a8   :  { %3684 = vtanh.f32 %v2410_v1 }
 0x9a9   :  { %3686 = vtanh.f32 %v2408_v61  ;;  %v1887_v61 = vadd.f32 %v4759_v49, %v4808_v25 }
 0x9aa   :  { %3688 = vtanh.f32 %v2411_v11  ;;  %v1960_v11 = vadd.f32 %v5237_v62, %v4818_v32 }
 0x9b3   :  { %v3683_v39 = vpop.eup %3682 }
 0x9b4   :  { %v2415_v43 = vmul.f32 0.5, %v3683_v39 }
 0x9b5   :  { %v3685_v45 = vpop.eup %3684 }
 0x9b6   :  { %v2418_v5 = vadd.f32 0.5, %v2415_v43  ;;  %v2416_v13 = vmul.f32 0.5, %v3685_v45  ;;  %v3687_v23 = vpop.eup %3686 }
 0x9b7   :  { %v3689_v16 = vpop.eup %3688 }
 0x9b8   :  { %v2419_v26 = vadd.f32 0.5, %v2416_v13  ;;  %v2423_v40 = vmul.f32 %v3687_v23, %v2418_v5  ;;  %v2417_v41 = vmul.f32 0.5, %v3689_v16 }
 0x9ba   :  { %v2422_v38 = vmul.f32 %v2419_v26, %v4826_v33  ;;  %v2420_v3 = vadd.f32 0.5, %v2417_v41  ;;  %v1885_v33 = vadd.f32 %v4755_v47, %v4800_v15 }
 0x9bc   :  { %v4872_v24 = vadd.f32 %v2423_v40, %v2422_v38  ;;  %v5238_v40 = vld [vmem:[#allocation15_spill] sm:$0xff] }
 0x9bd   :  { %v1958_v49 = vadd.f32 %v5238_v40, %v4823_v14 }
 0x9be   :  { %3690 = vtanh.f32 %v4872_v24 }
 0x9cb   :  { %v3691_v19 = vpop.eup %3690 }
 0x9cc   :  { %v2426_v63 = vmul.f32 %v3691_v19, %v2420_v3 }
 0x9ce   :  { %v2431_v22 = vpack.c.bf16 %v2426_v63, %v2426_v63 }
 0x9d0   :  { %2465 = vmatmul.mubr.bf16.vlgmr.msra.gmra.mxu0 %v2431_v22  ;;  %2506 = vmatmul.mubr.bf16.vlgmr.msra.gmra.mxu1 %v2431_v22 }
 0x9d1   :  { %2542 = vmatpush1.bf16.msra.mxu0 %v4609_v29  ;;  %2583 = vmatpush1.bf16.msra.mxu1 %v4611_v35 }
 0x9d2   :  { %2543 = vmatprep.subr.bf16.mxu0 %v4617_v34  ;;  %2584 = vmatprep.subr.bf16.mxu1 %v4619_v48 }
 0x9d3   :  { %2573 = vmatprep.mubr.bf16.mxu0 %v5190_v21  ;;  %2614 = vmatprep.mubr.bf16.mxu1 %v5190_v21 }
 0x9d5   :  { %2544 = vmatpush1.bf16.msra.mxu0 %v4621_v46  ;;  %2585 = vmatpush1.bf16.msra.mxu1 %v4623_v20 }
 0x9d6   :  { %2545 = vmatprep.subr.bf16.mxu0 %v4629_v31  ;;  %2586 = vmatprep.subr.bf16.mxu1 %v4631_v27 }
 0x9d9   :  { %2546 = vmatpush1.bf16.msra.mxu0 %v4633_v6  ;;  %2587 = vmatpush1.bf16.msra.mxu1 %v4635_v12 }
 0x9da   :  { %2547 = vmatprep.subr.bf16.mxu0 %v4641_v53  ;;  %2588 = vmatprep.subr.bf16.mxu1 %v4643_v28 }
 0x9dd   :  { %2548 = vmatpush1.bf16.msra.mxu0 %v4645_v52  ;;  %2589 = vmatpush1.bf16.msra.mxu1 %v4647_v54 }
 0x9de   :  { %2549 = vmatprep.subr.bf16.mxu0 %v4653_v55  ;;  %2590 = vmatprep.subr.bf16.mxu1 %v4655_v56 }
 0x9e1   :  { %2550 = vmatpush1.bf16.msra.mxu0 %v4657_v57  ;;  %2591 = vmatpush1.bf16.msra.mxu1 %v4659_v58 }
 0x9e2   :  { %2551 = vmatprep.subr.bf16.mxu0 %v4665_v59  ;;  %2592 = vmatprep.subr.bf16.mxu1 %v4667_v60 }
 0x9e5   :  { %2552 = vmatpush1.bf16.msra.mxu0 %v4669_v50  ;;  %2593 = vmatpush1.bf16.msra.mxu1 %v4671_v51 }
 0x9e6   :  { %2553 = vmatprep.subr.bf16.mxu0 %v4677_v44  ;;  %2594 = vmatprep.subr.bf16.mxu1 %v4679_v30 }
 0x9e9   :  { %2554 = vmatpush1.bf16.msra.mxu0 %v4681_v8  ;;  %2595 = vmatpush1.bf16.msra.mxu1 %v4683_v0 }
 0x9ea   :  { %2555 = vmatprep.subr.bf16.mxu0 %v4689_v36  ;;  %2596 = vmatprep.subr.bf16.mxu1 %v4691_v37 }
 0x9ed   :  { %2556 = vmatpush1.bf16.msra.mxu0 %v4693_v17  ;;  %2597 = vmatpush1.bf16.msra.mxu1 %v4695_v10 }
 0x9ee   :  { %2650 = vmatprep.subr.bf16.mxu0 %v4605_v7  ;;  %2691 = vmatprep.subr.bf16.mxu1 %v4607_v18 }
 0xa90   :  { %v2466_v42 = vpop.f32.mrf.mxu0  ;;  %v2507_v1 = vpop.f32.mrf.mxu1 }
 0xa91   :  { %v2514_v9 = vadd.f32 %v2466_v42, %v1885_v33  ;;  %v2516_v38 = vadd.f32 %v2507_v1, %v1958_v49 }
 0xa92   :  { %v2468_v2 = vpop.f32.mrf.mxu0  ;;  %v2509_v4 = vpop.f32.mrf.mxu1 }
 0xa93   :  { %v2518_v39 = vmul.f32 0.5, %v2514_v9  ;;  %v2515_v43 = vadd.f32 %v2468_v2, %v1887_v61  ;;  %v2517_v23 = vadd.f32 %v2509_v4, %v1960_v11  ;;  %v2520_v16 = vmul.f32 0.5, %v2516_v38  ;;  %v5241_v38 = vld [vmem:[#allocation21_spill] sm:$0xff] }
 0xa94   :  { %v2470_v45 = vpop.f32.mrf.mxu0  ;;  %v2511_v5 = vpop.f32.mrf.mxu1 }
 0xa95   :  { %3692 = vtanh.f32 %v2518_v39  ;;  %v2519_v13 = vmul.f32 0.5, %v2515_v43 }
 0xa96   :  { %v2471_v26 = vpop.f32.mrf.mxu0  ;;  %v2512_v47 = vpop.f32.mrf.mxu1 }
 0xa97   :  { %3694 = vtanh.f32 %v2519_v13 }
 0xa98   :  { %3696 = vtanh.f32 %v2517_v23  ;;  %v5240_v23 = vld [vmem:[#allocation19_spill] sm:$0xff] }
 0xa99   :  { %3698 = vtanh.f32 %v2520_v16  ;;  %v1891_v26 = vadd.f32 %v5240_v23, %v4808_v25  ;;  %v1964_v16 = vadd.f32 %v5241_v38, %v4818_v32 }
 0xaa2   :  { %v3693_v41 = vpop.eup %3692 }
 0xaa3   :  { %v2524_v3 = vmul.f32 0.5, %v3693_v41 }
 0xaa4   :  { %v3695_v19 = vpop.eup %3694 }
 0xaa5   :  { %v2527_v63 = vadd.f32 0.5, %v2524_v3  ;;  %v2525_v22 = vmul.f32 0.5, %v3695_v19  ;;  %v3697_v33 = vpop.eup %3696 }
 0xaa6   :  { %v3699_v4 = vpop.eup %3698 }
 0xaa7   :  { %v2528_v42 = vadd.f32 0.5, %v2525_v22  ;;  %v2532_v61 = vmul.f32 %v3697_v33, %v2527_v63  ;;  %v2526_v62 = vmul.f32 0.5, %v3699_v4 }
 0xaa9   :  { %v2531_v9 = vmul.f32 %v2528_v42, %v4872_v24  ;;  %v2529_v11 = vadd.f32 0.5, %v2526_v62  ;;  %v5239_v24 = vld [vmem:[#allocation18_spill] sm:$0xff] }
 0xaaa   :  { %v1889_v45 = vadd.f32 %v5239_v24, %v4800_v15 }
 0xaab   :  { %v4918_v2 = vadd.f32 %v2532_v61, %v2531_v9  ;;  %v5242_v9 = vld [vmem:[#allocation16_spill] sm:$0xff] }
 0xaac   :  { %v1962_v4 = vadd.f32 %v5242_v9, %v4823_v14 }
 0xaad   :  { %3700 = vtanh.f32 %v4918_v2 }
 0xaba   :  { %v3701_v1 = vpop.eup %3700 }
 0xabb   :  { %v2535_v39 = vmul.f32 %v3701_v1, %v2529_v11 }
 0xabd   :  { %v2540_v43 = vpack.c.bf16 %v2535_v39, %v2535_v39 }
 0xabf   :  { %2574 = vmatmul.mubr.bf16.vlgmr.msra.gmra.mxu0 %v2540_v43  ;;  %2615 = vmatmul.mubr.bf16.vlgmr.msra.gmra.mxu1 %v2540_v43 }
 0xac0   :  { %2651 = vmatpush1.bf16.msra.mxu0 %v4609_v29  ;;  %2692 = vmatpush1.bf16.msra.mxu1 %v4611_v35 }
 0xac1   :  { %2652 = vmatprep.subr.bf16.mxu0 %v4617_v34  ;;  %2693 = vmatprep.subr.bf16.mxu1 %v4619_v48 }
 0xac2   :  { %2682 = vmatprep.mubr.bf16.mxu0 %v5190_v21  ;;  %2723 = vmatprep.mubr.bf16.mxu1 %v5190_v21 }
 0xac4   :  { %2653 = vmatpush1.bf16.msra.mxu0 %v4621_v46  ;;  %2694 = vmatpush1.bf16.msra.mxu1 %v4623_v20 }
 0xac5   :  { %2654 = vmatprep.subr.bf16.mxu0 %v4629_v31  ;;  %2695 = vmatprep.subr.bf16.mxu1 %v4631_v27 }
 0xac8   :  { %2655 = vmatpush1.bf16.msra.mxu0 %v4633_v6  ;;  %2696 = vmatpush1.bf16.msra.mxu1 %v4635_v12 }
 0xac9   :  { %2656 = vmatprep.subr.bf16.mxu0 %v4641_v53  ;;  %2697 = vmatprep.subr.bf16.mxu1 %v4643_v28 }
 0xacc   :  { %2657 = vmatpush1.bf16.msra.mxu0 %v4645_v52  ;;  %2698 = vmatpush1.bf16.msra.mxu1 %v4647_v54 }
 0xacd   :  { %2658 = vmatprep.subr.bf16.mxu0 %v4653_v55  ;;  %2699 = vmatprep.subr.bf16.mxu1 %v4655_v56 }
 0xad0   :  { %2659 = vmatpush1.bf16.msra.mxu0 %v4657_v57  ;;  %2700 = vmatpush1.bf16.msra.mxu1 %v4659_v58 }
 0xad1   :  { %2660 = vmatprep.subr.bf16.mxu0 %v4665_v59  ;;  %2701 = vmatprep.subr.bf16.mxu1 %v4667_v60 }
 0xad4   :  { %2661 = vmatpush1.bf16.msra.mxu0 %v4669_v50  ;;  %2702 = vmatpush1.bf16.msra.mxu1 %v4671_v51 }
 0xad5   :  { %2662 = vmatprep.subr.bf16.mxu0 %v4677_v44  ;;  %2703 = vmatprep.subr.bf16.mxu1 %v4679_v30 }
 0xad8   :  { %2663 = vmatpush1.bf16.msra.mxu0 %v4681_v8  ;;  %2704 = vmatpush1.bf16.msra.mxu1 %v4683_v0 }
 0xad9   :  { %2664 = vmatprep.subr.bf16.mxu0 %v4689_v36  ;;  %2705 = vmatprep.subr.bf16.mxu1 %v4691_v37 }
 0xadc   :  { %2665 = vmatpush1.bf16.msra.mxu0 %v4693_v17  ;;  %2706 = vmatpush1.bf16.msra.mxu1 %v4695_v10 }
 0xadd   :  { %2759 = vmatprep.subr.bf16.mxu0 %v4605_v7  ;;  %2800 = vmatprep.subr.bf16.mxu1 %v4607_v18 }
 0xb7f   :  { %v2575_v5 = vpop.f32.mrf.mxu0  ;;  %v2616_v13 = vpop.f32.mrf.mxu1 }
 0xb80   :  { %v2623_v47 = vadd.f32 %v2575_v5, %v1889_v45  ;;  %v2625_v62 = vadd.f32 %v2616_v13, %v1962_v4 }
 0xb81   :  { %v2577_v40 = vpop.f32.mrf.mxu0  ;;  %v2618_v49 = vpop.f32.mrf.mxu1 }
 0xb82   :  { %v2627_v41 = vmul.f32 0.5, %v2623_v47  ;;  %v2624_v3 = vadd.f32 %v2577_v40, %v1891_v26  ;;  %v2626_v33 = vadd.f32 %v2618_v49, %v1964_v16  ;;  %v2629_v11 = vmul.f32 0.5, %v2625_v62 }
 0xb83   :  { %v2579_v19 = vpop.f32.mrf.mxu0  ;;  %v2620_v63 = vpop.f32.mrf.mxu1 }
 0xb84   :  { %3702 = vtanh.f32 %v2627_v41  ;;  %v2628_v22 = vmul.f32 0.5, %v2624_v3 }
 0xb85   :  { %v2580_v42 = vpop.f32.mrf.mxu0  ;;  %v2621_v61 = vpop.f32.mrf.mxu1 }
 0xb86   :  { %3704 = vtanh.f32 %v2628_v22  ;;  %v5246_v22 = vld [vmem:[#allocation20_spill] sm:$0xff] }
 0xb87   :  { %3706 = vtanh.f32 %v2626_v33  ;;  %v1968_v33 = vadd.f32 %v5246_v22, %v4823_v14 }
 0xb88   :  { %3708 = vtanh.f32 %v2629_v11 }
 0xb91   :  { %v3703_v1 = vpop.eup %3702 }
 0xb92   :  { %v2633_v39 = vmul.f32 0.5, %v3703_v1 }
 0xb93   :  { %v3705_v43 = vpop.eup %3704 }
 0xb94   :  { %v2636_v24 = vadd.f32 0.5, %v2633_v39  ;;  %v2634_v45 = vmul.f32 0.5, %v3705_v43  ;;  %v3707_v5 = vpop.eup %3706 }
 0xb95   :  { %v3709_v49 = vpop.eup %3708 }
 0xb96   :  { %v2637_v23 = vadd.f32 0.5, %v2634_v45  ;;  %v2641_v26 = vmul.f32 %v3707_v5, %v2636_v24  ;;  %v2635_v38 = vmul.f32 0.5, %v3709_v49 }
 0xb98   :  { %v2640_v47 = vmul.f32 %v2637_v23, %v4918_v2  ;;  %v2638_v16 = vadd.f32 0.5, %v2635_v38 }
 0xb9a   :  { %v4964_v40 = vadd.f32 %v2641_v26, %v2640_v47 }
 0xb9c   :  { %3710 = vtanh.f32 %v4964_v40 }
 0xba9   :  { %v3711_v13 = vpop.eup %3710 }
 0xbaa   :  { %v2644_v41 = vmul.f32 %v3711_v13, %v2638_v16  ;;  %v5013_v13 = vld [vmem:[#allocation9 + $0xe0] ss:$16 sps:$4 sm:$0xff]  }
 0xbac   :  { %v2649_v3 = vpack.c.bf16 %v2644_v41, %v2644_v41  ;;  %v5016_v41 = vld [vmem:[#allocation9 + $0xe8] ss:$16 sps:$4 sm:$0xff]  }
 0xbae   :  { %2683 = vmatmul.mubr.bf16.vlgmr.msra.gmra.mxu0 %v2649_v3  ;;  %2724 = vmatmul.mubr.bf16.vlgmr.msra.gmra.mxu1 %v2649_v3  ;;  %v5022_v3 = vld [vmem:[#allocation9 + $0xcc] ss:$16 sps:$4 sm:$0xff]  }
 0xbaf   :  { %2760 = vmatpush1.bf16.msra.mxu0 %v4609_v29  ;;  %2801 = vmatpush1.bf16.msra.mxu1 %v4611_v35  ;;  %v5243_v29 = vld [vmem:[#allocation22_spill] sm:$0xff] }
 0xbb0   :  { %2761 = vmatprep.subr.bf16.mxu0 %v4617_v34  ;;  %2802 = vmatprep.subr.bf16.mxu1 %v4619_v48  ;;  %v1895_v35 = vadd.f32 %v5243_v29, %v4800_v15  ;;  %v5027_v29 = vld [vmem:[#allocation9 + $0xc0] ss:$16 sps:$4 sm:$0xff]  }
 0xbb1   :  { %2791 = vmatprep.mubr.bf16.mxu0 %v5190_v21  ;;  %2832 = vmatprep.mubr.bf16.mxu1 %v5190_v21 }
 0xbb3   :  { %2762 = vmatpush1.bf16.msra.mxu0 %v4621_v46  ;;  %2803 = vmatpush1.bf16.msra.mxu1 %v4623_v20  ;;  %v5244_v46 = vld [vmem:[#allocation23_spill] sm:$0xff] }
 0xbb4   :  { %2763 = vmatprep.subr.bf16.mxu0 %v4629_v31  ;;  %2804 = vmatprep.subr.bf16.mxu1 %v4631_v27  ;;  %v1897_v20 = vadd.f32 %v5244_v46, %v4808_v25  ;;  %v5039_v46 = vld [vmem:[#allocation9 + $0xa0] ss:$16 sps:$4 sm:$0xff]  }
 0xbb7   :  { %2764 = vmatpush1.bf16.msra.mxu0 %v4633_v6  ;;  %2805 = vmatpush1.bf16.msra.mxu1 %v4635_v12  ;;  %v5245_v12 = vld [vmem:[#allocation25_spill] sm:$0xff] }
 0xbb8   :  { %2765 = vmatprep.subr.bf16.mxu0 %v4641_v53  ;;  %2806 = vmatprep.subr.bf16.mxu1 %v4643_v28  ;;  %v1970_v53 = vadd.f32 %v5245_v12, %v4818_v32  ;;  %v5054_v12 = vld [vmem:[#allocation9 + $0x88] ss:$16 sps:$4 sm:$0xff]  }
 0xbbb   :  { %2766 = vmatpush1.bf16.msra.mxu0 %v4645_v52  ;;  %2807 = vmatpush1.bf16.msra.mxu1 %v4647_v54 }
 0xbbc   :  { %2767 = vmatprep.subr.bf16.mxu0 %v4653_v55  ;;  %2808 = vmatprep.subr.bf16.mxu1 %v4655_v56 }
 0xbbf   :  { %2768 = vmatpush1.bf16.msra.mxu0 %v4657_v57  ;;  %2809 = vmatpush1.bf16.msra.mxu1 %v4659_v58 }
 0xbc0   :  { %2769 = vmatprep.subr.bf16.mxu0 %v4665_v59  ;;  %2810 = vmatprep.subr.bf16.mxu1 %v4667_v60 }
 0xbc3   :  { %2770 = vmatpush1.bf16.msra.mxu0 %v4669_v50  ;;  %2811 = vmatpush1.bf16.msra.mxu1 %v4671_v51 }
 0xbc4   :  { %2771 = vmatprep.subr.bf16.mxu0 %v4677_v44  ;;  %2812 = vmatprep.subr.bf16.mxu1 %v4679_v30 }
 0xbc7   :  { %2772 = vmatpush1.bf16.msra.mxu0 %v4681_v8  ;;  %2813 = vmatpush1.bf16.msra.mxu1 %v4683_v0 }
 0xbc8   :  { %2773 = vmatprep.subr.bf16.mxu0 %v4689_v36  ;;  %2814 = vmatprep.subr.bf16.mxu1 %v4691_v37 }
 0xbcb   :  { %2774 = vmatpush1.bf16.msra.mxu0 %v4693_v17  ;;  %2815 = vmatpush1.bf16.msra.mxu1 %v4695_v10 }
 0xbcc   :  { %2868 = vmatprep.subr.bf16.mxu0 %v4605_v7  ;;  %2909 = vmatprep.subr.bf16.mxu1 %v4607_v18 }
 0xc6e   :  { %v2684_v34 = vpop.f32.mrf.mxu0  ;;  %v2725_v48 = vpop.f32.mrf.mxu1 }
 0xc6f   :  { %v2732_v31 = vadd.f32 %v2684_v34, %v1895_v35  ;;  %v2734_v42 = vadd.f32 %v2725_v48, %v1968_v33  ;;  %v5030_v35 = vld [vmem:[#allocation9 + $0xc8] ss:$16 sps:$4 sm:$0xff]   ;;  %v5033_v34 = vld [vmem:[#allocation9 + $0xa4] ss:$16 sps:$4 sm:$0xff]   ;;  %v5036_v48 = vld [vmem:[#allocation9 + $0xac] ss:$16 sps:$4 sm:$0xff]  }
 0xc70   :  { %v2686_v27 = vpop.f32.mrf.mxu0  ;;  %v2727_v6 = vpop.f32.mrf.mxu1 }
 0xc71   :  { %v2736_v28 = vmul.f32 0.5, %v2732_v31  ;;  %v2733_v52 = vadd.f32 %v2686_v27, %v1897_v20  ;;  %v2735_v2 = vadd.f32 %v2727_v6, %v1970_v53  ;;  %v2738_v61 = vmul.f32 0.5, %v2734_v42  ;;  %v5042_v20 = vld [vmem:[#allocation9 + $0xa8] ss:$16 sps:$4 sm:$0xff]   ;;  %v5045_v31 = vld [vmem:[#allocation9 + $0x84] ss:$16 sps:$4 sm:$0xff]  }
 0xc72   :  { %v2688_v54 = vpop.f32.mrf.mxu0  ;;  %v2729_v7 = vpop.f32.mrf.mxu1  ;;  %v5048_v27 = vld [vmem:[#allocation9 + $0x8c] ss:$16 sps:$4 sm:$0xff]   ;;  %v5051_v6 = vld [vmem:[#allocation9 + $0x80] ss:$16 sps:$4 sm:$0xff]  }
 0xc73   :  { %3712 = vtanh.f32 %v2736_v28  ;;  %v2737_v18 = vmul.f32 0.5, %v2733_v52 }
 0xc74   :  { %v2689_v19 = vpop.f32.mrf.mxu0  ;;  %v2730_v63 = vpop.f32.mrf.mxu1 }
 0xc75   :  { %3714 = vtanh.f32 %v2737_v18  ;;  %v5250_v18 = vld [vmem:[#allocation24_spill] sm:$0xff] }
 0xc76   :  { %3716 = vtanh.f32 %v2735_v2  ;;  %v1972_v2 = vadd.f32 %v5250_v18, %v4823_v14 }
 0xc77   :  { %3718 = vtanh.f32 %v2738_v61 }
 0xc80   :  { %v3713_v9 = vpop.eup %3712 }
 0xc81   :  { %v2742_v4 = vmul.f32 0.5, %v3713_v9 }
 0xc82   :  { %v3715_v62 = vpop.eup %3714 }
 0xc83   :  { %v2745_v11 = vadd.f32 0.5, %v2742_v4  ;;  %v2743_v1 = vmul.f32 0.5, %v3715_v62  ;;  %v3717_v39 = vpop.eup %3716 }
 0xc84   :  { %v3719_v23 = vpop.eup %3718 }
 0xc85   :  { %v2746_v43 = vadd.f32 0.5, %v2743_v1  ;;  %v2750_v24 = vmul.f32 %v3717_v39, %v2745_v11  ;;  %v2744_v26 = vmul.f32 0.5, %v3719_v23 }
 0xc87   :  { %v2749_v45 = vmul.f32 %v2746_v43, %v4964_v40  ;;  %v2747_v47 = vadd.f32 0.5, %v2744_v26  ;;  %v5019_v40 = vld [vmem:[#allocation9 + $0xc4] ss:$16 sps:$4 sm:$0xff]  }
 0xc89   :  { %v5010_v5 = vadd.f32 %v2750_v24, %v2749_v45 }
 0xc8b   :  { %3720 = vtanh.f32 %v5010_v5 }
 0xc98   :  { %v3721_v49 = vpop.eup %3720 }
 0xc99   :  { %v2753_v38 = vmul.f32 %v3721_v49, %v2747_v47  ;;  %v3802_v49 = vld [vmem:[#allocation9 + $0x60] ss:$16 sps:$4 sm:$0xff]  }
 0xc9b   :  { %v2758_v16 = vpack.c.bf16 %v2753_v38, %v2753_v38  ;;  %v3803_v38 = vld [vmem:[#allocation9 + $0x68] ss:$16 sps:$4 sm:$0xff]  }
 0xc9d   :  { %2792 = vmatmul.mubr.bf16.vlgmr.msra.gmra.mxu0 %v2758_v16  ;;  %2833 = vmatmul.mubr.bf16.vlgmr.msra.gmra.mxu1 %v2758_v16  ;;  %v3804_v16 = vld [vmem:[#allocation9 + $0x44] ss:$16 sps:$4 sm:$0xff]  }
 0xc9e   :  { %2869 = vmatpush1.bf16.msra.mxu0 %v5013_v13  ;;  %2910 = vmatpush1.bf16.msra.mxu1 %v5016_v41 }
 0xc9f   :  { %2870 = vmatprep.subr.bf16.mxu0 %v5019_v40  ;;  %2911 = vmatprep.subr.bf16.mxu1 %v5022_v3 }
 0xca0   :  { %2900 = vmatprep.mubr.bf16.mxu0 %v5190_v21  ;;  %2941 = vmatprep.mubr.bf16.mxu1 %v5190_v21 }
 0xca2   :  { %2871 = vmatpush1.bf16.msra.mxu0 %v5027_v29  ;;  %2912 = vmatpush1.bf16.msra.mxu1 %v5030_v35 }
 0xca3   :  { %2872 = vmatprep.subr.bf16.mxu0 %v5033_v34  ;;  %2913 = vmatprep.subr.bf16.mxu1 %v5036_v48 }
 0xca6   :  { %2873 = vmatpush1.bf16.msra.mxu0 %v5039_v46  ;;  %2914 = vmatpush1.bf16.msra.mxu1 %v5042_v20 }
 0xca7   :  { %2874 = vmatprep.subr.bf16.mxu0 %v5045_v31  ;;  %2915 = vmatprep.subr.bf16.mxu1 %v5048_v27 }
 0xcaa   :  { %2875 = vmatpush1.bf16.msra.mxu0 %v5051_v6  ;;  %2916 = vmatpush1.bf16.msra.mxu1 %v5054_v12 }
 0xcab   :  { %2876 = vmatprep.subr.bf16.mxu0 %v4653_v55  ;;  %2917 = vmatprep.subr.bf16.mxu1 %v4655_v56  ;;  %v3798_v55 = vld [vmem:[#allocation9 + $0xe4] ss:$16 sps:$4 sm:$0xff]   ;;  %v3799_v56 = vld [vmem:[#allocation9 + $0xec] ss:$16 sps:$4 sm:$0xff]  }
 0xcae   :  { %2877 = vmatpush1.bf16.msra.mxu0 %v4657_v57  ;;  %2918 = vmatpush1.bf16.msra.mxu1 %v4659_v58  ;;  %v5247_v57 = vld [vmem:[#allocation26_spill] sm:$0xff] }
 0xcaf   :  { %2878 = vmatprep.subr.bf16.mxu0 %v4665_v59  ;;  %2919 = vmatprep.subr.bf16.mxu1 %v4667_v60  ;;  %v1899_v58 = vadd.f32 %v5247_v57, %v4800_v15 }
 0xcb2   :  { %2879 = vmatpush1.bf16.msra.mxu0 %v4669_v50  ;;  %2920 = vmatpush1.bf16.msra.mxu1 %v4671_v51  ;;  %v5248_v50 = vld [vmem:[#allocation27_spill] sm:$0xff] }
 0xcb3   :  { %2880 = vmatprep.subr.bf16.mxu0 %v4677_v44  ;;  %2921 = vmatprep.subr.bf16.mxu1 %v4679_v30  ;;  %v1901_v51 = vadd.f32 %v5248_v50, %v4808_v25  ;;  %v5253_v50 = vld [vmem:[#allocation33_spill] sm:$0xff] }
 0xcb6   :  { %2881 = vmatpush1.bf16.msra.mxu0 %v4681_v8  ;;  %2922 = vmatpush1.bf16.msra.mxu1 %v4683_v0 }
 0xcb7   :  { %2882 = vmatprep.subr.bf16.mxu0 %v4689_v36  ;;  %2923 = vmatprep.subr.bf16.mxu1 %v4691_v37 }
 0xcba   :  { %2883 = vmatpush1.bf16.msra.mxu0 %v4693_v17  ;;  %2924 = vmatpush1.bf16.msra.mxu1 %v4695_v10  ;;  %v5249_v10 = vld [vmem:[#allocation29_spill] sm:$0xff] }
 0xcbb   :  { %2977 = vmatprep.subr.bf16.mxu0 %v3798_v55  ;;  %3018 = vmatprep.subr.bf16.mxu1 %v3799_v56  ;;  %v1974_v53 = vadd.f32 %v5249_v10, %v4818_v32  ;;  %v5252_v56 = vld [vmem:[#allocation31_spill] sm:$0xff] }
 0xcbc   :  { %v1907_v57 = vadd.f32 %v5252_v56, %v4808_v25 }
 0xd5d   :  { %v2793_v59 = vpop.f32.mrf.mxu0  ;;  %v2834_v60 = vpop.f32.mrf.mxu1 }
 0xd5e   :  { %v2841_v44 = vadd.f32 %v2793_v59, %v1899_v58  ;;  %v2843_v19 = vadd.f32 %v2834_v60, %v1972_v2 }
 0xd5f   :  { %v2795_v30 = vpop.f32.mrf.mxu0  ;;  %v2836_v8 = vpop.f32.mrf.mxu1 }
 0xd60   :  { %v2845_v0 = vmul.f32 0.5, %v2841_v44  ;;  %v2842_v36 = vadd.f32 %v2795_v30, %v1901_v51  ;;  %v2844_v7 = vadd.f32 %v2836_v8, %v1974_v53  ;;  %v2847_v63 = vmul.f32 0.5, %v2843_v19  ;;  %v5254_v53 = vld [vmem:[#allocation28_spill] sm:$0xff] }
 0xd61   :  { %v2797_v37 = vpop.f32.mrf.mxu0  ;;  %v2838_v17 = vpop.f32.mrf.mxu1  ;;  %v1980_v51 = vadd.f32 %v5253_v50, %v4818_v32 }
 0xd62   :  { %3722 = vtanh.f32 %v2845_v0  ;;  %v2846_v28 = vmul.f32 0.5, %v2842_v36 }
 0xd63   :  { %v2798_v52 = vpop.f32.mrf.mxu0  ;;  %v2839_v54 = vpop.f32.mrf.mxu1 }
 0xd64   :  { %3724 = vtanh.f32 %v2846_v28  ;;  %v1978_v28 = vadd.f32 %v5254_v53, %v4823_v14 }
 0xd65   :  { %3726 = vtanh.f32 %v2844_v7 }
 0xd66   :  { %3728 = vtanh.f32 %v2847_v63 }
 0xd6f   :  { %v3723_v22 = vpop.eup %3722 }
 0xd70   :  { %v2851_v33 = vmul.f32 0.5, %v3723_v22 }
 0xd71   :  { %v3725_v42 = vpop.eup %3724 }
 0xd72   :  { %v2854_v61 = vadd.f32 0.5, %v2851_v33  ;;  %v2852_v9 = vmul.f32 0.5, %v3725_v42  ;;  %v3727_v62 = vpop.eup %3726 }
 0xd73   :  { %v3729_v43 = vpop.eup %3728 }
 0xd74   :  { %v2855_v4 = vadd.f32 0.5, %v2852_v9  ;;  %v2859_v1 = vmul.f32 %v3727_v62, %v2854_v61  ;;  %v2853_v24 = vmul.f32 0.5, %v3729_v43 }
 0xd76   :  { %v2858_v11 = vmul.f32 %v2855_v4, %v5010_v5  ;;  %v2856_v45 = vadd.f32 0.5, %v2853_v24  ;;  %v3801_v5 = vld [vmem:[#allocation9 + $0x6c] ss:$16 sps:$4 sm:$0xff]  }
 0xd78   :  { %v5082_v39 = vadd.f32 %v2859_v1, %v2858_v11 }
 0xd7a   :  { %3730 = vtanh.f32 %v5082_v39 }
 0xd87   :  { %v3731_v23 = vpop.eup %3730 }
 0xd88   :  { %v2862_v26 = vmul.f32 %v3731_v23, %v2856_v45  ;;  %v3584_v45 = vld [vmem:[%s5159_s7 + $0x38] sm:$0xff]   ;;  %v3909_v23 = vmov 0.0  }
 0xd8a   :  { %v2867_v47 = vpack.c.bf16 %v2862_v26, %v2862_v26  ;;  %v3586_v26 = vld [vmem:[%s5159_s7 + $0x28] sm:$0xff]  }
 0xd8c   :  { %2901 = vmatmul.mubr.bf16.vlgmr.msra.gmra.mxu0 %v2867_v47  ;;  %2942 = vmatmul.mubr.bf16.vlgmr.msra.gmra.mxu1 %v2867_v47  ;;  %v3587_v47 = vld [vmem:[%s5159_s7 + $0x20] sm:$0xff]  }
 0xd8d   :  { %2978 = vmatpush1.bf16.msra.mxu0 %v5013_v13  ;;  %3019 = vmatpush1.bf16.msra.mxu1 %v5016_v41  ;;  %v3805_v13 = vld [vmem:[#allocation9 + $0x4c] ss:$16 sps:$4 sm:$0xff]   ;;  %v3806_v41 = vld [vmem:[#allocation9 + $0x40] ss:$16 sps:$4 sm:$0xff]  }
 0xd8e   :  { %2979 = vmatprep.subr.bf16.mxu0 %v5019_v40  ;;  %3020 = vmatprep.subr.bf16.mxu1 %v5022_v3  ;;  %v3807_v40 = vld [vmem:[#allocation9 + $0x48] ss:$16 sps:$4 sm:$0xff]   ;;  %v3808_v3 = vld [vmem:[#allocation9 + $0x24] ss:$16 sps:$4 sm:$0xff]  }
 0xd8f   :  { %3009 = vmatprep.mubr.bf16.mxu0 %v5190_v21  ;;  %3050 = vmatprep.mubr.bf16.mxu1 %v5190_v21  ;;  %v3800_v21 = vld [vmem:[#allocation9 + $0x64] ss:$16 sps:$4 sm:$0xff]  }
 0xd91   :  { %2980 = vmatpush1.bf16.msra.mxu0 %v5027_v29  ;;  %3021 = vmatpush1.bf16.msra.mxu1 %v5030_v35  ;;  %v3809_v29 = vld [vmem:[#allocation9 + $0x2c] ss:$16 sps:$4 sm:$0xff]   ;;  %v3810_v35 = vld [vmem:[#allocation9 + $0x20] ss:$16 sps:$4 sm:$0xff]  }
 0xd92   :  { %2981 = vmatprep.subr.bf16.mxu0 %v5033_v34  ;;  %3022 = vmatprep.subr.bf16.mxu1 %v5036_v48  ;;  %v3811_v34 = vld [vmem:[#allocation9 + $0x28] ss:$16 sps:$4 sm:$0xff]   ;;  %v3812_v48 = vld [vmem:[#allocation9 + $0x4] ss:$16 sps:$4 sm:$0xff]  }
 0xd95   :  { %2982 = vmatpush1.bf16.msra.mxu0 %v5039_v46  ;;  %3023 = vmatpush1.bf16.msra.mxu1 %v5042_v20  ;;  %v3813_v46 = vld [vmem:[#allocation9 + $0xc] ss:$16 sps:$4 sm:$0xff]   ;;  %v3814_v20 = vld [vmem:[#allocation9] ss:$16 sps:$4 sm:$0xff]  }
 0xd96   :  { %2983 = vmatprep.subr.bf16.mxu0 %v5045_v31  ;;  %3024 = vmatprep.subr.bf16.mxu1 %v5048_v27  ;;  %v3815_v31 = vld [vmem:[#allocation9 + $0x8] ss:$16 sps:$4 sm:$0xff]   ;;  %v5251_v27 = vld [vmem:[#allocation30_spill] sm:$0xff] }
 0xd99   :  { %2984 = vmatpush1.bf16.msra.mxu0 %v5051_v6  ;;  %3025 = vmatpush1.bf16.msra.mxu1 %v5054_v12  ;;  %v1905_v6 = vadd.f32 %v5251_v27, %v4800_v15 }
 0xd9a   :  { %2985 = vmatprep.subr.bf16.mxu0 %v3800_v21  ;;  %3026 = vmatprep.subr.bf16.mxu1 %v3801_v5  ;;  %v3588_v21 = vld [vmem:[%s5159_s7 + $0x18] sm:$0xff]   ;;  %v3589_v5 = vld [vmem:[%s5159_s7 + $0x10] sm:$0xff]  }
 0xd9d   :  { %2986 = vmatpush1.bf16.msra.mxu0 %v3802_v49  ;;  %3027 = vmatpush1.bf16.msra.mxu1 %v3803_v38  ;;  %v3590_v49 = vld [vmem:[%s5159_s7 + $0x8] sm:$0xff]   ;;  %v3591_v38 = vld [vmem:[%s5159_s7] sm:$0xff]  }
 0xd9e   :  { %2987 = vmatprep.subr.bf16.mxu0 %v3804_v16  ;;  %3028 = vmatprep.subr.bf16.mxu1 %v3805_v13  ;;  %v5255_v16 = vld [vmem:[#allocation32_spill] sm:$0xff] }
 0xd9f   :  { %v1909_v13 = vadd.f32 %v5255_v16, %v4800_v15 }
 0xda1   :  { %2988 = vmatpush1.bf16.msra.mxu0 %v3806_v41  ;;  %3029 = vmatpush1.bf16.msra.mxu1 %v3807_v40 }
 0xda2   :  { %2989 = vmatprep.subr.bf16.mxu0 %v3808_v3  ;;  %3030 = vmatprep.subr.bf16.mxu1 %v3809_v29  ;;  %v5256_v3 = vld [vmem:[#allocation34_spill] sm:$0xff] }
 0xda3   :  { %v1911_v29 = vadd.f32 %v5256_v3, %v4808_v25 }
 0xda5   :  { %2990 = vmatpush1.bf16.msra.mxu0 %v3810_v35  ;;  %3031 = vmatpush1.bf16.msra.mxu1 %v3811_v34 }
 0xda6   :  { %2991 = vmatprep.subr.bf16.mxu0 %v3812_v48  ;;  %3032 = vmatprep.subr.bf16.mxu1 %v3813_v46  ;;  %v5257_v46 = vld [vmem:[#allocation35_spill] sm:$0xff] }
 0xda9   :  { %2992 = vmatpush1.bf16.msra.mxu0 %v3814_v20  ;;  %3033 = vmatpush1.bf16.msra.mxu1 %v3815_v31  ;;  %v1984_v20 = vadd.f32 %v5257_v46, %v4818_v32 }
 0xdaa   :  { %3359 = vmatprep.subr.bf16.mxu0 %v3909_v23 }
 0xe4c   :  { %v2902_v12 = vpop.f32.mrf.mxu0  ;;  %v2943_v55 = vpop.f32.mrf.mxu1 }
 0xe4d   :  { %v2950_v58 = vadd.f32 %v2902_v12, %v1905_v6  ;;  %v2952_v52 = vadd.f32 %v2943_v55, %v1978_v28 }
 0xe4e   :  { %v2904_v59 = vpop.f32.mrf.mxu0  ;;  %v2945_v60 = vpop.f32.mrf.mxu1 }
 0xe4f   :  { %v2954_v44 = vmul.f32 0.5, %v2950_v58  ;;  %v2951_v30 = vadd.f32 %v2904_v59, %v1907_v57  ;;  %v2953_v37 = vadd.f32 %v2945_v60, %v1980_v51  ;;  %v2956_v54 = vmul.f32 0.5, %v2952_v52  ;;  %v5258_v58 = vld [vmem:[#allocation14_spill] sm:$0xff] }
 0xe50   :  { %v2906_v8 = vpop.f32.mrf.mxu0  ;;  %v2947_v0 = vpop.f32.mrf.mxu1  ;;  %v1982_v25 = vadd.f32 %v5258_v58, %v4823_v14 }
 0xe51   :  { %3732 = vtanh.f32 %v2954_v44  ;;  %v2955_v36 = vmul.f32 0.5, %v2951_v30 }
 0xe52   :  { %v2907_v17 = vpop.f32.mrf.mxu0  ;;  %v2948_v10 = vpop.f32.mrf.mxu1 }
 0xe53   :  { %3734 = vtanh.f32 %v2955_v36 }
 0xe54   :  { %3736 = vtanh.f32 %v2953_v37 }
 0xe55   :  { %3738 = vtanh.f32 %v2956_v54 }
 0xe5e   :  { %v3733_v7 = vpop.eup %3732 }
 0xe5f   :  { %v2960_v18 = vmul.f32 0.5, %v3733_v7  ;;  %v3341_v7 = vld [vmem:[%s5160_s8] ss:$0 sm:$0xff] }
 0xe60   :  { %v3735_v2 = vpop.eup %3734 }
 0xe61   :  { %v2963_v19 = vadd.f32 0.5, %v2960_v18  ;;  %v2961_v63 = vmul.f32 0.5, %v3735_v2  ;;  %v3737_v22 = vpop.eup %3736 }
 0xe62   :  { %v3739_v4 = vpop.eup %3738 }
 0xe63   :  { %v2964_v33 = vadd.f32 0.5, %v2961_v63  ;;  %v2968_v42 = vmul.f32 %v3737_v22, %v2963_v19  ;;  %v2962_v62 = vmul.f32 0.5, %v3739_v4 }
 0xe65   :  { %v2967_v61 = vmul.f32 %v2964_v33, %v5082_v39  ;;  %v2965_v11 = vadd.f32 0.5, %v2962_v62  ;;  %v3585_v39 = vld [vmem:[%s5159_s7 + $0x30] sm:$0xff]  }
 0xe67   :  { %v5110_v9 = vadd.f32 %v2968_v42, %v2967_v61 }
 0xe69   :  { %3740 = vtanh.f32 %v5110_v9 }
 0xe76   :  { %v3741_v1 = vpop.eup %3740 }
 0xe77   :  { %v2971_v43 = vmul.f32 %v3741_v1, %v2965_v11 }
 0xe79   :  { %v2976_v24 = vpack.c.bf16 %v2971_v43, %v2971_v43 }
 0xe7b   :  { %3010 = vmatmul.mubr.bf16.vlgmr.msra.gmra.mxu0 %v2976_v24  ;;  %3051 = vmatmul.mubr.bf16.vlgmr.msra.gmra.mxu1 %v2976_v24 }
 0xe7c   :  { %3360 = vmatpush3.bf16.msra.mxu0 %v3584_v45  ;;  %3375 = vmatprep.mubr.msk.bf16.mxu0 %vm3910_vm0, %v3909_v23 }
 0xe7d   :  { %3361 = vmatprep.subr.bf16.mxu0 %v3909_v23 }
 0xe80   :  { %3362 = vmatpush3.bf16.msra.mxu0 %v3585_v39 }
 0xe81   :  { %3363 = vmatprep.subr.bf16.mxu0 %v3909_v23 }
 0xe84   :  { %3364 = vmatpush3.bf16.msra.mxu0 %v3586_v26 }
 0xe85   :  { %3365 = vmatprep.subr.bf16.mxu0 %v3909_v23 }
 0xe88   :  { %3366 = vmatpush3.bf16.msra.mxu0 %v3587_v47 }
 0xe89   :  { %3367 = vmatprep.subr.bf16.mxu0 %v3909_v23 }
 0xe8c   :  { %3368 = vmatpush3.bf16.msra.mxu0 %v3588_v21 }
 0xe8d   :  { %3369 = vmatprep.subr.bf16.mxu0 %v3909_v23 }
 0xe90   :  { %3370 = vmatpush3.bf16.msra.mxu0 %v3589_v5 }
 0xe91   :  { %3371 = vmatprep.subr.bf16.mxu0 %v3909_v23 }
 0xe94   :  { %3372 = vmatpush3.bf16.msra.mxu0 %v3590_v49 }
 0xe95   :  { %3373 = vmatprep.subr.bf16.mxu0 %v3909_v23 }
 0xe98   :  { %3374 = vmatpush3.bf16.msra.mxu0 %v3591_v38 }
 0xf3b   :  { %v3011_v41 = vpop.f32.mrf.mxu0  ;;  %v3052_v40 = vpop.f32.mrf.mxu1 }
 0xf3c   :  { %v3059_v35 = vadd.f32 %v3011_v41, %v1909_v13  ;;  %v3061_v59 = vadd.f32 %v3052_v40, %v1982_v25 }
 0xf3d   :  { %v3013_v34 = vpop.f32.mrf.mxu0  ;;  %v3054_v48 = vpop.f32.mrf.mxu1 }
 0xf3e   :  { %v3063_v31 = vmul.f32 0.5, %v3059_v35  ;;  %v3060_v27 = vadd.f32 %v3013_v34, %v1911_v29  ;;  %v3062_v56 = vadd.f32 %v3054_v48, %v1984_v20  ;;  %v3065_v60 = vmul.f32 0.5, %v3061_v59 }
 0xf3f   :  { %v3015_v6 = vpop.f32.mrf.mxu0  ;;  %v3056_v12 = vpop.f32.mrf.mxu1 }
 0xf40   :  { %3742 = vtanh.f32 %v3063_v31  ;;  %v3064_v55 = vmul.f32 0.5, %v3060_v27 }
 0xf41   :  { %v3016_v57 = vpop.f32.mrf.mxu0  ;;  %v3057_v15 = vpop.f32.mrf.mxu1 }
 0xf42   :  { %3744 = vtanh.f32 %v3064_v55 }
 0xf43   :  { %3746 = vtanh.f32 %v3062_v56 }
 0xf44   :  { %3748 = vtanh.f32 %v3065_v60 }
 0xf4d   :  { %v3743_v50 = vpop.eup %3742 }
 0xf4e   :  { %v3069_v51 = vmul.f32 0.5, %v3743_v50 }
 0xf4f   :  { %v3745_v44 = vpop.eup %3744 }
 0xf50   :  { %v3072_v32 = vadd.f32 0.5, %v3069_v51  ;;  %v3070_v30 = vmul.f32 0.5, %v3745_v44  ;;  %v3747_v8 = vpop.eup %3746 }
 0xf51   :  { %v3749_v10 = vpop.eup %3748 }
 0xf52   :  { %v3073_v0 = vadd.f32 0.5, %v3070_v30  ;;  %v3077_v36 = vmul.f32 %v3747_v8, %v3072_v32  ;;  %v3071_v53 = vmul.f32 0.5, %v3749_v10 }
 0xf54   :  { %v3076_v37 = vmul.f32 %v3073_v0, %v5110_v9  ;;  %v3074_v28 = vadd.f32 0.5, %v3071_v53 }
 0xf56   :  { %v3078_v17 = vadd.f32 %v3077_v36, %v3076_v37 }
 0xf58   :  { %3750 = vtanh.f32 %v3078_v17 }
 0xf65   :  { %v3751_v52 = vpop.eup %3750 }
 0xf66   :  { %v3080_v14 = vmul.f32 %v3751_v52, %v3074_v28 }
 0xf68   :  { %v3081_v54 = vpack.c.bf16 %v3080_v14, %v3080_v14 }
 0xf6a   :  { %3376 = vmatmul.mubr.bf16.vlgmr.msra.gmra.mxu0 %v3081_v54 }
0x102a   :  { %v3187_v18 = vpop.f32.mrf.mxu0 }
0x102b   :  { %v3188_v2 = vadd.f32 %v3341_v7, %v3187_v18 }
0x102c   :  { %v3377_v19 = vpop.f32.mrf.mxu0 }
0x102d   :  { %3194 = vst.msk [vmem:[%s5161_s9] sm:$0xff] %vm3193_vm1, %v3188_v2 }
0x102e   :  { %v3190_v63 = vpop.f32.mrf.mxu0 }
0x1030   :  { %v3378_v22 = vpop.f32.mrf.mxu0 }
0x1031   :  { %3199 = vsyncpa [#allocation5], 1 }
0x1032   :  { %3200 = vsyncpa [#allocation7], 1 }
0x1033   :  { %3201 = vsyncpa [#allocation10], 1 }

</bundles_post_ra>
